<compile_context>
chip_gen: v6e
topology: v6e:2x2x1
jax: 0.10.0
libtpu: 0.0.40
codegen_flags: <defaults>
</compile_context>

<pallas_src>
import jax
import jax.numpy as jnp
from jax.experimental import pallas as pl
from jax.experimental.pallas import tpu as pltpu

LEAKY_SLOPE = 0.01   # torch.nn.LeakyReLU default negative_slope
BN_EPS = 1e-5        # torch.nn.BatchNorm1d default eps
K = 4                # every conv in the model: kernel_size=4, stride=1


def _lrelu(y):
    return jnp.where(y > 0.0, y, LEAKY_SLOPE * y)


# --------------------------------------------------------------------------
# Fused whole-network kernel (one batch element per grid step)
# --------------------------------------------------------------------------
def _disc_kernel(x_ref,
                 w11, s11, t11,
                 w12, s12, t12,
                 w21, s21, t21,
                 w22, s22, t22,
                 w31, s31, t31,
                 w32, s32, t32,
                 w41, s41, t41,
                 hw1, hs1, ht1,
                 hw2, hs2, ht2,
                 fw, fb,
                 o_ref,
                 pad12, pad21, pad22, pad31, pad32, pad41,
                 pool1, pool2, pool3, pool4):

    def conv_bn_lrelu(pad_ref, x, w_ref, s_ref, t_ref, pad_left=1):
        """x: (L, C_in) f32; pad_ref: VMEM (L+K-1, C_in) f32 scratch."""
        L = x.shape[0]
        pad_ref[...] = jnp.zeros_like(pad_ref)          # SAME zero padding
        pad_ref[pad_left:pad_left + L, :] = x
        # im2col: single deep-contraction MXU matmul (bf16 in, f32 acc).
        cols = jnp.concatenate([pad_ref[k:k + L, :] for k in range(K)], axis=1)
        acc = jnp.dot(cols.astype(jnp.bfloat16), w_ref[...],
                      preferred_element_type=jnp.float32)
        return _lrelu(acc * s_ref[...] + t_ref[...])    # folded bias+BN, LeakyReLU

    def maxpool_same(pool_ref, y, k, pad_left):
        """MyMaxPool1dPadSame: pad p=k-1 (computed for stride 1), pool stride=k,
        zeros participate in the max, trailing partial window dropped."""
        Lw = pool_ref.shape[0]              # = L_out * k
        L_out = Lw // k
        pool_ref[...] = jnp.zeros_like(pool_ref)
        n = min(y.shape[0], Lw - pad_left)
        pool_ref[pad_left:pad_left + n, :] = y[:n, :]
        if L_out == 1:
            m = pool_ref[0:1, :]
            for j in range(1, k):
                m = jnp.maximum(m, pool_ref[j:j + 1, :])
        else:
            m = pool_ref[pl.ds(0, L_out, stride=k), :]      # strided VMEM loads
            for j in range(1, k):
                m = jnp.maximum(m, pool_ref[pl.ds(j, L_out, stride=k), :])
        return m

    # ---------------- layer1 ----------------
    x = x_ref[0]                                   # (131, 1): SAME-padded input
    L1 = 128
    w = w11[...]                                   # (K, 32) f32
    y = x[0:L1, 0:1] * w[0:1, :]                   # VPU broadcast-MAC (C_in = 1)
    for k in range(1, K):
        y = y + x[k:k + L1, 0:1] * w[k:k + 1, :]
    y = _lrelu(y * s11[...] + t11[...])            # (128, 32)
    y = conv_bn_lrelu(pad12, y, w12, s12, t12)     # (128, 32)
    y = maxpool_same(pool1, y, 4, 1)               # (32, 32)
    # ---------------- layer2 ----------------
    y = conv_bn_lrelu(pad21, y, w21, s21, t21)     # (32, 64)
    y = conv_bn_lrelu(pad22, y, w22, s22, t22)     # (32, 64)
    y = maxpool_same(pool2, y, 4, 1)               # (8, 64)
    # ---------------- layer3 ----------------
    y = conv_bn_lrelu(pad31, y, w31, s31, t31)     # (8, 128)
    y = conv_bn_lrelu(pad32, y, w32, s32, t32)     # (8, 128)
    y = maxpool_same(pool3, y, 8, 3)               # (1, 128)
    # ---------------- layer4 ----------------
    y = conv_bn_lrelu(pad41, y, w41, s41, t41)     # (1, 256)
    y = maxpool_same(pool4, y, 4, 1)               # (1, 256)
    # ---------- flatten + layer5 + fc ----------
    h = jnp.dot(y.astype(jnp.bfloat16), hw1[...],
                preferred_element_type=jnp.float32)
    h = _lrelu(h * hs1[...] + ht1[...])
    h = jnp.dot(h.astype(jnp.bfloat16), hw2[...],
                preferred_element_type=jnp.float32)
    h = _lrelu(h * hs2[...] + ht2[...])
    out = jnp.dot(h.astype(jnp.bfloat16), fw[...],
                  preferred_element_type=jnp.float32) + fb[...]
    o_ref[0] = out.astype(o_ref.dtype)             # (1, 1)


# --------------------------------------------------------------------------
# Wrapper: one pallas_call for the whole forward pass
# --------------------------------------------------------------------------
def discriminator_forward(x_ncl, params):
    """x_ncl: (N, 1, L) float32, NCL layout like the PyTorch module."""
    N, c_in, L = x_ncl.shape
    assert c_in == 1 and L == 128
    # NCL -> NLC once, plus SAME pad (left 1, right 2) for the first conv.
    x = jnp.transpose(x_ncl, (0, 2, 1)).astype(jnp.float32)
    xp = jnp.pad(x, ((0, 0), (1, 2), (0, 0)))                  # (N, 131, 1)

    inputs = [xp]
    in_specs = [pl.BlockSpec((1, L + K - 1, 1), lambda b: (b, 0, 0))]

    def add_const(a):   # whole-array VMEM-resident constants (weights etc.)
        inputs.append(a)
        in_specs.append(pl.BlockSpec(a.shape, lambda b, _n=a.ndim: (0,) * _n))

    for name in ("l1c1", "l1c2", "l2c1", "l2c2", "l3c1", "l3c2", "l4c1",
                 "head1", "head2"):
        for a in params[name]:
            add_const(a)
    for a in params["fc"]:
        add_const(a)

    out = pl.pallas_call(
        _disc_kernel,
        out_shape=jax.ShapeDtypeStruct((N, 1, 1), jnp.float32),
        grid=(N,),
        in_specs=in_specs,
        out_specs=pl.BlockSpec((1, 1, 1), lambda b: (b, 0, 0)),
        scratch_shapes=[
            pltpu.VMEM((131, 32), jnp.float32),   # pad buf for l1c2
            pltpu.VMEM((35, 32), jnp.float32),    # pad buf for l2c1
            pltpu.VMEM((35, 64), jnp.float32),    # pad buf for l2c2
            pltpu.VMEM((11, 64), jnp.float32),    # pad buf for l3c1
            pltpu.VMEM((11, 128), jnp.float32),   # pad buf for l3c2
            pltpu.VMEM((4, 128), jnp.float32),    # pad buf for l4c1
            pltpu.VMEM((128, 32), jnp.float32),   # pool buf layer1
            pltpu.VMEM((32, 64), jnp.float32),    # pool buf layer2
            pltpu.VMEM((8, 128), jnp.float32),    # pool buf layer3
            pltpu.VMEM((4, 256), jnp.float32),    # pool buf layer4
        ],
        compiler_params=pltpu.CompilerParams(
            dimension_semantics=("parallel",)),
    )(*inputs)
    return out.reshape(N, 1)


# --------------------------------------------------------------------------
# Parameter construction (deterministic, synthetic; BN folded for eval mode)
# --------------------------------------------------------------------------
def _bn_fold(key, c_out, bias):
    k1, k2, k3, k4 = jax.random.split(key, 4)
    gamma = jax.random.uniform(k1, (c_out,), minval=0.5, maxval=1.5)
    beta = jax.random.normal(k2, (c_out,)) * 0.1
    mean = jax.random.normal(k3, (c_out,)) * 0.1
    var = jax.random.uniform(k4, (c_out,), minval=0.5, maxval=1.5)
    scale = gamma / jnp.sqrt(var + BN_EPS)
    shift = beta + (bias - mean) * scale
    return (scale.reshape(1, c_out).astype(jnp.float32),
            shift.reshape(1, c_out).astype(jnp.float32))


def make_conv_params(key, c_in, c_out, k):
    k1, k2, k3 = jax.random.split(key, 3)
    w = (jax.random.normal(k1, (k, c_in, c_out)) * 0.1).astype(jnp.float32)
    b = (jax.random.normal(k2, (c_out,)) * 0.1).astype(jnp.float32)
    scale, shift = _bn_fold(k3, c_out, b)
    if c_in == 1:
        w = w.reshape(k, c_out)                                 # VPU path, f32
    else:
        w = w.reshape(k * c_in, c_out).astype(jnp.bfloat16)     # im2col, bf16 MXU
    return w, scale, shift


def make_linear_bn_params(key, c_in, c_out):
    k1, k2, k3 = jax.random.split(key, 3)
    w = (jax.random.normal(k1, (c_in, c_out)) * 0.1).astype(jnp.bfloat16)
    b = (jax.random.normal(k2, (c_out,)) * 0.1).astype(jnp.float32)
    scale, shift = _bn_fold(k3, c_out, b)
    return w, scale, shift


if __name__ == "__main__":
    key = jax.random.PRNGKey(0)
    keys = jax.random.split(key, 12)

    params = {
        "l1c1": make_conv_params(keys[0], 1, 32, K),
        "l1c2": make_conv_params(keys[1], 32, 32, K),
        "l2c1": make_conv_params(keys[2], 32, 64, K),
        "l2c2": make_conv_params(keys[3], 64, 64, K),
        "l3c1": make_conv_params(keys[4], 64, 128, K),
        "l3c2": make_conv_params(keys[5], 128, 128, K),
        "l4c1": make_conv_params(keys[6], 128, 256, K),
        "head1": make_linear_bn_params(keys[7], 256, 256),
        "head2": make_linear_bn_params(keys[8], 256, 256),
    }
    fc_w = (jax.random.normal(keys[9], (256, 1)) * 0.1).astype(jnp.bfloat16)
    fc_b = (jax.random.normal(keys[10], (1,)) * 0.1).astype(jnp.float32)
    params["fc"] = (fc_w, fc_b.reshape(1, 1))

    # length=128 so the cascade of SAME max-pools (/4, /4, /8, /4) reaches
    # spatial size 1, as required by Linear(256 * 1, 256).
    N, L = 2, 128
    x = jax.random.normal(keys[11], (N, 1, L), dtype=jnp.float32)  # NCL like torch

    fwd = jax.jit(discriminator_forward)
    out = jax.block_until_ready(fwd(x, params))

    assert out.shape == (N, 1), out.shape
    assert bool(jnp.all(jnp.isfinite(out)))
    # TODO(synk): dropout layers are identity and BatchNorm uses running stats
    # (inference semantics); training-mode batch statistics are not reproduced.
    print("KERNEL_OK")
</pallas_src>

<mosaic_0001>
module attributes {stable_mosaic.version = 11 : i64} {
  func.func @_disc_kernel(%arg0: i32, %arg1: memref<1x131x1xf32, #tpu.memory_space<vmem>>, %arg2: memref<4x32xf32, #tpu.memory_space<vmem>>, %arg3: memref<1x32xf32, #tpu.memory_space<vmem>>, %arg4: memref<1x32xf32, #tpu.memory_space<vmem>>, %arg5: memref<128x32xbf16, #tpu.memory_space<vmem>>, %arg6: memref<1x32xf32, #tpu.memory_space<vmem>>, %arg7: memref<1x32xf32, #tpu.memory_space<vmem>>, %arg8: memref<128x64xbf16, #tpu.memory_space<vmem>>, %arg9: memref<1x64xf32, #tpu.memory_space<vmem>>, %arg10: memref<1x64xf32, #tpu.memory_space<vmem>>, %arg11: memref<256x64xbf16, #tpu.memory_space<vmem>>, %arg12: memref<1x64xf32, #tpu.memory_space<vmem>>, %arg13: memref<1x64xf32, #tpu.memory_space<vmem>>, %arg14: memref<256x128xbf16, #tpu.memory_space<vmem>>, %arg15: memref<1x128xf32, #tpu.memory_space<vmem>>, %arg16: memref<1x128xf32, #tpu.memory_space<vmem>>, %arg17: memref<512x128xbf16, #tpu.memory_space<vmem>>, %arg18: memref<1x128xf32, #tpu.memory_space<vmem>>, %arg19: memref<1x128xf32, #tpu.memory_space<vmem>>, %arg20: memref<512x256xbf16, #tpu.memory_space<vmem>>, %arg21: memref<1x256xf32, #tpu.memory_space<vmem>>, %arg22: memref<1x256xf32, #tpu.memory_space<vmem>>, %arg23: memref<256x256xbf16, #tpu.memory_space<vmem>>, %arg24: memref<1x256xf32, #tpu.memory_space<vmem>>, %arg25: memref<1x256xf32, #tpu.memory_space<vmem>>, %arg26: memref<256x256xbf16, #tpu.memory_space<vmem>>, %arg27: memref<1x256xf32, #tpu.memory_space<vmem>>, %arg28: memref<1x256xf32, #tpu.memory_space<vmem>>, %arg29: memref<256x1xbf16, #tpu.memory_space<vmem>>, %arg30: memref<1x1xf32, #tpu.memory_space<vmem>>, %arg31: memref<1x1x1xf32, #tpu.memory_space<vmem>>, %arg32: memref<131x32xf32, #tpu.memory_space<vmem>>, %arg33: memref<35x32xf32, #tpu.memory_space<vmem>>, %arg34: memref<35x64xf32, #tpu.memory_space<vmem>>, %arg35: memref<11x64xf32, #tpu.memory_space<vmem>>, %arg36: memref<11x128xf32, #tpu.memory_space<vmem>>, %arg37: memref<4x128xf32, #tpu.memory_space<vmem>>, %arg38: memref<128x32xf32, #tpu.memory_space<vmem>>, %arg39: memref<32x64xf32, #tpu.memory_space<vmem>>, %arg40: memref<8x128xf32, #tpu.memory_space<vmem>>, %arg41: memref<4x256xf32, #tpu.memory_space<vmem>>) attributes {dimension_semantics = [#tpu.dimension_semantics<parallel>], iteration_bounds = array<i64: 2>, scalar_prefetch = 0 : i64, scratch_operands = 10 : i64, tpu.core_type = #tpu.core_type<tc>, window_params = [{transform_indices = @transform_0, window_bounds = array<i64: 1, 131, 1>}, {pipeline_mode = #tpu.pipeline_mode<synchronous>, transform_indices = @transform_1, window_bounds = array<i64: 4, 32>}, {pipeline_mode = #tpu.pipeline_mode<synchronous>, transform_indices = @transform_2, window_bounds = array<i64: 1, 32>}, {pipeline_mode = #tpu.pipeline_mode<synchronous>, transform_indices = @transform_3, window_bounds = array<i64: 1, 32>}, {pipeline_mode = #tpu.pipeline_mode<synchronous>, transform_indices = @transform_4, window_bounds = array<i64: 128, 32>}, {pipeline_mode = #tpu.pipeline_mode<synchronous>, transform_indices = @transform_5, window_bounds = array<i64: 1, 32>}, {pipeline_mode = #tpu.pipeline_mode<synchronous>, transform_indices = @transform_6, window_bounds = array<i64: 1, 32>}, {pipeline_mode = #tpu.pipeline_mode<synchronous>, transform_indices = @transform_7, window_bounds = array<i64: 128, 64>}, {pipeline_mode = #tpu.pipeline_mode<synchronous>, transform_indices = @transform_8, window_bounds = array<i64: 1, 64>}, {pipeline_mode = #tpu.pipeline_mode<synchronous>, transform_indices = @transform_9, window_bounds = array<i64: 1, 64>}, {pipeline_mode = #tpu.pipeline_mode<synchronous>, transform_indices = @transform_10, window_bounds = array<i64: 256, 64>}, {pipeline_mode = #tpu.pipeline_mode<synchronous>, transform_indices = @transform_11, window_bounds = array<i64: 1, 64>}, {pipeline_mode = #tpu.pipeline_mode<synchronous>, transform_indices = @transform_12, window_bounds = array<i64: 1, 64>}, {pipeline_mode = #tpu.pipeline_mode<synchronous>, transform_indices = @transform_13, window_bounds = array<i64: 256, 128>}, {pipeline_mode = #tpu.pipeline_mode<synchronous>, transform_indices = @transform_14, window_bounds = array<i64: 1, 128>}, {pipeline_mode = #tpu.pipeline_mode<synchronous>, transform_indices = @transform_15, window_bounds = array<i64: 1, 128>}, {pipeline_mode = #tpu.pipeline_mode<synchronous>, transform_indices = @transform_16, window_bounds = array<i64: 512, 128>}, {pipeline_mode = #tpu.pipeline_mode<synchronous>, transform_indices = @transform_17, window_bounds = array<i64: 1, 128>}, {pipeline_mode = #tpu.pipeline_mode<synchronous>, transform_indices = @transform_18, window_bounds = array<i64: 1, 128>}, {pipeline_mode = #tpu.pipeline_mode<synchronous>, transform_indices = @transform_19, window_bounds = array<i64: 512, 256>}, {pipeline_mode = #tpu.pipeline_mode<synchronous>, transform_indices = @transform_20, window_bounds = array<i64: 1, 256>}, {pipeline_mode = #tpu.pipeline_mode<synchronous>, transform_indices = @transform_21, window_bounds = array<i64: 1, 256>}, {pipeline_mode = #tpu.pipeline_mode<synchronous>, transform_indices = @transform_22, window_bounds = array<i64: 256, 256>}, {pipeline_mode = #tpu.pipeline_mode<synchronous>, transform_indices = @transform_23, window_bounds = array<i64: 1, 256>}, {pipeline_mode = #tpu.pipeline_mode<synchronous>, transform_indices = @transform_24, window_bounds = array<i64: 1, 256>}, {pipeline_mode = #tpu.pipeline_mode<synchronous>, transform_indices = @transform_25, window_bounds = array<i64: 256, 256>}, {pipeline_mode = #tpu.pipeline_mode<synchronous>, transform_indices = @transform_26, window_bounds = array<i64: 1, 256>}, {pipeline_mode = #tpu.pipeline_mode<synchronous>, transform_indices = @transform_27, window_bounds = array<i64: 1, 256>}, {pipeline_mode = #tpu.pipeline_mode<synchronous>, transform_indices = @transform_28, window_bounds = array<i64: 256, 1>}, {pipeline_mode = #tpu.pipeline_mode<synchronous>, transform_indices = @transform_29, window_bounds = array<i64: 1, 1>}, {transform_indices = @transform_30, window_bounds = array<i64: 1, 1, 1>}]} {
    %c0 = arith.constant 0 : index
    %c0_0 = arith.constant 0 : index
    %c0_1 = arith.constant 0 : index
    %0 = vector.load %arg1[%c0, %c0_0, %c0_1] : memref<1x131x1xf32, #tpu.memory_space<vmem>>, vector<1x131x1xf32>
    %1 = vector.shape_cast %0 : vector<1x131x1xf32> to vector<131x1xf32>
    %c0_2 = arith.constant 0 : index
    %c0_3 = arith.constant 0 : index
    %2 = vector.load %arg2[%c0_2, %c0_3] : memref<4x32xf32, #tpu.memory_space<vmem>>, vector<4x32xf32>
    %3 = vector.extract_strided_slice %1 {offsets = [0, 0], sizes = [128, 1], strides = [1, 1]} : vector<131x1xf32> to vector<128x1xf32>
    %4 = vector.extract_strided_slice %2 {offsets = [0, 0], sizes = [1, 32], strides = [1, 1]} : vector<4x32xf32> to vector<1x32xf32>
    %5 = vector.broadcast %3 : vector<128x1xf32> to vector<128x32xf32>
    %6 = vector.broadcast %4 : vector<1x32xf32> to vector<128x32xf32>
    %7 = arith.mulf %5, %6 : vector<128x32xf32>
    %8 = vector.extract_strided_slice %1 {offsets = [1, 0], sizes = [128, 1], strides = [1, 1]} : vector<131x1xf32> to vector<128x1xf32>
    %9 = vector.extract_strided_slice %2 {offsets = [1, 0], sizes = [1, 32], strides = [1, 1]} : vector<4x32xf32> to vector<1x32xf32>
    %10 = vector.broadcast %8 : vector<128x1xf32> to vector<128x32xf32>
    %11 = vector.broadcast %9 : vector<1x32xf32> to vector<128x32xf32>
    %12 = arith.mulf %10, %11 : vector<128x32xf32>
    %13 = arith.addf %7, %12 : vector<128x32xf32>
    %14 = vector.extract_strided_slice %1 {offsets = [2, 0], sizes = [128, 1], strides = [1, 1]} : vector<131x1xf32> to vector<128x1xf32>
    %15 = vector.extract_strided_slice %2 {offsets = [2, 0], sizes = [1, 32], strides = [1, 1]} : vector<4x32xf32> to vector<1x32xf32>
    %16 = vector.broadcast %14 : vector<128x1xf32> to vector<128x32xf32>
    %17 = vector.broadcast %15 : vector<1x32xf32> to vector<128x32xf32>
    %18 = arith.mulf %16, %17 : vector<128x32xf32>
    %19 = arith.addf %13, %18 : vector<128x32xf32>
    %20 = vector.extract_strided_slice %1 {offsets = [3, 0], sizes = [128, 1], strides = [1, 1]} : vector<131x1xf32> to vector<128x1xf32>
    %21 = vector.extract_strided_slice %2 {offsets = [3, 0], sizes = [1, 32], strides = [1, 1]} : vector<4x32xf32> to vector<1x32xf32>
    %22 = vector.broadcast %20 : vector<128x1xf32> to vector<128x32xf32>
    %23 = vector.broadcast %21 : vector<1x32xf32> to vector<128x32xf32>
    %24 = arith.mulf %22, %23 : vector<128x32xf32>
    %25 = arith.addf %19, %24 : vector<128x32xf32>
    %c0_4 = arith.constant 0 : index
    %c0_5 = arith.constant 0 : index
    %26 = vector.load %arg3[%c0_4, %c0_5] : memref<1x32xf32, #tpu.memory_space<vmem>>, vector<1x32xf32>
    %27 = vector.broadcast %26 : vector<1x32xf32> to vector<128x32xf32>
    %28 = arith.mulf %25, %27 : vector<128x32xf32>
    %c0_6 = arith.constant 0 : index
    %c0_7 = arith.constant 0 : index
    %29 = vector.load %arg4[%c0_6, %c0_7] : memref<1x32xf32, #tpu.memory_space<vmem>>, vector<1x32xf32>
    %30 = vector.broadcast %29 : vector<1x32xf32> to vector<128x32xf32>
    %31 = arith.addf %28, %30 : vector<128x32xf32>
    %cst = arith.constant 0.000000e+00 : f32
    %32 = vector.broadcast %cst : f32 to vector<128x32xf32>
    %33 = arith.cmpf ogt, %31, %32 : vector<128x32xf32>
    %cst_8 = arith.constant 0.00999999977 : f32
    %34 = vector.broadcast %cst_8 : f32 to vector<128x32xf32>
    %35 = arith.mulf %34, %31 : vector<128x32xf32>
    %36 = arith.select %33, %31, %35 : vector<128x32xi1>, vector<128x32xf32>
    %cst_9 = arith.constant 0.000000e+00 : f32
    %37 = vector.broadcast %cst_9 : f32 to vector<131x32xf32>
    %c0_10 = arith.constant 0 : index
    %c0_11 = arith.constant 0 : index
    %38 = vector.load %arg32[%c0_10, %c0_11] : memref<131x32xf32, #tpu.memory_space<vmem>>, vector<131x32xf32>
    tpu.vector_store %arg32[%c0_10, %c0_11], %37 {strides = array<i32>} : memref<131x32xf32, #tpu.memory_space<vmem>>, vector<131x32xf32>,
    %c1 = arith.constant 1 : index
    %c0_12 = arith.constant 0 : index
    %39 = vector.load %arg32[%c1, %c0_12] : memref<131x32xf32, #tpu.memory_space<vmem>>, vector<128x32xf32>
    tpu.vector_store %arg32[%c1, %c0_12], %36 {strides = array<i32>} : memref<131x32xf32, #tpu.memory_space<vmem>>, vector<128x32xf32>,
    %c0_13 = arith.constant 0 : index
    %c0_14 = arith.constant 0 : index
    %40 = vector.load %arg32[%c0_13, %c0_14] : memref<131x32xf32, #tpu.memory_space<vmem>>, vector<128x32xf32>
    %c1_15 = arith.constant 1 : index
    %c0_16 = arith.constant 0 : index
    %41 = vector.load %arg32[%c1_15, %c0_16] : memref<131x32xf32, #tpu.memory_space<vmem>>, vector<128x32xf32>
    %c2 = arith.constant 2 : index
    %c0_17 = arith.constant 0 : index
    %42 = vector.load %arg32[%c2, %c0_17] : memref<131x32xf32, #tpu.memory_space<vmem>>, vector<128x32xf32>
    %c3 = arith.constant 3 : index
    %c0_18 = arith.constant 0 : index
    %43 = vector.load %arg32[%c3, %c0_18] : memref<131x32xf32, #tpu.memory_space<vmem>>, vector<128x32xf32>
    %44 = tpu.concatenate %40, %41, %42, %43 in 1 : vector<128x32xf32>, vector<128x32xf32>, vector<128x32xf32>, vector<128x32xf32> -> vector<128x128xf32>
    %45 = arith.truncf %44 : vector<128x128xf32> to vector<128x128xbf16>
    %c0_19 = arith.constant 0 : index
    %c0_20 = arith.constant 0 : index
    %46 = vector.load %arg5[%c0_19, %c0_20] : memref<128x32xbf16, #tpu.memory_space<vmem>>, vector<128x32xbf16>
    %cst_21 = arith.constant dense<0.000000e+00> : vector<128x32xf32>
    %47 = tpu.matmul %45, %46, %cst_21 {dimension_numbers = #tpu.dot_dimension_numbers<[1], [0], [0], [1], [0, 0, 1, 1], [], []>} : vector<128x128xbf16>, vector<128x32xbf16>, vector<128x32xf32> -> vector<128x32xf32>
    %c0_22 = arith.constant 0 : index
    %c0_23 = arith.constant 0 : index
    %48 = vector.load %arg6[%c0_22, %c0_23] : memref<1x32xf32, #tpu.memory_space<vmem>>, vector<1x32xf32>
    %49 = vector.broadcast %48 : vector<1x32xf32> to vector<128x32xf32>
    %50 = arith.mulf %47, %49 : vector<128x32xf32>
    %c0_24 = arith.constant 0 : index
    %c0_25 = arith.constant 0 : index
    %51 = vector.load %arg7[%c0_24, %c0_25] : memref<1x32xf32, #tpu.memory_space<vmem>>, vector<1x32xf32>
    %52 = vector.broadcast %51 : vector<1x32xf32> to vector<128x32xf32>
    %53 = arith.addf %50, %52 : vector<128x32xf32>
    %cst_26 = arith.constant 0.000000e+00 : f32
    %54 = vector.broadcast %cst_26 : f32 to vector<128x32xf32>
    %55 = arith.cmpf ogt, %53, %54 : vector<128x32xf32>
    %cst_27 = arith.constant 0.00999999977 : f32
    %56 = vector.broadcast %cst_27 : f32 to vector<128x32xf32>
    %57 = arith.mulf %56, %53 : vector<128x32xf32>
    %58 = arith.select %55, %53, %57 : vector<128x32xi1>, vector<128x32xf32>
    %cst_28 = arith.constant 0.000000e+00 : f32
    %59 = vector.broadcast %cst_28 : f32 to vector<128x32xf32>
    %c0_29 = arith.constant 0 : index
    %c0_30 = arith.constant 0 : index
    %60 = vector.load %arg38[%c0_29, %c0_30] : memref<128x32xf32, #tpu.memory_space<vmem>>, vector<128x32xf32>
    tpu.vector_store %arg38[%c0_29, %c0_30], %59 {strides = array<i32>} : memref<128x32xf32, #tpu.memory_space<vmem>>, vector<128x32xf32>,
    %61 = vector.extract_strided_slice %58 {offsets = [0, 0], sizes = [127, 32], strides = [1, 1]} : vector<128x32xf32> to vector<127x32xf32>
    %c1_31 = arith.constant 1 : index
    %c0_32 = arith.constant 0 : index
    %62 = vector.load %arg38[%c1_31, %c0_32] : memref<128x32xf32, #tpu.memory_space<vmem>>, vector<127x32xf32>
    tpu.vector_store %arg38[%c1_31, %c0_32], %61 {strides = array<i32>} : memref<128x32xf32, #tpu.memory_space<vmem>>, vector<127x32xf32>,
    %c0_33 = arith.constant 0 : index
    %c0_34 = arith.constant 0 : index
    %63 = tpu.strided_load %arg38[%c0_33, %c0_34] {strides = array<i32: 4, 1>} : memref<128x32xf32, #tpu.memory_space<vmem>>, vector<32x32xf32>
    %c1_35 = arith.constant 1 : index
    %c0_36 = arith.constant 0 : index
    %64 = tpu.strided_load %arg38[%c1_35, %c0_36] {strides = array<i32: 4, 1>} : memref<128x32xf32, #tpu.memory_space<vmem>>, vector<32x32xf32>
    %65 = arith.maximumf %63, %64 : vector<32x32xf32>
    %c2_37 = arith.constant 2 : index
    %c0_38 = arith.constant 0 : index
    %66 = tpu.strided_load %arg38[%c2_37, %c0_38] {strides = array<i32: 4, 1>} : memref<128x32xf32, #tpu.memory_space<vmem>>, vector<32x32xf32>
    %67 = arith.maximumf %65, %66 : vector<32x32xf32>
    %c3_39 = arith.constant 3 : index
    %c0_40 = arith.constant 0 : index
    %68 = tpu.strided_load %arg38[%c3_39, %c0_40] {strides = array<i32: 4, 1>} : memref<128x32xf32, #tpu.memory_space<vmem>>, vector<32x32xf32>
    %69 = arith.maximumf %67, %68 : vector<32x32xf32>
    %cst_41 = arith.constant 0.000000e+00 : f32
    %70 = vector.broadcast %cst_41 : f32 to vector<35x32xf32>
    %c0_42 = arith.constant 0 : index
    %c0_43 = arith.constant 0 : index
    %71 = vector.load %arg33[%c0_42, %c0_43] : memref<35x32xf32, #tpu.memory_space<vmem>>, vector<35x32xf32>
    tpu.vector_store %arg33[%c0_42, %c0_43], %70 {strides = array<i32>} : memref<35x32xf32, #tpu.memory_space<vmem>>, vector<35x32xf32>,
    %c1_44 = arith.constant 1 : index
    %c0_45 = arith.constant 0 : index
    %72 = vector.load %arg33[%c1_44, %c0_45] : memref<35x32xf32, #tpu.memory_space<vmem>>, vector<32x32xf32>
    tpu.vector_store %arg33[%c1_44, %c0_45], %69 {strides = array<i32>} : memref<35x32xf32, #tpu.memory_space<vmem>>, vector<32x32xf32>,
    %c0_46 = arith.constant 0 : index
    %c0_47 = arith.constant 0 : index
    %73 = vector.load %arg33[%c0_46, %c0_47] : memref<35x32xf32, #tpu.memory_space<vmem>>, vector<32x32xf32>
    %c1_48 = arith.constant 1 : index
    %c0_49 = arith.constant 0 : index
    %74 = vector.load %arg33[%c1_48, %c0_49] : memref<35x32xf32, #tpu.memory_space<vmem>>, vector<32x32xf32>
    %c2_50 = arith.constant 2 : index
    %c0_51 = arith.constant 0 : index
    %75 = vector.load %arg33[%c2_50, %c0_51] : memref<35x32xf32, #tpu.memory_space<vmem>>, vector<32x32xf32>
    %c3_52 = arith.constant 3 : index
    %c0_53 = arith.constant 0 : index
    %76 = vector.load %arg33[%c3_52, %c0_53] : memref<35x32xf32, #tpu.memory_space<vmem>>, vector<32x32xf32>
    %77 = tpu.concatenate %73, %74, %75, %76 in 1 : vector<32x32xf32>, vector<32x32xf32>, vector<32x32xf32>, vector<32x32xf32> -> vector<32x128xf32>
    %78 = arith.truncf %77 : vector<32x128xf32> to vector<32x128xbf16>
    %c0_54 = arith.constant 0 : index
    %c0_55 = arith.constant 0 : index
    %79 = vector.load %arg8[%c0_54, %c0_55] : memref<128x64xbf16, #tpu.memory_space<vmem>>, vector<128x64xbf16>
    %cst_56 = arith.constant dense<0.000000e+00> : vector<32x64xf32>
    %80 = tpu.matmul %78, %79, %cst_56 {dimension_numbers = #tpu.dot_dimension_numbers<[1], [0], [0], [1], [0, 0, 1, 1], [], []>} : vector<32x128xbf16>, vector<128x64xbf16>, vector<32x64xf32> -> vector<32x64xf32>
    %c0_57 = arith.constant 0 : index
    %c0_58 = arith.constant 0 : index
    %81 = vector.load %arg9[%c0_57, %c0_58] : memref<1x64xf32, #tpu.memory_space<vmem>>, vector<1x64xf32>
    %82 = vector.broadcast %81 : vector<1x64xf32> to vector<32x64xf32>
    %83 = arith.mulf %80, %82 : vector<32x64xf32>
    %c0_59 = arith.constant 0 : index
    %c0_60 = arith.constant 0 : index
    %84 = vector.load %arg10[%c0_59, %c0_60] : memref<1x64xf32, #tpu.memory_space<vmem>>, vector<1x64xf32>
    %85 = vector.broadcast %84 : vector<1x64xf32> to vector<32x64xf32>
    %86 = arith.addf %83, %85 : vector<32x64xf32>
    %cst_61 = arith.constant 0.000000e+00 : f32
    %87 = vector.broadcast %cst_61 : f32 to vector<32x64xf32>
    %88 = arith.cmpf ogt, %86, %87 : vector<32x64xf32>
    %cst_62 = arith.constant 0.00999999977 : f32
    %89 = vector.broadcast %cst_62 : f32 to vector<32x64xf32>
    %90 = arith.mulf %89, %86 : vector<32x64xf32>
    %91 = arith.select %88, %86, %90 : vector<32x64xi1>, vector<32x64xf32>
    %cst_63 = arith.constant 0.000000e+00 : f32
    %92 = vector.broadcast %cst_63 : f32 to vector<35x64xf32>
    %c0_64 = arith.constant 0 : index
    %c0_65 = arith.constant 0 : index
    %93 = vector.load %arg34[%c0_64, %c0_65] : memref<35x64xf32, #tpu.memory_space<vmem>>, vector<35x64xf32>
    tpu.vector_store %arg34[%c0_64, %c0_65], %92 {strides = array<i32>} : memref<35x64xf32, #tpu.memory_space<vmem>>, vector<35x64xf32>,
    %c1_66 = arith.constant 1 : index
    %c0_67 = arith.constant 0 : index
    %94 = vector.load %arg34[%c1_66, %c0_67] : memref<35x64xf32, #tpu.memory_space<vmem>>, vector<32x64xf32>
    tpu.vector_store %arg34[%c1_66, %c0_67], %91 {strides = array<i32>} : memref<35x64xf32, #tpu.memory_space<vmem>>, vector<32x64xf32>,
    %c0_68 = arith.constant 0 : index
    %c0_69 = arith.constant 0 : index
    %95 = vector.load %arg34[%c0_68, %c0_69] : memref<35x64xf32, #tpu.memory_space<vmem>>, vector<32x64xf32>
    %c1_70 = arith.constant 1 : index
    %c0_71 = arith.constant 0 : index
    %96 = vector.load %arg34[%c1_70, %c0_71] : memref<35x64xf32, #tpu.memory_space<vmem>>, vector<32x64xf32>
    %c2_72 = arith.constant 2 : index
    %c0_73 = arith.constant 0 : index
    %97 = vector.load %arg34[%c2_72, %c0_73] : memref<35x64xf32, #tpu.memory_space<vmem>>, vector<32x64xf32>
    %c3_74 = arith.constant 3 : index
    %c0_75 = arith.constant 0 : index
    %98 = vector.load %arg34[%c3_74, %c0_75] : memref<35x64xf32, #tpu.memory_space<vmem>>, vector<32x64xf32>
    %99 = tpu.concatenate %95, %96, %97, %98 in 1 : vector<32x64xf32>, vector<32x64xf32>, vector<32x64xf32>, vector<32x64xf32> -> vector<32x256xf32>
    %100 = arith.truncf %99 : vector<32x256xf32> to vector<32x256xbf16>
    %c0_76 = arith.constant 0 : index
    %c0_77 = arith.constant 0 : index
    %101 = vector.load %arg11[%c0_76, %c0_77] : memref<256x64xbf16, #tpu.memory_space<vmem>>, vector<256x64xbf16>
    %cst_78 = arith.constant dense<0.000000e+00> : vector<32x64xf32>
    %102 = tpu.matmul %100, %101, %cst_78 {dimension_numbers = #tpu.dot_dimension_numbers<[1], [0], [0], [1], [0, 0, 1, 1], [], []>} : vector<32x256xbf16>, vector<256x64xbf16>, vector<32x64xf32> -> vector<32x64xf32>
    %c0_79 = arith.constant 0 : index
    %c0_80 = arith.constant 0 : index
    %103 = vector.load %arg12[%c0_79, %c0_80] : memref<1x64xf32, #tpu.memory_space<vmem>>, vector<1x64xf32>
    %104 = vector.broadcast %103 : vector<1x64xf32> to vector<32x64xf32>
    %105 = arith.mulf %102, %104 : vector<32x64xf32>
    %c0_81 = arith.constant 0 : index
    %c0_82 = arith.constant 0 : index
    %106 = vector.load %arg13[%c0_81, %c0_82] : memref<1x64xf32, #tpu.memory_space<vmem>>, vector<1x64xf32>
    %107 = vector.broadcast %106 : vector<1x64xf32> to vector<32x64xf32>
    %108 = arith.addf %105, %107 : vector<32x64xf32>
    %cst_83 = arith.constant 0.000000e+00 : f32
    %109 = vector.broadcast %cst_83 : f32 to vector<32x64xf32>
    %110 = arith.cmpf ogt, %108, %109 : vector<32x64xf32>
    %cst_84 = arith.constant 0.00999999977 : f32
    %111 = vector.broadcast %cst_84 : f32 to vector<32x64xf32>
    %112 = arith.mulf %111, %108 : vector<32x64xf32>
    %113 = arith.select %110, %108, %112 : vector<32x64xi1>, vector<32x64xf32>
    %cst_85 = arith.constant 0.000000e+00 : f32
    %114 = vector.broadcast %cst_85 : f32 to vector<32x64xf32>
    %c0_86 = arith.constant 0 : index
    %c0_87 = arith.constant 0 : index
    %115 = vector.load %arg39[%c0_86, %c0_87] : memref<32x64xf32, #tpu.memory_space<vmem>>, vector<32x64xf32>
    tpu.vector_store %arg39[%c0_86, %c0_87], %114 {strides = array<i32>} : memref<32x64xf32, #tpu.memory_space<vmem>>, vector<32x64xf32>,
    %116 = vector.extract_strided_slice %113 {offsets = [0, 0], sizes = [31, 64], strides = [1, 1]} : vector<32x64xf32> to vector<31x64xf32>
    %c1_88 = arith.constant 1 : index
    %c0_89 = arith.constant 0 : index
    %117 = vector.load %arg39[%c1_88, %c0_89] : memref<32x64xf32, #tpu.memory_space<vmem>>, vector<31x64xf32>
    tpu.vector_store %arg39[%c1_88, %c0_89], %116 {strides = array<i32>} : memref<32x64xf32, #tpu.memory_space<vmem>>, vector<31x64xf32>,
    %c0_90 = arith.constant 0 : index
    %c0_91 = arith.constant 0 : index
    %118 = tpu.strided_load %arg39[%c0_90, %c0_91] {strides = array<i32: 4, 1>} : memref<32x64xf32, #tpu.memory_space<vmem>>, vector<8x64xf32>
    %c1_92 = arith.constant 1 : index
    %c0_93 = arith.constant 0 : index
    %119 = tpu.strided_load %arg39[%c1_92, %c0_93] {strides = array<i32: 4, 1>} : memref<32x64xf32, #tpu.memory_space<vmem>>, vector<8x64xf32>
    %120 = arith.maximumf %118, %119 : vector<8x64xf32>
    %c2_94 = arith.constant 2 : index
    %c0_95 = arith.constant 0 : index
    %121 = tpu.strided_load %arg39[%c2_94, %c0_95] {strides = array<i32: 4, 1>} : memref<32x64xf32, #tpu.memory_space<vmem>>, vector<8x64xf32>
    %122 = arith.maximumf %120, %121 : vector<8x64xf32>
    %c3_96 = arith.constant 3 : index
    %c0_97 = arith.constant 0 : index
    %123 = tpu.strided_load %arg39[%c3_96, %c0_97] {strides = array<i32: 4, 1>} : memref<32x64xf32, #tpu.memory_space<vmem>>, vector<8x64xf32>
    %124 = arith.maximumf %122, %123 : vector<8x64xf32>
    %cst_98 = arith.constant 0.000000e+00 : f32
    %125 = vector.broadcast %cst_98 : f32 to vector<11x64xf32>
    %c0_99 = arith.constant 0 : index
    %c0_100 = arith.constant 0 : index
    %126 = vector.load %arg35[%c0_99, %c0_100] : memref<11x64xf32, #tpu.memory_space<vmem>>, vector<11x64xf32>
    tpu.vector_store %arg35[%c0_99, %c0_100], %125 {strides = array<i32>} : memref<11x64xf32, #tpu.memory_space<vmem>>, vector<11x64xf32>,
    %c1_101 = arith.constant 1 : index
    %c0_102 = arith.constant 0 : index
    %127 = vector.load %arg35[%c1_101, %c0_102] : memref<11x64xf32, #tpu.memory_space<vmem>>, vector<8x64xf32>
    tpu.vector_store %arg35[%c1_101, %c0_102], %124 {strides = array<i32>} : memref<11x64xf32, #tpu.memory_space<vmem>>, vector<8x64xf32>,
    %c0_103 = arith.constant 0 : index
    %c0_104 = arith.constant 0 : index
    %128 = vector.load %arg35[%c0_103, %c0_104] : memref<11x64xf32, #tpu.memory_space<vmem>>, vector<8x64xf32>
    %c1_105 = arith.constant 1 : index
    %c0_106 = arith.constant 0 : index
    %129 = vector.load %arg35[%c1_105, %c0_106] : memref<11x64xf32, #tpu.memory_space<vmem>>, vector<8x64xf32>
    %c2_107 = arith.constant 2 : index
    %c0_108 = arith.constant 0 : index
    %130 = vector.load %arg35[%c2_107, %c0_108] : memref<11x64xf32, #tpu.memory_space<vmem>>, vector<8x64xf32>
    %c3_109 = arith.constant 3 : index
    %c0_110 = arith.constant 0 : index
    %131 = vector.load %arg35[%c3_109, %c0_110] : memref<11x64xf32, #tpu.memory_space<vmem>>, vector<8x64xf32>
    %132 = tpu.concatenate %128, %129, %130, %131 in 1 : vector<8x64xf32>, vector<8x64xf32>, vector<8x64xf32>, vector<8x64xf32> -> vector<8x256xf32>
    %133 = arith.truncf %132 : vector<8x256xf32> to vector<8x256xbf16>
    %c0_111 = arith.constant 0 : index
    %c0_112 = arith.constant 0 : index
    %134 = vector.load %arg14[%c0_111, %c0_112] : memref<256x128xbf16, #tpu.memory_space<vmem>>, vector<256x128xbf16>
    %cst_113 = arith.constant dense<0.000000e+00> : vector<8x128xf32>
    %135 = tpu.matmul %133, %134, %cst_113 {dimension_numbers = #tpu.dot_dimension_numbers<[1], [0], [0], [1], [0, 0, 1, 1], [], []>} : vector<8x256xbf16>, vector<256x128xbf16>, vector<8x128xf32> -> vector<8x128xf32>
    %c0_114 = arith.constant 0 : index
    %c0_115 = arith.constant 0 : index
    %136 = vector.load %arg15[%c0_114, %c0_115] : memref<1x128xf32, #tpu.memory_space<vmem>>, vector<1x128xf32>
    %137 = vector.broadcast %136 : vector<1x128xf32> to vector<8x128xf32>
    %138 = arith.mulf %135, %137 : vector<8x128xf32>
    %c0_116 = arith.constant 0 : index
    %c0_117 = arith.constant 0 : index
    %139 = vector.load %arg16[%c0_116, %c0_117] : memref<1x128xf32, #tpu.memory_space<vmem>>, vector<1x128xf32>
    %140 = vector.broadcast %139 : vector<1x128xf32> to vector<8x128xf32>
    %141 = arith.addf %138, %140 : vector<8x128xf32>
    %cst_118 = arith.constant 0.000000e+00 : f32
    %142 = vector.broadcast %cst_118 : f32 to vector<8x128xf32>
    %143 = arith.cmpf ogt, %141, %142 : vector<8x128xf32>
    %cst_119 = arith.constant 0.00999999977 : f32
    %144 = vector.broadcast %cst_119 : f32 to vector<8x128xf32>
    %145 = arith.mulf %144, %141 : vector<8x128xf32>
    %146 = arith.select %143, %141, %145 : vector<8x128xi1>, vector<8x128xf32>
    %cst_120 = arith.constant 0.000000e+00 : f32
    %147 = vector.broadcast %cst_120 : f32 to vector<11x128xf32>
    %c0_121 = arith.constant 0 : index
    %c0_122 = arith.constant 0 : index
    %148 = vector.load %arg36[%c0_121, %c0_122] : memref<11x128xf32, #tpu.memory_space<vmem>>, vector<11x128xf32>
    tpu.vector_store %arg36[%c0_121, %c0_122], %147 {strides = array<i32>} : memref<11x128xf32, #tpu.memory_space<vmem>>, vector<11x128xf32>,
    %c1_123 = arith.constant 1 : index
    %c0_124 = arith.constant 0 : index
    %149 = vector.load %arg36[%c1_123, %c0_124] : memref<11x128xf32, #tpu.memory_space<vmem>>, vector<8x128xf32>
    tpu.vector_store %arg36[%c1_123, %c0_124], %146 {strides = array<i32>} : memref<11x128xf32, #tpu.memory_space<vmem>>, vector<8x128xf32>,
    %c0_125 = arith.constant 0 : index
    %c0_126 = arith.constant 0 : index
    %150 = vector.load %arg36[%c0_125, %c0_126] : memref<11x128xf32, #tpu.memory_space<vmem>>, vector<8x128xf32>
    %c1_127 = arith.constant 1 : index
    %c0_128 = arith.constant 0 : index
    %151 = vector.load %arg36[%c1_127, %c0_128] : memref<11x128xf32, #tpu.memory_space<vmem>>, vector<8x128xf32>
    %c2_129 = arith.constant 2 : index
    %c0_130 = arith.constant 0 : index
    %152 = vector.load %arg36[%c2_129, %c0_130] : memref<11x128xf32, #tpu.memory_space<vmem>>, vector<8x128xf32>
    %c3_131 = arith.constant 3 : index
    %c0_132 = arith.constant 0 : index
    %153 = vector.load %arg36[%c3_131, %c0_132] : memref<11x128xf32, #tpu.memory_space<vmem>>, vector<8x128xf32>
    %154 = tpu.concatenate %150, %151, %152, %153 in 1 : vector<8x128xf32>, vector<8x128xf32>, vector<8x128xf32>, vector<8x128xf32> -> vector<8x512xf32>
    %155 = arith.truncf %154 : vector<8x512xf32> to vector<8x512xbf16>
    %c0_133 = arith.constant 0 : index
    %c0_134 = arith.constant 0 : index
    %156 = vector.load %arg17[%c0_133, %c0_134] : memref<512x128xbf16, #tpu.memory_space<vmem>>, vector<512x128xbf16>
    %cst_135 = arith.constant dense<0.000000e+00> : vector<8x128xf32>
    %157 = tpu.matmul %155, %156, %cst_135 {dimension_numbers = #tpu.dot_dimension_numbers<[1], [0], [0], [1], [0, 0, 1, 1], [], []>} : vector<8x512xbf16>, vector<512x128xbf16>, vector<8x128xf32> -> vector<8x128xf32>
    %c0_136 = arith.constant 0 : index
    %c0_137 = arith.constant 0 : index
    %158 = vector.load %arg18[%c0_136, %c0_137] : memref<1x128xf32, #tpu.memory_space<vmem>>, vector<1x128xf32>
    %159 = vector.broadcast %158 : vector<1x128xf32> to vector<8x128xf32>
    %160 = arith.mulf %157, %159 : vector<8x128xf32>
    %c0_138 = arith.constant 0 : index
    %c0_139 = arith.constant 0 : index
    %161 = vector.load %arg19[%c0_138, %c0_139] : memref<1x128xf32, #tpu.memory_space<vmem>>, vector<1x128xf32>
    %162 = vector.broadcast %161 : vector<1x128xf32> to vector<8x128xf32>
    %163 = arith.addf %160, %162 : vector<8x128xf32>
    %cst_140 = arith.constant 0.000000e+00 : f32
    %164 = vector.broadcast %cst_140 : f32 to vector<8x128xf32>
    %165 = arith.cmpf ogt, %163, %164 : vector<8x128xf32>
    %cst_141 = arith.constant 0.00999999977 : f32
    %166 = vector.broadcast %cst_141 : f32 to vector<8x128xf32>
    %167 = arith.mulf %166, %163 : vector<8x128xf32>
    %168 = arith.select %165, %163, %167 : vector<8x128xi1>, vector<8x128xf32>
    %cst_142 = arith.constant 0.000000e+00 : f32
    %169 = vector.broadcast %cst_142 : f32 to vector<8x128xf32>
    %c0_143 = arith.constant 0 : index
    %c0_144 = arith.constant 0 : index
    %170 = vector.load %arg40[%c0_143, %c0_144] : memref<8x128xf32, #tpu.memory_space<vmem>>, vector<8x128xf32>
    tpu.vector_store %arg40[%c0_143, %c0_144], %169 {strides = array<i32>} : memref<8x128xf32, #tpu.memory_space<vmem>>, vector<8x128xf32>,
    %171 = vector.extract_strided_slice %168 {offsets = [0, 0], sizes = [5, 128], strides = [1, 1]} : vector<8x128xf32> to vector<5x128xf32>
    %c3_145 = arith.constant 3 : index
    %c0_146 = arith.constant 0 : index
    %172 = vector.load %arg40[%c3_145, %c0_146] : memref<8x128xf32, #tpu.memory_space<vmem>>, vector<5x128xf32>
    tpu.vector_store %arg40[%c3_145, %c0_146], %171 {strides = array<i32>} : memref<8x128xf32, #tpu.memory_space<vmem>>, vector<5x128xf32>,
    %c0_147 = arith.constant 0 : index
    %c0_148 = arith.constant 0 : index
    %173 = vector.load %arg40[%c0_147, %c0_148] : memref<8x128xf32, #tpu.memory_space<vmem>>, vector<1x128xf32>
    %c1_149 = arith.constant 1 : index
    %c0_150 = arith.constant 0 : index
    %174 = vector.load %arg40[%c1_149, %c0_150] : memref<8x128xf32, #tpu.memory_space<vmem>>, vector<1x128xf32>
    %175 = arith.maximumf %173, %174 : vector<1x128xf32>
    %c2_151 = arith.constant 2 : index
    %c0_152 = arith.constant 0 : index
    %176 = vector.load %arg40[%c2_151, %c0_152] : memref<8x128xf32, #tpu.memory_space<vmem>>, vector<1x128xf32>
    %177 = arith.maximumf %175, %176 : vector<1x128xf32>
    %c3_153 = arith.constant 3 : index
    %c0_154 = arith.constant 0 : index
    %178 = vector.load %arg40[%c3_153, %c0_154] : memref<8x128xf32, #tpu.memory_space<vmem>>, vector<1x128xf32>
    %179 = arith.maximumf %177, %178 : vector<1x128xf32>
    %c4 = arith.constant 4 : index
    %c0_155 = arith.constant 0 : index
    %180 = vector.load %arg40[%c4, %c0_155] : memref<8x128xf32, #tpu.memory_space<vmem>>, vector<1x128xf32>
    %181 = arith.maximumf %179, %180 : vector<1x128xf32>
    %c5 = arith.constant 5 : index
    %c0_156 = arith.constant 0 : index
    %182 = vector.load %arg40[%c5, %c0_156] : memref<8x128xf32, #tpu.memory_space<vmem>>, vector<1x128xf32>
    %183 = arith.maximumf %181, %182 : vector<1x128xf32>
    %c6 = arith.constant 6 : index
    %c0_157 = arith.constant 0 : index
    %184 = vector.load %arg40[%c6, %c0_157] : memref<8x128xf32, #tpu.memory_space<vmem>>, vector<1x128xf32>
    %185 = arith.maximumf %183, %184 : vector<1x128xf32>
    %c7 = arith.constant 7 : index
    %c0_158 = arith.constant 0 : index
    %186 = vector.load %arg40[%c7, %c0_158] : memref<8x128xf32, #tpu.memory_space<vmem>>, vector<1x128xf32>
    %187 = arith.maximumf %185, %186 : vector<1x128xf32>
    %cst_159 = arith.constant 0.000000e+00 : f32
    %188 = vector.broadcast %cst_159 : f32 to vector<4x128xf32>
    %c0_160 = arith.constant 0 : index
    %c0_161 = arith.constant 0 : index
    %189 = vector.load %arg37[%c0_160, %c0_161] : memref<4x128xf32, #tpu.memory_space<vmem>>, vector<4x128xf32>
    tpu.vector_store %arg37[%c0_160, %c0_161], %188 {strides = array<i32>} : memref<4x128xf32, #tpu.memory_space<vmem>>, vector<4x128xf32>,
    %c1_162 = arith.constant 1 : index
    %c0_163 = arith.constant 0 : index
    %190 = vector.load %arg37[%c1_162, %c0_163] : memref<4x128xf32, #tpu.memory_space<vmem>>, vector<1x128xf32>
    tpu.vector_store %arg37[%c1_162, %c0_163], %187 {strides = array<i32>} : memref<4x128xf32, #tpu.memory_space<vmem>>, vector<1x128xf32>,
    %c0_164 = arith.constant 0 : index
    %c0_165 = arith.constant 0 : index
    %191 = vector.load %arg37[%c0_164, %c0_165] : memref<4x128xf32, #tpu.memory_space<vmem>>, vector<1x128xf32>
    %c1_166 = arith.constant 1 : index
    %c0_167 = arith.constant 0 : index
    %192 = vector.load %arg37[%c1_166, %c0_167] : memref<4x128xf32, #tpu.memory_space<vmem>>, vector<1x128xf32>
    %c2_168 = arith.constant 2 : index
    %c0_169 = arith.constant 0 : index
    %193 = vector.load %arg37[%c2_168, %c0_169] : memref<4x128xf32, #tpu.memory_space<vmem>>, vector<1x128xf32>
    %c3_170 = arith.constant 3 : index
    %c0_171 = arith.constant 0 : index
    %194 = vector.load %arg37[%c3_170, %c0_171] : memref<4x128xf32, #tpu.memory_space<vmem>>, vector<1x128xf32>
    %195 = tpu.concatenate %191, %192, %193, %194 in 1 : vector<1x128xf32>, vector<1x128xf32>, vector<1x128xf32>, vector<1x128xf32> -> vector<1x512xf32>
    %196 = arith.truncf %195 : vector<1x512xf32> to vector<1x512xbf16>
    %c0_172 = arith.constant 0 : index
    %c0_173 = arith.constant 0 : index
    %197 = vector.load %arg20[%c0_172, %c0_173] : memref<512x256xbf16, #tpu.memory_space<vmem>>, vector<512x256xbf16>
    %cst_174 = arith.constant dense<0.000000e+00> : vector<1x256xf32>
    %198 = tpu.matmul %196, %197, %cst_174 {dimension_numbers = #tpu.dot_dimension_numbers<[1], [0], [0], [1], [0, 0, 1, 1], [], []>} : vector<1x512xbf16>, vector<512x256xbf16>, vector<1x256xf32> -> vector<1x256xf32>
    %c0_175 = arith.constant 0 : index
    %c0_176 = arith.constant 0 : index
    %199 = vector.load %arg21[%c0_175, %c0_176] : memref<1x256xf32, #tpu.memory_space<vmem>>, vector<1x256xf32>
    %200 = arith.mulf %198, %199 : vector<1x256xf32>
    %c0_177 = arith.constant 0 : index
    %c0_178 = arith.constant 0 : index
    %201 = vector.load %arg22[%c0_177, %c0_178] : memref<1x256xf32, #tpu.memory_space<vmem>>, vector<1x256xf32>
    %202 = arith.addf %200, %201 : vector<1x256xf32>
    %cst_179 = arith.constant 0.000000e+00 : f32
    %203 = vector.broadcast %cst_179 : f32 to vector<1x256xf32>
    %204 = arith.cmpf ogt, %202, %203 : vector<1x256xf32>
    %cst_180 = arith.constant 0.00999999977 : f32
    %205 = vector.broadcast %cst_180 : f32 to vector<1x256xf32>
    %206 = arith.mulf %205, %202 : vector<1x256xf32>
    %207 = arith.select %204, %202, %206 : vector<1x256xi1>, vector<1x256xf32>
    %cst_181 = arith.constant 0.000000e+00 : f32
    %208 = vector.broadcast %cst_181 : f32 to vector<4x256xf32>
    %c0_182 = arith.constant 0 : index
    %c0_183 = arith.constant 0 : index
    %209 = vector.load %arg41[%c0_182, %c0_183] : memref<4x256xf32, #tpu.memory_space<vmem>>, vector<4x256xf32>
    tpu.vector_store %arg41[%c0_182, %c0_183], %208 {strides = array<i32>} : memref<4x256xf32, #tpu.memory_space<vmem>>, vector<4x256xf32>,
    %c1_184 = arith.constant 1 : index
    %c0_185 = arith.constant 0 : index
    %210 = vector.load %arg41[%c1_184, %c0_185] : memref<4x256xf32, #tpu.memory_space<vmem>>, vector<1x256xf32>
    tpu.vector_store %arg41[%c1_184, %c0_185], %207 {strides = array<i32>} : memref<4x256xf32, #tpu.memory_space<vmem>>, vector<1x256xf32>,
    %c0_186 = arith.constant 0 : index
    %c0_187 = arith.constant 0 : index
    %211 = vector.load %arg41[%c0_186, %c0_187] : memref<4x256xf32, #tpu.memory_space<vmem>>, vector<1x256xf32>
    %c1_188 = arith.constant 1 : index
    %c0_189 = arith.constant 0 : index
    %212 = vector.load %arg41[%c1_188, %c0_189] : memref<4x256xf32, #tpu.memory_space<vmem>>, vector<1x256xf32>
    %213 = arith.maximumf %211, %212 : vector<1x256xf32>
    %c2_190 = arith.constant 2 : index
    %c0_191 = arith.constant 0 : index
    %214 = vector.load %arg41[%c2_190, %c0_191] : memref<4x256xf32, #tpu.memory_space<vmem>>, vector<1x256xf32>
    %215 = arith.maximumf %213, %214 : vector<1x256xf32>
    %c3_192 = arith.constant 3 : index
    %c0_193 = arith.constant 0 : index
    %216 = vector.load %arg41[%c3_192, %c0_193] : memref<4x256xf32, #tpu.memory_space<vmem>>, vector<1x256xf32>
    %217 = arith.maximumf %215, %216 : vector<1x256xf32>
    %218 = arith.truncf %217 : vector<1x256xf32> to vector<1x256xbf16>
    %c0_194 = arith.constant 0 : index
    %c0_195 = arith.constant 0 : index
    %219 = vector.load %arg23[%c0_194, %c0_195] : memref<256x256xbf16, #tpu.memory_space<vmem>>, vector<256x256xbf16>
    %cst_196 = arith.constant dense<0.000000e+00> : vector<1x256xf32>
    %220 = tpu.matmul %218, %219, %cst_196 {dimension_numbers = #tpu.dot_dimension_numbers<[1], [0], [0], [1], [0, 0, 1, 1], [], []>} : vector<1x256xbf16>, vector<256x256xbf16>, vector<1x256xf32> -> vector<1x256xf32>
    %c0_197 = arith.constant 0 : index
    %c0_198 = arith.constant 0 : index
    %221 = vector.load %arg24[%c0_197, %c0_198] : memref<1x256xf32, #tpu.memory_space<vmem>>, vector<1x256xf32>
    %222 = arith.mulf %220, %221 : vector<1x256xf32>
    %c0_199 = arith.constant 0 : index
    %c0_200 = arith.constant 0 : index
    %223 = vector.load %arg25[%c0_199, %c0_200] : memref<1x256xf32, #tpu.memory_space<vmem>>, vector<1x256xf32>
    %224 = arith.addf %222, %223 : vector<1x256xf32>
    %cst_201 = arith.constant 0.000000e+00 : f32
    %225 = vector.broadcast %cst_201 : f32 to vector<1x256xf32>
    %226 = arith.cmpf ogt, %224, %225 : vector<1x256xf32>
    %cst_202 = arith.constant 0.00999999977 : f32
    %227 = vector.broadcast %cst_202 : f32 to vector<1x256xf32>
    %228 = arith.mulf %227, %224 : vector<1x256xf32>
    %229 = arith.select %226, %224, %228 : vector<1x256xi1>, vector<1x256xf32>
    %230 = arith.truncf %229 : vector<1x256xf32> to vector<1x256xbf16>
    %c0_203 = arith.constant 0 : index
    %c0_204 = arith.constant 0 : index
    %231 = vector.load %arg26[%c0_203, %c0_204] : memref<256x256xbf16, #tpu.memory_space<vmem>>, vector<256x256xbf16>
    %cst_205 = arith.constant dense<0.000000e+00> : vector<1x256xf32>
    %232 = tpu.matmul %230, %231, %cst_205 {dimension_numbers = #tpu.dot_dimension_numbers<[1], [0], [0], [1], [0, 0, 1, 1], [], []>} : vector<1x256xbf16>, vector<256x256xbf16>, vector<1x256xf32> -> vector<1x256xf32>
    %c0_206 = arith.constant 0 : index
    %c0_207 = arith.constant 0 : index
    %233 = vector.load %arg27[%c0_206, %c0_207] : memref<1x256xf32, #tpu.memory_space<vmem>>, vector<1x256xf32>
    %234 = arith.mulf %232, %233 : vector<1x256xf32>
    %c0_208 = arith.constant 0 : index
    %c0_209 = arith.constant 0 : index
    %235 = vector.load %arg28[%c0_208, %c0_209] : memref<1x256xf32, #tpu.memory_space<vmem>>, vector<1x256xf32>
    %236 = arith.addf %234, %235 : vector<1x256xf32>
    %cst_210 = arith.constant 0.000000e+00 : f32
    %237 = vector.broadcast %cst_210 : f32 to vector<1x256xf32>
    %238 = arith.cmpf ogt, %236, %237 : vector<1x256xf32>
    %cst_211 = arith.constant 0.00999999977 : f32
    %239 = vector.broadcast %cst_211 : f32 to vector<1x256xf32>
    %240 = arith.mulf %239, %236 : vector<1x256xf32>
    %241 = arith.select %238, %236, %240 : vector<1x256xi1>, vector<1x256xf32>
    %242 = arith.truncf %241 : vector<1x256xf32> to vector<1x256xbf16>
    %c0_212 = arith.constant 0 : index
    %c0_213 = arith.constant 0 : index
    %243 = vector.load %arg29[%c0_212, %c0_213] : memref<256x1xbf16, #tpu.memory_space<vmem>>, vector<256x1xbf16>
    %cst_214 = arith.constant dense<0.000000e+00> : vector<1x1xf32>
    %244 = tpu.matmul %242, %243, %cst_214 {dimension_numbers = #tpu.dot_dimension_numbers<[1], [0], [0], [1], [0, 0, 1, 1], [], []>} : vector<1x256xbf16>, vector<256x1xbf16>, vector<1x1xf32> -> vector<1x1xf32>
    %c0_215 = arith.constant 0 : index
    %c0_216 = arith.constant 0 : index
    %245 = vector.load %arg30[%c0_215, %c0_216] : memref<1x1xf32, #tpu.memory_space<vmem>>, vector<1x1xf32>
    %246 = arith.addf %244, %245 : vector<1x1xf32>
    %c0_217 = arith.constant 0 : index
    %c0_218 = arith.constant 0 : index
    %c0_219 = arith.constant 0 : index
    %247 = vector.load %arg31[%c0_217, %c0_218, %c0_219] : memref<1x1x1xf32, #tpu.memory_space<vmem>>, vector<1x1x1xf32>
    %248 = vector.shape_cast %247 : vector<1x1x1xf32> to vector<1x1xf32>
    %249 = vector.shape_cast %246 : vector<1x1xf32> to vector<1x1x1xf32>
    tpu.vector_store %arg31[%c0_217, %c0_218, %c0_219], %249 {strides = array<i32>} : memref<1x1x1xf32, #tpu.memory_space<vmem>>, vector<1x1x1xf32>,
    return
  }
  func.func @transform_0(%arg0: i32) -> (i32, i32, i32) {
    %c0_i32 = arith.constant 0 : i32
    %c0_i32_0 = arith.constant 0 : i32
    %c0_i32_1 = arith.constant 0 : i32
    return %arg0, %c0_i32, %c0_i32_0 : i32, i32, i32
  }
  func.func @transform_1(%arg0: i32) -> (i32, i32) {
    %c0_i32 = arith.constant 0 : i32
    %c0_i32_0 = arith.constant 0 : i32
    %c0_i32_1 = arith.constant 0 : i32
    return %c0_i32, %c0_i32_0 : i32, i32
  }
  func.func @transform_2(%arg0: i32) -> (i32, i32) {
    %c0_i32 = arith.constant 0 : i32
    %c0_i32_0 = arith.constant 0 : i32
    %c0_i32_1 = arith.constant 0 : i32
    return %c0_i32, %c0_i32_0 : i32, i32
  }
  func.func @transform_3(%arg0: i32) -> (i32, i32) {
    %c0_i32 = arith.constant 0 : i32
    %c0_i32_0 = arith.constant 0 : i32
    %c0_i32_1 = arith.constant 0 : i32
    return %c0_i32, %c0_i32_0 : i32, i32
  }
  func.func @transform_4(%arg0: i32) -> (i32, i32) {
    %c0_i32 = arith.constant 0 : i32
    %c0_i32_0 = arith.constant 0 : i32
    %c0_i32_1 = arith.constant 0 : i32
    return %c0_i32, %c0_i32_0 : i32, i32
  }
  func.func @transform_5(%arg0: i32) -> (i32, i32) {
    %c0_i32 = arith.constant 0 : i32
    %c0_i32_0 = arith.constant 0 : i32
    %c0_i32_1 = arith.constant 0 : i32
    return %c0_i32, %c0_i32_0 : i32, i32
  }
  func.func @transform_6(%arg0: i32) -> (i32, i32) {
    %c0_i32 = arith.constant 0 : i32
    %c0_i32_0 = arith.constant 0 : i32
    %c0_i32_1 = arith.constant 0 : i32
    return %c0_i32, %c0_i32_0 : i32, i32
  }
  func.func @transform_7(%arg0: i32) -> (i32, i32) {
    %c0_i32 = arith.constant 0 : i32
    %c0_i32_0 = arith.constant 0 : i32
    %c0_i32_1 = arith.constant 0 : i32
    return %c0_i32, %c0_i32_0 : i32, i32
  }
  func.func @transform_8(%arg0: i32) -> (i32, i32) {
    %c0_i32 = arith.constant 0 : i32
    %c0_i32_0 = arith.constant 0 : i32
    %c0_i32_1 = arith.constant 0 : i32
    return %c0_i32, %c0_i32_0 : i32, i32
  }
  func.func @transform_9(%arg0: i32) -> (i32, i32) {
    %c0_i32 = arith.constant 0 : i32
    %c0_i32_0 = arith.constant 0 : i32
    %c0_i32_1 = arith.constant 0 : i32
    return %c0_i32, %c0_i32_0 : i32, i32
  }
  func.func @transform_10(%arg0: i32) -> (i32, i32) {
    %c0_i32 = arith.constant 0 : i32
    %c0_i32_0 = arith.constant 0 : i32
    %c0_i32_1 = arith.constant 0 : i32
    return %c0_i32, %c0_i32_0 : i32, i32
  }
  func.func @transform_11(%arg0: i32) -> (i32, i32) {
    %c0_i32 = arith.constant 0 : i32
    %c0_i32_0 = arith.constant 0 : i32
    %c0_i32_1 = arith.constant 0 : i32
    return %c0_i32, %c0_i32_0 : i32, i32
  }
  func.func @transform_12(%arg0: i32) -> (i32, i32) {
    %c0_i32 = arith.constant 0 : i32
    %c0_i32_0 = arith.constant 0 : i32
    %c0_i32_1 = arith.constant 0 : i32
    return %c0_i32, %c0_i32_0 : i32, i32
  }
  func.func @transform_13(%arg0: i32) -> (i32, i32) {
    %c0_i32 = arith.constant 0 : i32
    %c0_i32_0 = arith.constant 0 : i32
    %c0_i32_1 = arith.constant 0 : i32
    return %c0_i32, %c0_i32_0 : i32, i32
  }
  func.func @transform_14(%arg0: i32) -> (i32, i32) {
    %c0_i32 = arith.constant 0 : i32
    %c0_i32_0 = arith.constant 0 : i32
    %c0_i32_1 = arith.constant 0 : i32
    return %c0_i32, %c0_i32_0 : i32, i32
  }
  func.func @transform_15(%arg0: i32) -> (i32, i32) {
    %c0_i32 = arith.constant 0 : i32
    %c0_i32_0 = arith.constant 0 : i32
    %c0_i32_1 = arith.constant 0 : i32
    return %c0_i32, %c0_i32_0 : i32, i32
  }
  func.func @transform_16(%arg0: i32) -> (i32, i32) {
    %c0_i32 = arith.constant 0 : i32
    %c0_i32_0 = arith.constant 0 : i32
    %c0_i32_1 = arith.constant 0 : i32
    return %c0_i32, %c0_i32_0 : i32, i32
  }
  func.func @transform_17(%arg0: i32) -> (i32, i32) {
    %c0_i32 = arith.constant 0 : i32
    %c0_i32_0 = arith.constant 0 : i32
    %c0_i32_1 = arith.constant 0 : i32
    return %c0_i32, %c0_i32_0 : i32, i32
  }
  func.func @transform_18(%arg0: i32) -> (i32, i32) {
    %c0_i32 = arith.constant 0 : i32
    %c0_i32_0 = arith.constant 0 : i32
    %c0_i32_1 = arith.constant 0 : i32
    return %c0_i32, %c0_i32_0 : i32, i32
  }
  func.func @transform_19(%arg0: i32) -> (i32, i32) {
    %c0_i32 = arith.constant 0 : i32
    %c0_i32_0 = arith.constant 0 : i32
    %c0_i32_1 = arith.constant 0 : i32
    return %c0_i32, %c0_i32_0 : i32, i32
  }
  func.func @transform_20(%arg0: i32) -> (i32, i32) {
    %c0_i32 = arith.constant 0 : i32
    %c0_i32_0 = arith.constant 0 : i32
    %c0_i32_1 = arith.constant 0 : i32
    return %c0_i32, %c0_i32_0 : i32, i32
  }
  func.func @transform_21(%arg0: i32) -> (i32, i32) {
    %c0_i32 = arith.constant 0 : i32
    %c0_i32_0 = arith.constant 0 : i32
    %c0_i32_1 = arith.constant 0 : i32
    return %c0_i32, %c0_i32_0 : i32, i32
  }
  func.func @transform_22(%arg0: i32) -> (i32, i32) {
    %c0_i32 = arith.constant 0 : i32
    %c0_i32_0 = arith.constant 0 : i32
    %c0_i32_1 = arith.constant 0 : i32
    return %c0_i32, %c0_i32_0 : i32, i32
  }
  func.func @transform_23(%arg0: i32) -> (i32, i32) {
    %c0_i32 = arith.constant 0 : i32
    %c0_i32_0 = arith.constant 0 : i32
    %c0_i32_1 = arith.constant 0 : i32
    return %c0_i32, %c0_i32_0 : i32, i32
  }
  func.func @transform_24(%arg0: i32) -> (i32, i32) {
    %c0_i32 = arith.constant 0 : i32
    %c0_i32_0 = arith.constant 0 : i32
    %c0_i32_1 = arith.constant 0 : i32
    return %c0_i32, %c0_i32_0 : i32, i32
  }
  func.func @transform_25(%arg0: i32) -> (i32, i32) {
    %c0_i32 = arith.constant 0 : i32
    %c0_i32_0 = arith.constant 0 : i32
    %c0_i32_1 = arith.constant 0 : i32
    return %c0_i32, %c0_i32_0 : i32, i32
  }
  func.func @transform_26(%arg0: i32) -> (i32, i32) {
    %c0_i32 = arith.constant 0 : i32
    %c0_i32_0 = arith.constant 0 : i32
    %c0_i32_1 = arith.constant 0 : i32
    return %c0_i32, %c0_i32_0 : i32, i32
  }
  func.func @transform_27(%arg0: i32) -> (i32, i32) {
    %c0_i32 = arith.constant 0 : i32
    %c0_i32_0 = arith.constant 0 : i32
    %c0_i32_1 = arith.constant 0 : i32
    return %c0_i32, %c0_i32_0 : i32, i32
  }
  func.func @transform_28(%arg0: i32) -> (i32, i32) {
    %c0_i32 = arith.constant 0 : i32
    %c0_i32_0 = arith.constant 0 : i32
    %c0_i32_1 = arith.constant 0 : i32
    return %c0_i32, %c0_i32_0 : i32, i32
  }
  func.func @transform_29(%arg0: i32) -> (i32, i32) {
    %c0_i32 = arith.constant 0 : i32
    %c0_i32_0 = arith.constant 0 : i32
    %c0_i32_1 = arith.constant 0 : i32
    return %c0_i32, %c0_i32_0 : i32, i32
  }
  func.func @transform_30(%arg0: i32) -> (i32, i32, i32) {
    %c0_i32 = arith.constant 0 : i32
    %c0_i32_0 = arith.constant 0 : i32
    %c0_i32_1 = arith.constant 0 : i32
    return %arg0, %c0_i32, %c0_i32_0 : i32, i32, i32
  }
}

</mosaic_0001>

<bundles_post_ra>
// kernel: discriminator_forward.1
= control target key start
LH: loop header
LB: loop body
LE: loop exit
PB: predicated region body
PF: predicated region fallthrough
CT: control target
= control target key end

     0   :  { %s6750_s6 = smov 1   ;;  %s6751_s10 = smov 2   ;;  %s7987_s0 = inlined_call_operand.smem [shape: u32[31], index: -1, kind: input, shape index: {}] }
   0x1   :  { %s6815_s5 = sld [smem:[%s7987_s0]]   ;;  %s6752_s14 = smov 3  }
   0x2   :  { %s6820_s9 = sld [smem:[%s7987_s0 + %s6750_s6]]   ;;  %s6753_s18 = smov 4  }
   0x3   :  { %s6825_s13 = sld [smem:[%s7987_s0 + %s6751_s10]]   ;;  %s6754_s22 = smov 5  }
   0x4   :  { %s6830_s17 = sld [smem:[%s7987_s0 + %s6752_s14]]   ;;  %s6755_s26 = smov 6  }
   0x5   :  { %s6835_s21 = sld [smem:[%s7987_s0 + %s6753_s18]]   ;;  %s6756_s30 = smov 7  }
   0x6   :  { %s6840_s25 = sld [smem:[%s7987_s0 + %s6754_s22]]   ;;  %s6757_s4 = smov 8  }
   0x7   :  { %7997 = sst [smem:[#allocation52_spill]] %s6815_s5  ;;  %s6758_s10 = smov 9  }
   0x8   :  { %7998 = sst [smem:[#allocation53_spill]] %s6820_s9  ;;  %s6759_s15 = smov 10  }
   0x9   :  { %s6845_s29 = sld [smem:[%s7987_s0 + %s6755_s26]]   ;;  %s6760_s20 = smov 11  }
   0xa   :  { %s6850_s3 = sld [smem:[%s7987_s0 + %s6756_s30]]   ;;  %s6761_s26 = smov 12  }
   0xb   :  { %7999 = sst [smem:[#allocation54_spill]] %s6835_s21  ;;  %s6762_s1 = smov 13  }
   0xc   :  { %s6855_s8 = sld [smem:[%s7987_s0 + %s6757_s4]]   ;;  %s6763_s7 = smov 14  }
   0xd   :  { %s6860_s14 = sld [smem:[%s7987_s0 + %s6758_s10]]   ;;  %s6765_s22 = smov 16  }
   0xe   :  { %s6865_s19 = sld [smem:[%s7987_s0 + %s6759_s15]]   ;;  %s6764_s15 = smov 15  }
   0xf   :  { %s6870_s24 = sld [smem:[%s7987_s0 + %s6760_s20]]   ;;  %s6766_s28 = smov 17  }
  0x10   :  { %8000 = sst [smem:[#allocation55_spill]] %s6850_s3  ;;  %s6779_s10 = smov 30  }
  0x11   :  { %s6875_s30 = sld [smem:[%s7987_s0 + %s6761_s26]]  }
  0x12   :  { %s6880_s6 = sld [smem:[%s7987_s0 + %s6762_s1]]  }
  0x13   :  { %s6885_s12 = sld [smem:[%s7987_s0 + %s6763_s7]]   ;;  %s6767_s7 = smov 18  }
  0x14   :  { %8001 = sst [smem:[#allocation56_spill]] %s6865_s19 }
  0x15   :  { %s6890_s20 = sld [smem:[%s7987_s0 + %s6764_s15]]   ;;  %s6768_s15 = smov 19  }
  0x16   :  { %s6895_s27 = sld [smem:[%s7987_s0 + %s6765_s22]]   ;;  %s6769_s22 = smov 20  }
  0x17   :  { %s6900_s4 = sld [smem:[%s7987_s0 + %s6766_s28]]   ;;  %s6770_s28 = smov 21  }
  0x18   :  { %s6905_s19 = sld [smem:[%s7987_s0 + %s6767_s7]]   ;;  %s6771_s7 = smov 22  }
  0x19   :  { %s6910_s3 = sld [smem:[%s7987_s0 + %s6768_s15]]   ;;  %s6772_s15 = smov 23  }
  0x1a   :  { %s6920_s9 = sld [smem:[%s7987_s0 + %s6770_s28]]   ;;  %s6774_s28 = smov 25  }
  0x1b   :  { %8002 = sst [smem:[#allocation57_spill]] %s6890_s20 }
  0x1c   :  { %8003 = sst [smem:[#allocation58_spill]] %s6895_s27 }
  0x1d   :  { %s6915_s27 = sld [smem:[%s7987_s0 + %s6769_s22]]   ;;  %s6773_s22 = smov 24  }
  0x1e   :  { %8004 = sst [smem:[#allocation59_spill]] %s6905_s19 }
  0x1f   :  { %8005 = sst [smem:[#allocation60_spill]] %s6910_s3 }
  0x20   :  { %8006 = sst [smem:[#allocation61_spill]] %s6920_s9 }
  0x21   :  { %s6925_s21 = sld [smem:[%s7987_s0 + %s6771_s7]]   ;;  %s6775_s7 = smov 26  }
  0x22   :  { %s6930_s3 = sld [smem:[%s7987_s0 + %s6772_s15]]   ;;  %s6776_s15 = smov 27  }
  0x23   :  { %s6935_s5 = sld [smem:[%s7987_s0 + %s6773_s22]]   ;;  %s6777_s22 = smov 28  }
  0x24   :  { %s6940_s9 = sld [smem:[%s7987_s0 + %s6774_s28]]   ;;  %s6778_s28 = smov 29  }
  0x25   :  { %s6950_s19 = sld [smem:[%s7987_s0 + %s6776_s15]]  }
  0x26   :  { %s6963_s20 = sld [smem:[%s7987_s0 + %s6779_s10]]  }
  0x27   :  { %8007 = sst [smem:[#allocation62_spill]] %s6925_s21 }
  0x28   :  { %8008 = sst [smem:[#allocation63_spill]] %s6930_s3 }
  0x29   :  { %8009 = sst [smem:[#allocation64_spill]] %s6935_s5 }
  0x2a   :  { %8010 = sst [smem:[#allocation65_spill]] %s6940_s9 }
  0x2b   :  { %s6945_s21 = sld [smem:[%s7987_s0 + %s6775_s7]]  }
  0x2c   :  { %s6955_s5 = sld [smem:[%s7987_s0 + %s6777_s22]]  }
  0x2d   :  { %s5026_s9 = sld [smem:[%s7987_s0 + %s6778_s28]]  }
  0x33   :  { %v66_v0 = vstv %s5026_s9 }
  0x34   :  { %67 = vst [vmem:[#allocation12] sm:$0x1] %v66_v0 }
  0x35   :  { %68 = vsyncpa [#allocation14], 0 }
  0x36   :  { %69 = vsyncpa [#allocation16], 0 }
  0x37   :  { %70 = vsyncpa [#allocation19], 0 }
  0x38   :  { %71 = vsyncpa [#allocation22], 0 }
  0x39   :  { %72 = vsyncpa [#allocation25], 0 }
  0x3a   :  { %73 = vsyncpa [#allocation28], 0 }
  0x3b   :  { %74 = vsyncpa [#allocation31], 0 }
  0x3c   :  { %75 = vsyncpa [#allocation34], 0 }
  0x3d   :  { %76 = vsyncpa [#allocation37], 0 }
  0x3e   :  { %77 = vsyncpa [#allocation40], 0  ;;  %s6965_s15 = smov 0  }
  0x3f LB: > { %s6780_s0 = smov [#allocation15]   ;;  %s6971_s16 = sadd.s32 4294967295, %s6748_s15   ;;  %s6748_s15 = sphi %s6965_s15, %s83_s15  }
  0x40   : > { %s776_s9 = sshll.u32 %s6780_s0, 4  ;;  %p5030_p0 = scmp.ge.s32.totalorder %s6748_s15, 1  ;;  %s777_s9 = int_to_ptr.vmem [resolvable:$true] %s776_s9 }
  0x41   : > { %p749_p1 = scmp.lt.s32.totalorder %s6748_s15, 3  ;;  %p7995_p2 = scmp.eq.s32.totalorder %s6971_s16, 0 }
  0x42   : > { %s6781_s22 = smov [#allocation18]   ;;  %s6782_s26 = smov [#allocation21]  }
  0x43   : > { %p6976_p3 = pnand %p5030_p0, %p749_p1  ;;  %s801_s23 = sshll.u32 %s6781_s22, 4  ;;  %s6982_s23 = int_to_ptr.vmem [resolvable:$true] %s801_s23 }
  0x44   : > { %s826_s28 = sshll.u32 %s6782_s26, 4  ;;  %s6783_s2 = smov [#allocation24]   ;;  %s6990_s28 = int_to_ptr.vmem [resolvable:$true] %s826_s28 }
  0x45   : > { %s8011_s18 = scalar_select %p6976_p3, 1, 0 }
  0x46   : > { %p5581_p4 = pneg %p6976_p3  ;;  %s851_s10 = sshll.u32 %s6783_s2, 4  ;;  %s6992_s10 = int_to_ptr.vmem [resolvable:$true] %s851_s10 }
  0x47   : > { %s6219_s11 = scalar_lea.vmem %s777_s9, 16  ;;  %s6226_s0 = scalar_lea.vmem %s777_s9, 32 }
  0x48   : > { %p6986_p5 = pnand %p7995_p2, %p5581_p4  ;;  %p6220_p7 = scmp.ne.s32.totalorder %s777_s9, %s6219_s11 }
  0x49   : > { %p6227_p10 = scmp.lt.s32.totalorder %s777_s9, %s777_s9  ;;  %p6228_p11 = scmp.lt.s32.totalorder %s6226_s0, %s6219_s11 }
  0x4a   : > { %p6996_p6 = pneg %p6986_p5 }
  0x4b   : > { %p6229_p12 = por %p6228_p11, %p6227_p10 }
  0x4c   : > { %p6222_p8 = pnand %p6220_p7, %p6996_p6 }
  0x4e   : > { %p6223_p9 = pneg %p6222_p8 }
  0x50   : > { %p6230_p13 = pnand %p6229_p12, %p6223_p9 }
  0x52   : > { %6233 = shalt.err (!%p6230_p13)
}
  0x53   : > { %5587 = dma.hbm_to_vmem [thread:$0]  (!%p6986_p5), %s6830_s17, 16, %s777_s9, [#allocation16]  }
  0x54   : > { %s6245_s22 = scalar_lea.vmem %s6982_s23, 16  ;;  %s6252_s26 = scalar_lea.vmem %s6982_s23, 32 }
  0x55   : > { %p6246_p0 = scmp.ne.s32.totalorder %s6982_s23, %s6245_s22  ;;  %p6253_p7 = scmp.lt.s32.totalorder %s6982_s23, %s6982_s23 }
  0x56   : > { %p6254_p8 = scmp.lt.s32.totalorder %s6252_s26, %s6245_s22 }
  0x57   : > { %p6248_p1 = pnand %p6246_p0, %p6996_p6 }
  0x58   : > { %p6255_p9 = por %p6254_p8, %p6253_p7 }
  0x59   : > { %p6249_p4 = pneg %p6248_p1 }
  0x5b   : > { %p6256_p10 = pnand %p6255_p9, %p6249_p4 }
  0x5d   : > { %6259 = shalt.err (!%p6256_p10)
}
  0x5e   : > { %5593 = dma.hbm_to_vmem [thread:$0]  (!%p6986_p5), %s6845_s29, 16, %s6982_s23, [#allocation19]  }
  0x5f   : > { %s6271_s9 = scalar_lea.vmem %s6990_s28, 16  ;;  %s6278_s2 = scalar_lea.vmem %s6990_s28, 32 }
  0x60   : > { %p6272_p11 = scmp.ne.s32.totalorder %s6990_s28, %s6271_s9  ;;  %p6279_p0 = scmp.lt.s32.totalorder %s6990_s28, %s6990_s28 }
  0x61   : > { %p6280_p1 = scmp.lt.s32.totalorder %s6278_s2, %s6271_s9 }
  0x62   : > { %p6274_p12 = pnand %p6272_p11, %p6996_p6 }
  0x63   : > { %p6281_p4 = por %p6280_p1, %p6279_p0 }
  0x64   : > { %p6275_p13 = pneg %p6274_p12 }
  0x66   : > { %p6282_p7 = pnand %p6281_p4, %p6275_p13 }
  0x68   : > { %6285 = shalt.err (!%p6282_p7)
}
  0x69   : > { %5599 = dma.hbm_to_vmem [thread:$0]  (!%p6986_p5), %s6860_s14, 16, %s6990_s28, [#allocation22]  }
  0x6a   : > { %s6297_s23 = scalar_lea.vmem %s6992_s10, 16  ;;  %s6304_s11 = scalar_lea.vmem %s6992_s10, 32 }
  0x6b   : > { %p6298_p8 = scmp.ne.s32.totalorder %s6992_s10, %s6297_s23  ;;  %p6305_p11 = scmp.lt.s32.totalorder %s6992_s10, %s6992_s10 }
  0x6c   : > { %p6306_p12 = scmp.lt.s32.totalorder %s6304_s11, %s6297_s23 }
  0x6d   : > { %p6300_p9 = pnand %p6298_p8, %p6996_p6 }
  0x6e   : > { %p6307_p13 = por %p6306_p12, %p6305_p11 }
  0x6f   : > { %p6301_p10 = pneg %p6300_p9 }
  0x71   : > { %p6308_p0 = pnand %p6307_p13, %p6301_p10 }
  0x73   : > { %6311 = shalt.err (!%p6308_p0)
}
  0x74   : > { %5605 = dma.hbm_to_vmem [thread:$0]  (!%p6986_p5), %s6875_s30, 16, %s6992_s10, [#allocation25]  }
  0x75   : > { %s6784_s0 = smov [#allocation27]   ;;  %s6785_s22 = smov [#allocation30]  }
  0x76   : > { %s875_s28 = sshll.u32 %s6784_s0, 4  ;;  %s900_s26 = sshll.u32 %s6785_s22, 4  ;;  %s876_s28 = int_to_ptr.vmem [resolvable:$true] %s875_s28  ;;  %s901_s26 = int_to_ptr.vmem [resolvable:$true] %s900_s26 }
  0x77   : > { %s6323_s9 = scalar_lea.vmem %s876_s28, 16  ;;  %s6330_s2 = scalar_lea.vmem %s876_s28, 32 }
  0x78   : > { %p6324_p1 = scmp.ne.s32.totalorder %s876_s28, %s6323_s9  ;;  %p6331_p8 = scmp.lt.s32.totalorder %s876_s28, %s876_s28 }
  0x79   : > { %p6332_p9 = scmp.lt.s32.totalorder %s6330_s2, %s6323_s9 }
  0x7a   : > { %p6326_p4 = pnand %p6324_p1, %p6996_p6 }
  0x7b   : > { %p6333_p10 = por %p6332_p9, %p6331_p8 }
  0x7c   : > { %p6327_p7 = pneg %p6326_p4 }
  0x7e   : > { %p6334_p11 = pnand %p6333_p10, %p6327_p7 }
  0x80   : > { %6337 = shalt.err (!%p6334_p11)
}
  0x81   : > { %5611 = dma.hbm_to_vmem [thread:$0]  (!%p6986_p5), %s6885_s12, 16, %s876_s28, [#allocation28]  }
  0x82   : > { %s6349_s10 = scalar_lea.vmem %s901_s26, 16  ;;  %s6356_s23 = scalar_lea.vmem %s901_s26, 32 }
  0x83   : > { %p6350_p12 = scmp.ne.s32.totalorder %s901_s26, %s6349_s10  ;;  %p6357_p1 = scmp.lt.s32.totalorder %s901_s26, %s901_s26 }
  0x84   : > { %p6358_p4 = scmp.lt.s32.totalorder %s6356_s23, %s6349_s10 }
  0x85   : > { %p6352_p13 = pnand %p6350_p12, %p6996_p6 }
  0x86   : > { %p6359_p2 = por %p6358_p4, %p6357_p1 }
  0x87   : > { %p6353_p0 = pneg %p6352_p13 }
  0x89   : > { %p6360_p3 = pnand %p6359_p2, %p6353_p0 }
  0x8b   : > { %6363 = shalt.err (!%p6360_p3)
}
  0x8c   : > { %5617 = dma.hbm_to_vmem [thread:$0]  (!%p6986_p5), %s6900_s4, 16, %s901_s26, [#allocation31]  }
  0x8d   : > { %s6786_s11 = smov [#allocation33]   ;;  %s6787_s28 = smov [#allocation36]  }
  0x8e   : > { %s925_s0 = sshll.u32 %s6786_s11, 4  ;;  %s950_s22 = sshll.u32 %s6787_s28, 4  ;;  %s926_s0 = int_to_ptr.vmem [resolvable:$true] %s925_s0  ;;  %s951_s22 = int_to_ptr.vmem [resolvable:$true] %s950_s22 }
  0x8f   : > { %s6375_s9 = scalar_lea.vmem %s926_s0, 32  ;;  %p6383_p10 = scmp.lt.s32.totalorder %s926_s0, %s926_s0 }
  0x90   : > { %p6376_p7 = scmp.ne.s32.totalorder %s926_s0, %s6375_s9  ;;  %p6384_p11 = scmp.lt.s32.totalorder %s6375_s9, %s6375_s9 }
  0x92   : > { %p6378_p8 = pnand %p6376_p7, %p6996_p6  ;;  %p6385_p12 = por %p6384_p11, %p6383_p10 }
  0x94   : > { %p6379_p9 = pneg %p6378_p8 }
  0x96   : > { %p6386_p2 = pnand %p6385_p12, %p6379_p9 }
  0x98   : > { %6389 = shalt.err (!%p6386_p2)
}
  0x99   : > { %5623 = dma.hbm_to_vmem [thread:$0]  (!%p6986_p5), %s6915_s27, 32, %s926_s0, [#allocation34]  }
  0x9a   : > { %s6401_s26 = scalar_lea.vmem %s951_s22, 32  ;;  %p6409_p1 = scmp.lt.s32.totalorder %s951_s22, %s951_s22 }
  0x9b   : > { %p6402_p3 = scmp.ne.s32.totalorder %s951_s22, %s6401_s26  ;;  %p6410_p4 = scmp.lt.s32.totalorder %s6401_s26, %s6401_s26 }
  0x9d   : > { %p6404_p13 = pnand %p6402_p3, %p6996_p6  ;;  %p6411_p7 = por %p6410_p4, %p6409_p1 }
  0x9f   : > { %p6405_p0 = pneg %p6404_p13 }
  0xa1   : > { %p6412_p8 = pnand %p6411_p7, %p6405_p0 }
  0xa3   : > { %6415 = shalt.err (!%p6412_p8)
}
  0xa4   : > { %s8014_s3 = sld [smem:[#allocation63_spill]]  ;;  %s6788_s2 = smov [#allocation39]  }
  0xa5   : > { %s975_s10 = sshll.u32 %s6788_s2, 4  ;;  %s6789_s23 = smov [#allocation13]   ;;  %s976_s10 = int_to_ptr.vmem [resolvable:$true] %s975_s10 }
  0xa6   : > { %s765_s11 = sshll.u32 %s6789_s23, 4  ;;  %s6427_s0 = scalar_lea.vmem %s976_s10, 32  ;;  %s766_s11 = int_to_ptr.vmem [resolvable:$true] %s765_s11 }
  0xa7   : > { %p6428_p9 = scmp.ne.s32.totalorder %s976_s10, %s6427_s0  ;;  %p6435_p12 = scmp.lt.s32.totalorder %s976_s10, %s976_s10 }
  0xa8   : > { %p6436_p2 = scmp.lt.s32.totalorder %s6427_s0, %s6427_s0 }
  0xa9   : > { %p6430_p10 = pnand %p6428_p9, %p6996_p6 }
  0xaa   : > { %5629 = dma.hbm_to_vmem [thread:$0]  (!%p6986_p5), %s8014_s3, 32, %s951_s22, [#allocation37]  }
  0xab   : > { %p6431_p11 = pneg %p6430_p10  ;;  %p6437_p3 = por %p6436_p2, %p6435_p12 }
  0xad   : > { %p6438_p13 = pnand %p6437_p3, %p6431_p11 }
  0xaf   : > { %6441 = shalt.err (!%p6438_p13)
}
  0xb0   : > { %5635 = dma.hbm_to_vmem [thread:$0]  (!%p6986_p5), %s6945_s21, 32, %s976_s10, [#allocation40]  }
  0xb1   : > { %s6453_s28 = scalar_lea.vmem %s766_s11, 16  ;;  %s6460_s22 = scalar_lea.vmem %s766_s11, 32 }
  0xb2   : > { %p6454_p0 = scmp.ne.s32.totalorder %s766_s11, %s6453_s28  ;;  %p6461_p7 = scmp.lt.s32.totalorder %s766_s11, %s766_s11 }
  0xb3   : > { %p6462_p8 = scmp.lt.s32.totalorder %s6460_s22, %s6453_s28 }
  0xb4   : > { %p6456_p1 = pnand %p6454_p0, %p6996_p6 }
  0xb5   : > { %p6463_p9 = por %p6462_p8, %p6461_p7 }
  0xb6   : > { %p6457_p4 = pneg %p6456_p1 }
  0xb8   : > { %p6464_p10 = pnand %p6463_p9, %p6457_p4 }
  0xba   : > { %6467 = shalt.err (!%p6464_p10)
}
  0xbb   : > { %5584 = dma.hbm_to_vmem [thread:$0]  (!%p6986_p5), %s6825_s13, 16, %s766_s11, [#allocation14]  }
  0xbc   : > { %s6790_s9 = smov [#allocation17]   ;;  %s6791_s2 = smov [#allocation20]  }
  0xbd   : > { %s790_s26 = sshll.u32 %s6790_s9, 4  ;;  %s815_s10 = sshll.u32 %s6791_s2, 4  ;;  %s791_s26 = int_to_ptr.vmem [resolvable:$true] %s790_s26  ;;  %s816_s10 = int_to_ptr.vmem [resolvable:$true] %s815_s10 }
  0xbe   : > { %s6479_s23 = scalar_lea.vmem %s791_s26, 16  ;;  %s6486_s0 = scalar_lea.vmem %s791_s26, 32 }
  0xbf   : > { %p6480_p11 = scmp.ne.s32.totalorder %s791_s26, %s6479_s23  ;;  %p6487_p3 = scmp.lt.s32.totalorder %s791_s26, %s791_s26 }
  0xc0   : > { %p6488_p13 = scmp.lt.s32.totalorder %s6486_s0, %s6479_s23 }
  0xc1   : > { %p6482_p12 = pnand %p6480_p11, %p6996_p6 }
  0xc2   : > { %p6489_p0 = por %p6488_p13, %p6487_p3 }
  0xc3   : > { %p6483_p2 = pneg %p6482_p12 }
  0xc5   : > { %p6490_p1 = pnand %p6489_p0, %p6483_p2 }
  0xc7   : > { %6493 = shalt.err (!%p6490_p1)
}
  0xc8   : > { %5590 = dma.hbm_to_vmem [thread:$0]  (!%p6986_p5), %s6840_s25, 16, %s791_s26, [#allocation16]  }
  0xc9   : > { %s6505_s11 = scalar_lea.vmem %s816_s10, 16  ;;  %s6512_s28 = scalar_lea.vmem %s816_s10, 32 }
  0xca   : > { %p6506_p4 = scmp.ne.s32.totalorder %s816_s10, %s6505_s11  ;;  %p6513_p9 = scmp.lt.s32.totalorder %s816_s10, %s816_s10 }
  0xcb   : > { %p6514_p10 = scmp.lt.s32.totalorder %s6512_s28, %s6505_s11 }
  0xcc   : > { %p6508_p7 = pnand %p6506_p4, %p6996_p6 }
  0xcd   : > { %p6515_p11 = por %p6514_p10, %p6513_p9 }
  0xce   : > { %p6509_p8 = pneg %p6508_p7 }
  0xd0   : > { %p6516_p12 = pnand %p6515_p11, %p6509_p8 }
  0xd2   : > { %6519 = shalt.err (!%p6516_p12)
}
  0xd3   : > { %5596 = dma.hbm_to_vmem [thread:$0]  (!%p6986_p5), %s6855_s8, 16, %s816_s10, [#allocation19]  }
  0xd4   : > { %s6792_s22 = smov [#allocation23]   ;;  %s6793_s26 = smov [#allocation26]  }
  0xd5   : > { %s840_s9 = sshll.u32 %s6792_s22, 4  ;;  %s861_s2 = sshll.u32 %s6793_s26, 4  ;;  %s841_s9 = int_to_ptr.vmem [resolvable:$true] %s840_s9  ;;  %s862_s2 = int_to_ptr.vmem [resolvable:$true] %s861_s2 }
  0xd6   : > { %s6531_s23 = scalar_lea.vmem %s841_s9, 16  ;;  %s6538_s0 = scalar_lea.vmem %s841_s9, 32 }
  0xd7   : > { %p6532_p2 = scmp.ne.s32.totalorder %s841_s9, %s6531_s23  ;;  %p6539_p0 = scmp.lt.s32.totalorder %s841_s9, %s841_s9 }
  0xd8   : > { %p6540_p1 = scmp.lt.s32.totalorder %s6538_s0, %s6531_s23 }
  0xd9   : > { %p6534_p3 = pnand %p6532_p2, %p6996_p6 }
  0xda   : > { %p6541_p4 = por %p6540_p1, %p6539_p0 }
  0xdb   : > { %p6535_p13 = pneg %p6534_p3 }
  0xdd   : > { %p6542_p7 = pnand %p6541_p4, %p6535_p13 }
  0xdf   : > { %6545 = shalt.err (!%p6542_p7)
}
  0xe0   : > { %5602 = dma.hbm_to_vmem [thread:$0]  (!%p6986_p5), %s6870_s24, 16, %s841_s9, [#allocation22]  }
  0xe1   : > { %s6557_s10 = scalar_lea.vmem %s862_s2, 2048  ;;  %p6565_p11 = scmp.lt.s32.totalorder %s862_s2, %s862_s2 }
  0xe2   : > { %p6558_p8 = scmp.ne.s32.totalorder %s862_s2, %s6557_s10  ;;  %p6566_p12 = scmp.lt.s32.totalorder %s6557_s10, %s6557_s10 }
  0xe4   : > { %p6560_p9 = pnand %p6558_p8, %p6996_p6  ;;  %p6567_p2 = por %p6566_p12, %p6565_p11 }
  0xe6   : > { %p6561_p10 = pneg %p6560_p9 }
  0xe8   : > { %p6568_p3 = pnand %p6567_p2, %p6561_p10 }
  0xea   : > { %6571 = shalt.err (!%p6568_p3)
}
  0xeb   : > { %s6794_s11 = smov 64   ;;  %s6795_s28 = smov 4  }
  0xec   : > { %5608 = dma.hbm_to_vmem [thread:$0]  (!%p6986_p5), %s6880_s6, 2048, %s862_s2, [#allocation25], %s6794_s11, %s6794_s11, %s6795_s28  }
  0xed   : > { %s6796_s22 = smov [#allocation29]   ;;  %s6797_s26 = smov [#allocation32]  }
  0xee   : > { %s886_s9 = sshll.u32 %s6796_s22, 4  ;;  %s911_s23 = sshll.u32 %s6797_s26, 4  ;;  %s887_s9 = int_to_ptr.vmem [resolvable:$true] %s886_s9  ;;  %s912_s23 = int_to_ptr.vmem [resolvable:$true] %s911_s23 }
  0xef   : > { %s6583_s0 = scalar_lea.vmem %s887_s9, 16  ;;  %s6590_s10 = scalar_lea.vmem %s887_s9, 32 }
  0xf0   : > { %p6584_p13 = scmp.ne.s32.totalorder %s887_s9, %s6583_s0  ;;  %p6591_p4 = scmp.lt.s32.totalorder %s887_s9, %s887_s9 }
  0xf1   : > { %p6592_p7 = scmp.lt.s32.totalorder %s6590_s10, %s6583_s0 }
  0xf2   : > { %p6586_p0 = pnand %p6584_p13, %p6996_p6 }
  0xf3   : > { %p6593_p8 = por %p6592_p7, %p6591_p4 }
  0xf4   : > { %p6587_p1 = pneg %p6586_p0 }
  0xf6   : > { %p6594_p9 = pnand %p6593_p8, %p6587_p1 }
  0xf8   : > { %6597 = shalt.err (!%p6594_p9)
}
  0xf9   : > { %s8015_s3 = sld [smem:[#allocation57_spill]]  ;;  %s6609_s2 = scalar_lea.vmem %s912_s23, 16 }
  0xfa   : > { %p6610_p10 = scmp.ne.s32.totalorder %s912_s23, %s6609_s2  ;;  %s6616_s11 = scalar_lea.vmem %s912_s23, 32 }
  0xfb   : > { %p6617_p2 = scmp.lt.s32.totalorder %s912_s23, %s912_s23  ;;  %p6618_p3 = scmp.lt.s32.totalorder %s6616_s11, %s6609_s2 }
  0xfc   : > { %p6612_p11 = pnand %p6610_p10, %p6996_p6 }
  0xfd   : > { %p6619_p13 = por %p6618_p3, %p6617_p2 }
  0xfe   : > { %p6613_p12 = pneg %p6612_p11 }
  0xff   : > { %5614 = dma.hbm_to_vmem [thread:$0]  (!%p6986_p5), %s8015_s3, 16, %s887_s9, [#allocation28]  }
 0x100   : > { %p6620_p0 = pnand %p6619_p13, %p6613_p12 }
 0x102   : > { %6623 = shalt.err (!%p6620_p0)
}
 0x103   : > { %s8016_s28 = sld [smem:[#allocation59_spill]]  ;;  %s6798_s22 = smov [#allocation35]  }
 0x104   : > { %s936_s26 = sshll.u32 %s6798_s22, 4  ;;  %s6799_s3 = smov [#allocation38]   ;;  %s937_s26 = int_to_ptr.vmem [resolvable:$true] %s936_s26 }
 0x105   : > { %s961_s9 = sshll.u32 %s6799_s3, 4  ;;  %s6635_s0 = scalar_lea.vmem %s937_s26, 32  ;;  %s962_s9 = int_to_ptr.vmem [resolvable:$true] %s961_s9 }
 0x106   : > { %p6636_p1 = scmp.ne.s32.totalorder %s937_s26, %s6635_s0  ;;  %p6643_p8 = scmp.lt.s32.totalorder %s937_s26, %s937_s26 }
 0x107   : > { %p6644_p9 = scmp.lt.s32.totalorder %s6635_s0, %s6635_s0 }
 0x108   : > { %p6638_p4 = pnand %p6636_p1, %p6996_p6 }
 0x109   : > { %5620 = dma.hbm_to_vmem [thread:$0]  (!%p6986_p5), %s8016_s28, 16, %s912_s23, [#allocation31]  }
 0x10a   : > { %p6639_p7 = pneg %p6638_p4  ;;  %p6645_p10 = por %p6644_p9, %p6643_p8 }
 0x10c   : > { %p6646_p11 = pnand %p6645_p10, %p6639_p7 }
 0x10e   : > { %6649 = shalt.err (!%p6646_p11)
}
 0x10f   : > { %s8017_s10 = sld [smem:[#allocation61_spill]]  ;;  %s6661_s23 = scalar_lea.vmem %s962_s9, 32 }
 0x110   : > { %p6662_p12 = scmp.ne.s32.totalorder %s962_s9, %s6661_s23  ;;  %p6669_p13 = scmp.lt.s32.totalorder %s962_s9, %s962_s9 }
 0x111   : > { %p6670_p0 = scmp.lt.s32.totalorder %s6661_s23, %s6661_s23 }
 0x112   : > { %p6664_p2 = pnand %p6662_p12, %p6996_p6 }
 0x113   : > { %p6671_p1 = por %p6670_p0, %p6669_p13 }
 0x114   : > { %p6665_p3 = pneg %p6664_p2 }
 0x115   : > { %5626 = dma.hbm_to_vmem [thread:$0]  (!%p6986_p5), %s8017_s10, 32, %s937_s26, [#allocation34]  }
 0x116   : > { %p6672_p4 = pnand %p6671_p1, %p6665_p3 }
 0x118   : > { %6675 = shalt.err (!%p6672_p4)
}
 0x119   : > { %s8018_s2 = sld [smem:[#allocation64_spill]]  ;;  %s6800_s11 = smov [#allocation41]  }
 0x11a   : > { %s986_s28 = sshll.u32 %s6800_s11, 4  ;;  %s987_s28 = int_to_ptr.vmem [resolvable:$true] %s986_s28 }
 0x11b   : > { %s6687_s22 = scalar_lea.vmem %s987_s28, 32  ;;  %p6695_p10 = scmp.lt.s32.totalorder %s987_s28, %s987_s28 }
 0x11c   : > { %p6688_p7 = scmp.ne.s32.totalorder %s987_s28, %s6687_s22  ;;  %p6696_p11 = scmp.lt.s32.totalorder %s6687_s22, %s6687_s22 }
 0x11e   : > { %p6690_p8 = pnand %p6688_p7, %p6996_p6  ;;  %p6697_p12 = por %p6696_p11, %p6695_p10 }
 0x11f   : > { %5632 = dma.hbm_to_vmem [thread:$0]  (!%p6986_p5), %s8018_s2, 32, %s962_s9, [#allocation37]  }
 0x120   : > { %p6691_p9 = pneg %p6690_p8 }
 0x122   : > { %p6698_p2 = pnand %p6697_p12, %p6691_p9 }
 0x124   : > { %6701 = shalt.err (!%p6698_p2)
}
 0x125   : > { %5638 = dma.hbm_to_vmem [thread:$0]  (!%p6986_p5), %s6950_s19, 32, %s987_s28, [#allocation40]  }
 0x126   : > { %p8019_p3 = scmp.ne.s32.totalorder %s8011_s18, 0 }
 0x127   : > { %p8020_p13 = scmp.eq.s32.totalorder (!%p8019_p3), %s6971_s16, 0 }
 0x128   : > { %1013 = sbr.rel (%p8019_p3) target bundleno = 3048 (0xbe8), region = 140 }
 0x12d   : > { %6707 = dma.done.wait (%p8020_p13), [#allocation14], 16   ;;  %p8021_p0 = pmov %p8020_p13 }
 0x12f   : > { %6709 = vsyncadd (%p8021_p0), [#allocation14], 4294967280  ;;  %p8022_p6 = pmov %p8021_p0 }
 0x130   : > { %p8023_p1 = pmov %p8021_p0 }
 0x131   : > { %6711 = dma.done.wait (%p8022_p6), [#allocation16], 32  }
 0x132   : > { %6713 = vsyncadd (%p8023_p1), [#allocation16], 4294967264  ;;  %p8024_p4 = pmov %p8021_p0 }
 0x133   : > { %p8025_p5 = pmov %p8021_p0 }
 0x134   : > { %6715 = dma.done.wait (%p8024_p4), [#allocation19], 32  }
 0x135   : > { %6717 = vsyncadd (%p8025_p5), [#allocation19], 4294967264  ;;  %p8026_p7 = pmov %p8021_p0 }
 0x136   : > { %p8027_p8 = pmov %p8021_p0 }
 0x137   : > { %6719 = dma.done.wait (%p8026_p7), [#allocation22], 32  }
 0x138   : > { %6721 = vsyncadd (%p8027_p8), [#allocation22], 4294967264  ;;  %p8028_p9 = pmov %p8021_p0 }
 0x139   : > { %p8029_p10 = pmov %p8021_p0 }
 0x13a   : > { %6723 = dma.done.wait (%p8028_p9), [#allocation25], 2064  }
 0x13b   : > { %6725 = vsyncadd (%p8029_p10), [#allocation25], 4294965232  ;;  %p8030_p11 = pmov %p8021_p0 }
 0x13c   : > { %p8031_p12 = pmov %p8021_p0 }
 0x13d   : > { %6727 = dma.done.wait (%p8030_p11), [#allocation28], 32  }
 0x13e   : > { %6729 = vsyncadd (%p8031_p12), [#allocation28], 4294967264  ;;  %p8032_p2 = pmov %p8021_p0 }
 0x13f   : > { %p8033_p3 = pmov %p8021_p0 }
 0x140   : > { %6731 = dma.done.wait (%p8032_p2), [#allocation31], 32  }
 0x141   : > { %6733 = vsyncadd (%p8033_p3), [#allocation31], 4294967264  ;;  %p8034_p13 = pmov %p8021_p0 }
 0x143   : > { %6735 = dma.done.wait (%p8034_p13), [#allocation34], 64  }
 0x144   : > { %6737 = vsyncadd (%p8021_p0), [#allocation34], 4294967232  ;;  %p8035_p6 = pmov %p8021_p0 }
 0x145   : > { %p8036_p1 = pmov %p8021_p0 }
 0x146   : > { %6739 = dma.done.wait (%p8035_p6), [#allocation37], 64  }
 0x147   : > { %6741 = vsyncadd (%p8036_p1), [#allocation37], 4294967232  ;;  %p8037_p4 = pmov %p8021_p0 }
 0x148   : > { %p8038_p5 = pmov %p8021_p0 }
 0x149   : > { %6743 = dma.done.wait (%p8037_p4), [#allocation40], 64  }
 0x14a   : > { %6745 = vsyncadd (%p8038_p5), [#allocation40], 4294967232  ;;  %s8039_s18 = sld [smem:[#allocation52_spill]]  ;;  %p1161_p7 = scmp.lt.s32.totalorder %s6971_s16, 1  ;;  %v6801_v1 = vmov 0   ;;  %vm1699_vm0 = vcmask 261120   ;;  %v1268_v20 = vlaneseq }
 0x14b   : > { %5743 = vset.pattern.permute.xlu1 %v6801_v1  ;;  %5742 = vset.pattern.permute.xlu0 %v6801_v1  ;;  %v6802_v6 = vmov 0.0   ;;  %s8040_s26 = sld [smem:[#allocation54_spill]]  ;;  %vm1716_vm1 = vcmask 256000   ;;  %vm1331_vm2 = vcmask 1046528   ;;  %vm1435_vm3 = vcmask 1045504   ;;  %s6803_s9 = smov 32  }
 0x14c   : > { %s8049_s16 = smov (!%p1161_p7, %s6971_s16), 1  ;;  %1702 = vst.msk [vmem:[#allocation2 + $0x10] sm:$0xff] %vm1699_vm0, %v6802_v6  ;;  %1703 = vst.msk [vmem:[#allocation2 + $0x18] sm:$0xff] %vm1699_vm0, %v6802_v6  ;;  %s8041_s3 = sld [smem:[#allocation53_spill]]  ;;  %v7260_v21 = vshrl.u32 %v1268_v20, 7  ;;  %vm1539_vm4 = vcmask 1044480  }
 0x14d   : > { %s5504_s1 = smul.u32 136, %s8049_s16  ;;  %1700 = vst.msk [vmem:[#allocation2] sm:$0xff] %vm1699_vm0, %v6802_v6  ;;  %1701 = vst.msk [vmem:[#allocation2 + $0x8] sm:$0xff] %vm1699_vm0, %v6802_v6  ;;  %s6804_s0 = smov 64  }
 0x14e   : > { %1704 = vst.msk [vmem:[#allocation2 + $0x20] sm:$0xff] %vm1699_vm0, %v6802_v6  ;;  %1705 = vst.msk [vmem:[#allocation2 + $0x28] sm:$0xff] %vm1699_vm0, %v6802_v6  ;;  %v7265_v24 = vsub.s32 1, %v7260_v21  ;;  %v1399_v25 = vsub.s32 2, %v7260_v21  ;;  %v1503_v28 = vsub.s32 3, %v7260_v21  ;;  %v7272_v29 = vsub.s32 0, %v7260_v21 }
 0x14f   : > { %1706 = vst.msk [vmem:[#allocation2 + $0x30] sm:$0xff] %vm1699_vm0, %v6802_v6  ;;  %1707 = vst.msk [vmem:[#allocation2 + $0x38] sm:$0xff] %vm1699_vm0, %v6802_v6  ;;  %s6805_s10 = smov 96   ;;  %s8042_s23 = sld [smem:[#allocation55_spill]] }
 0x150   : > { %s7161_s7 = scalar_lea.vmem %s8039_s18, %s5504_s1  ;;  %1708 = vst.msk [vmem:[#allocation2 + $0x40] sm:$0xff] %vm1699_vm0, %v6802_v6  ;;  %1709 = vst.msk [vmem:[#allocation2 + $0x48] sm:$0xff] %vm1699_vm0, %v6802_v6  ;;  %s8043_s2 = sld [smem:[#allocation56_spill]] }
 0x151   : > { %v1172_v2 = vld [vmem:[%s7161_s7 + $0x10] sm:$0xff]  ;;  %v1170_v3 = vld [vmem:[%s7161_s7] sm:$0xff]  ;;  %v1173_v4 = vld [vmem:[%s7161_s7 + $0x18] sm:$0xff]  ;;  %1710 = vst.msk [vmem:[#allocation2 + $0x50] sm:$0xff] %vm1699_vm0, %v6802_v6  ;;  %s8044_s11 = sld [smem:[#allocation58_spill]]  ;;  %s1168_s1 = scalar_lea.vmem %s6963_s20, %s8049_s16 }
 0x152   : > { %1200 = vperm.xlu1 %5743, %v1172_v2   ;;  %1190 = vperm.xlu0 %5742, %v1170_v3   ;;  %v1171_v5 = vld [vmem:[%s7161_s7 + $0x8] sm:$0xff]  ;;  %1711 = vst.msk [vmem:[#allocation2 + $0x58] sm:$0xff] %vm1699_vm0, %v6802_v6  ;;  %1712 = vst.msk [vmem:[#allocation2 + $0x60] sm:$0xff] %vm1699_vm0, %v6802_v6  ;;  %v1174_v8 = vld [vmem:[%s7161_s7 + $0x20] sm:$0xff]  ;;  %s8045_s28 = sld [smem:[#allocation60_spill]] }
 0x153   : > { %1713 = vst.msk [vmem:[#allocation2 + $0x68] sm:$0xff] %vm1699_vm0, %v6802_v6  ;;  %1714 = vst.msk [vmem:[#allocation2 + $0x70] sm:$0xff] %vm1699_vm0, %v6802_v6  ;;  %v1175_v7 = vld [vmem:[%s7161_s7 + $0x28] sm:$0xff]  ;;  %v1177_v9 = vld [vmem:[%s7161_s7 + $0x38] sm:$0xff]  ;;  %s8046_s22 = sld [smem:[#allocation62_spill]] }
 0x154   : > { %1715 = vst.msk [vmem:[#allocation2 + $0x78] sm:$0xff] %vm1699_vm0, %v6802_v6  ;;  %2303 = vst.msk [vmem:[#allocation8] sm:$0xff] %vm1699_vm0, %v6802_v6  ;;  %v1176_v10 = vld [vmem:[%s7161_s7 + $0x30] sm:$0xff]  ;;  %v1179_v11 = vld [vmem:[%s7161_s7 + $0x48] sm:$0xff]  ;;  %s8047_s18 = sld [smem:[#allocation65_spill]] }
 0x155   : > { %2304 = vst.msk [vmem:[#allocation8 + $0x8] sm:$0xff] %vm1699_vm0, %v6802_v6  ;;  %2305 = vst.msk [vmem:[#allocation8 + $0x10] sm:$0xff] %vm1699_vm0, %v6802_v6  ;;  %v1178_v12 = vld [vmem:[%s7161_s7 + $0x40] sm:$0xff]  ;;  %v1181_v13 = vld [vmem:[%s7161_s7 + $0x58] sm:$0xff] }
 0x156   : > { %2306 = vst.msk [vmem:[#allocation8 + $0x18] sm:$0xff] %vm1699_vm0, %v6802_v6  ;;  %2307 = vst.msk [vmem:[#allocation8 + $0x20] sm:$0xff] %vm1699_vm0, %v6802_v6  ;;  %1205 = vperm.xlu1 %5743, %v1173_v4   ;;  %1195 = vperm.xlu0 %5742, %v1171_v5   ;;  %v1180_v14 = vld [vmem:[%s7161_s7 + $0x50] sm:$0xff]  ;;  %v1183_v15 = vld [vmem:[%s7161_s7 + $0x68] sm:$0xff] }
 0x157   : > { %2308 = vst.msk [vmem:[#allocation8 + $0x28] sm:$0xff] %vm1699_vm0, %v6802_v6  ;;  %2309 = vst.msk [vmem:[#allocation8 + $0x30] sm:$0xff] %vm1699_vm0, %v6802_v6  ;;  %v1182_v16 = vld [vmem:[%s7161_s7 + $0x60] sm:$0xff]  ;;  %v1185_v17 = vld [vmem:[%s7161_s7 + $0x78] sm:$0xff] }
 0x158   : > { %2310 = vst.msk [vmem:[#allocation8 + $0x38] sm:$0xff] %vm1699_vm0, %v6802_v6  ;;  %2311 = vst.msk [vmem:[#allocation8 + $0x40] sm:$0xff] %vm1699_vm0, %v6802_v6  ;;  %v1184_v18 = vld [vmem:[%s7161_s7 + $0x70] sm:$0xff]  ;;  %v1186_v19 = vld [vmem:[%s7161_s7 + $0x80] sm:$0x7] }
 0x159   : > { %2312 = vst.msk [vmem:[#allocation8 + $0x48] sm:$0xff] %vm1699_vm0, %v6802_v6  ;;  %2313 = vst.msk [vmem:[#allocation8 + $0x50] sm:$0xff] %vm1699_vm0, %v6802_v6  ;;  %v5919_v22 = vld [vmem:[%s8040_s26 + $0x38] sm:$0xff]   ;;  %v5920_v23 = vld [vmem:[%s8040_s26 + $0x30] sm:$0xff]  }
 0x15a   : > { %2314 = vst.msk [vmem:[#allocation8 + $0x58] sm:$0xff] %vm1699_vm0, %v6802_v6  ;;  %2315 = vst.msk [vmem:[#allocation8 + $0x60] sm:$0xff] %vm1699_vm0, %v6802_v6  ;;  %1215 = vperm.xlu1 %5743, %v1175_v7   ;;  %1210 = vperm.xlu0 %5742, %v1174_v8   ;;  %v5921_v26 = vld [vmem:[%s8040_s26 + $0x28] sm:$0xff]   ;;  %v1187_v27 = vld [vmem:[%s8041_s3] sm:$0xf] }
 0x15b   : > { %2316 = vst.msk [vmem:[#allocation8 + $0x68] sm:$0xff] %vm1699_vm0, %v6802_v6  ;;  %2317 = vst.msk [vmem:[#allocation8 + $0x70] sm:$0xff] %vm1699_vm0, %v6802_v6  ;;  %5452 = vmatprep.subr.bf16.mxu0 %v5919_v22  ;;  %v7275_v30 = vrot.slane %v1187_v27, %v7265_v24  ;;  %v7277_v31 = vrot.slane %v1187_v27, %v1399_v25  ;;  %v5922_v32 = vld [vmem:[%s8040_s26 + $0x20] sm:$0xff]   ;;  %v7280_v33 = vrot.slane %v1187_v27, %v1503_v28 }
 0x15c   : > { %2318 = vst.msk [vmem:[#allocation8 + $0x78] sm:$0xff] %vm1699_vm0, %v6802_v6  ;;  %2379 = vst.msk [vmem:[#allocation3] sm:$0xff] %vm1699_vm0, %v6802_v6  ;;  %5453 = vmatpush3.bf16.msra.mxu0 %v5919_v22  ;;  %v7283_v34 = vrot.slane %v1187_v27, %v7272_v29  ;;  %v7326_v22 = vld [vmem:[#allocation13] ss:$0 sm:$0xff] }
 0x15d   : > { %2380 = vst.msk [vmem:[#allocation3 + $0x8] sm:$0xff] %vm1699_vm0, %v6802_v6  ;;  %2381 = vst.msk [vmem:[#allocation3 + $0x10] sm:$0xff] %vm1699_vm0, %v6802_v6  ;;  %5454 = vmatprep.subr.bf16.mxu0 %v5920_v23 }
 0x15e   : > { %2382 = vst.msk [vmem:[#allocation3 + $0x18] sm:$0xff] %vm1699_vm0, %v6802_v6  ;;  %3119 = vst [vmem:[#allocation6] sm:$0xff] %v6802_v6  ;;  %1225 = vperm.xlu1 %5743, %v1177_v9   ;;  %1220 = vperm.xlu0 %5742, %v1176_v10  }
 0x15f   : > { %3120 = vst [vmem:[#allocation6 + $0x8] sm:$0x7] %v6802_v6  ;;  %3485 = vst [vmem:[#allocation10] sm:$0xff] %v6802_v6 }
 0x160   : > { %3502 = vst [vmem:[#allocation7] sm:$0xf] %v6802_v6  ;;  %4012 = vst [vmem:[#allocation11] sm:$0xff] %v6802_v6  ;;  %5455 = vmatpush3.bf16.msra.mxu0 %v5920_v23 }
 0x161   : > { %1717 = vst.msk [vmem:[#allocation2 + $0x80] sm:$0x7] %vm1716_vm1, %v6802_v6  ;;  %2383 = vst.msk [vmem:[#allocation3 + $0x20] sm:$0x7] %vm1716_vm1, %v6802_v6  ;;  %5456 = vmatprep.subr.bf16.mxu0 %v5921_v26 }
 0x162   : > { %1235 = vperm.xlu1 %5743, %v1179_v11   ;;  %1230 = vperm.xlu0 %5742, %v1178_v12  }
 0x164   : > { %5457 = vmatpush3.bf16.msra.mxu0 %v5921_v26 }
 0x165   : > { %5458 = vmatprep.subr.bf16.mxu0 %v5922_v32 }
 0x166   : > { %1245 = vperm.xlu1 %5743, %v1181_v13   ;;  %1240 = vperm.xlu0 %5742, %v1180_v14  }
 0x168   : > { %5459 = vmatpush3.bf16.msra.mxu0 %v5922_v32 }
 0x16a   : > { %1255 = vperm.xlu1 %5743, %v1183_v15   ;;  %1250 = vperm.xlu0 %5742, %v1182_v16  }
 0x16e   : > { %1265 = vperm.xlu1 %5743, %v1185_v17   ;;  %1260 = vperm.xlu0 %5742, %v1184_v18  }
 0x172   : > { %1290 = vperm.xlu0 %5742, %v1186_v19  }
 0x1cd   : > { %v1201_v35 = vpop.permute.xlu1 %1200  ;;  %v1191_v36 = vpop.permute.xlu0 %1190 }
 0x1ce   : > { %v1299_v37 = vmul.f32 %v7275_v30, %v1201_v35  ;;  %v1403_v38 = vmul.f32 %v7277_v31, %v1201_v35  ;;  %v1507_v39 = vmul.f32 %v7280_v33, %v1201_v35  ;;  %v1297_v40 = vmul.f32 %v7275_v30, %v1191_v36 }
 0x1cf   : > { %v1401_v41 = vmul.f32 %v7277_v31, %v1191_v36  ;;  %v1274_v42 = vmul.f32 %v7283_v34, %v1201_v35  ;;  %v1505_v43 = vmul.f32 %v7280_v33, %v1191_v36  ;;  %v1272_v47 = vmul.f32 %v7283_v34, %v1191_v36 }
 0x1d0   : > { %v1335_v44 = vrot.slane %v1299_v37, 1  ;;  %v1439_v45 = vrot.slane %v1403_v38, 2  ;;  %v1543_v46 = vrot.slane %v1507_v39, 3  ;;  %v1332_v50 = vrot.slane %v1297_v40, 1  ;;  %v7335_v38 = vld [vmem:[#allocation15] ss:$0 sm:$0xff] }
 0x1d1   : > { %v1206_v48 = vpop.permute.xlu1 %1205  ;;  %v1196_v49 = vpop.permute.xlu0 %1195  ;;  %v1436_v54 = vrot.slane %v1401_v41, 2  ;;  %v1540_v58 = vrot.slane %v1505_v43, 3 }
 0x1d2   : > { %v1300_v51 = vmul.f32 %v7275_v30, %v1206_v48  ;;  %v7295_v52 = vmul.f32 %v7277_v31, %v1206_v48  ;;  %v7298_v53 = vmul.f32 %v7280_v33, %v1206_v48  ;;  %v1298_v55 = vmul.f32 %v7275_v30, %v1196_v49 }
 0x1d3   : > { %v1402_v56 = vmul.f32 %v7277_v31, %v1196_v49  ;;  %v1506_v57 = vmul.f32 %v7280_v33, %v1196_v49  ;;  %v1275_v62 = vmul.f32 %v7283_v34, %v1206_v48  ;;  %v1273_v6 = vmul.f32 %v7283_v34, %v1196_v49 }
 0x1d4   : > { %v1337_v59 = vrot.slane %v1300_v51, 1  ;;  %v1441_v60 = vrot.slane %v7295_v52, 2  ;;  %v1545_v61 = vrot.slane %v7298_v53, 3  ;;  %v1333_v63 = vrot.slane %v1298_v55, 1 }
 0x1d5   : > { %v1437_v0 = vrot.slane %v1402_v56, 2  ;;  %v1541_v1 = vrot.slane %v1506_v57, 3  ;;  %v1216_v2 = vpop.permute.xlu1 %1215  ;;  %v1211_v15 = vpop.permute.xlu0 %1210 }
 0x1d6   : > { %v1338_v3 = vsel %vm1331_vm2, %v1335_v44, %v1337_v59  ;;  %v1442_v4 = vsel %vm1435_vm3, %v1439_v45, %v1441_v60  ;;  %v1546_v5 = vsel %vm1539_vm4, %v1543_v46, %v1545_v61  ;;  %v1334_v8 = vsel %vm1331_vm2, %v1332_v50, %v1333_v63 }
 0x1d7   : > { %v1383_v7 = vadd.f32 %v1338_v3, %v1274_v42  ;;  %v1336_v9 = vsel %vm1331_vm2, %v1333_v63, %v1335_v44  ;;  %v7315_v10 = vmul.f32 %v7283_v34, %v1216_v2  ;;  %v1381_v11 = vadd.f32 %v1334_v8, %v1272_v47 }
 0x1d8   : > { %v1382_v12 = vadd.f32 %v1336_v9, %v1273_v6  ;;  %v1438_v13 = vsel %vm1435_vm3, %v1436_v54, %v1437_v0  ;;  %v1440_v14 = vsel %vm1435_vm3, %v1437_v0, %v1439_v45  ;;  %v1542_v17 = vsel %vm1539_vm4, %v1540_v58, %v1541_v1 }
 0x1d9   : > { %v1487_v16 = vadd.f32 %v1442_v4, %v1383_v7  ;;  %v7321_v18 = vmul.f32 %v7275_v30, %v1216_v2  ;;  %v7324_v19 = vmul.f32 %v7277_v31, %v1216_v2  ;;  %v1485_v23 = vadd.f32 %v1438_v13, %v1381_v11  ;;  %v1226_v37 = vpop.permute.xlu1 %1225  ;;  %v1221_v8 = vpop.permute.xlu0 %1220 }
 0x1da   : > { %v1486_v25 = vadd.f32 %v1440_v14, %v1382_v12  ;;  %v1544_v26 = vsel %vm1539_vm4, %v1541_v1, %v1543_v46  ;;  %v7330_v27 = vmul.f32 %v7280_v33, %v1216_v2  ;;  %v1276_v35 = vmul.f32 %v7283_v34, %v1211_v15 }
 0x1db   : > { %v1591_v28 = vadd.f32 %v1546_v5, %v1487_v16  ;;  %v1341_v32 = vrot.slane %v7321_v18, 1  ;;  %v1301_v36 = vmul.f32 %v7275_v30, %v1211_v15  ;;  %v1589_v39 = vadd.f32 %v1542_v17, %v1485_v23 }
 0x1dc   : > { %v1590_v40 = vadd.f32 %v1544_v26, %v1486_v25  ;;  %v1445_v41 = vrot.slane %v7324_v19, 2  ;;  %v1405_v42 = vmul.f32 %v7277_v31, %v1211_v15  ;;  %v1549_v44 = vrot.slane %v7330_v27, 3 }
 0x1dd   : > { %v1614_v43 = vmul.f32 %v7326_v22, %v1591_v28  ;;  %v1339_v45 = vrot.slane %v1301_v36, 1  ;;  %v1509_v46 = vmul.f32 %v7280_v33, %v1211_v15  ;;  %v1612_v47 = vmul.f32 %v7326_v22, %v1589_v39  ;;  %v1236_v19 = vpop.permute.xlu1 %1235 }
 0x1de   : > { %v1613_v48 = vmul.f32 %v7326_v22, %v1590_v40  ;;  %v1443_v49 = vrot.slane %v1405_v42, 2  ;;  %v7345_v50 = vmul.f32 %v7275_v30, %v1226_v37  ;;  %v7357_v7 = vmul.f32 %v7283_v34, %v1226_v37 }
 0x1df   : > { %v1637_v51 = vadd.f32 %v7335_v38, %v1614_v43  ;;  %v1340_v52 = vsel %vm1331_vm2, %v1337_v59, %v1339_v45  ;;  %v1342_v54 = vsel %vm1331_vm2, %v1339_v45, %v1341_v32  ;;  %v1547_v55 = vrot.slane %v1509_v46, 3 }
 0x1e0   : > { %v1635_v56 = vadd.f32 %v7335_v38, %v1612_v47  ;;  %v1636_v57 = vadd.f32 %v7335_v38, %v1613_v48  ;;  %v1384_v58 = vadd.f32 %v1340_v52, %v1275_v62  ;;  %v1385_v63 = vadd.f32 %v1342_v54, %v1276_v35 }
 0x1e1   : > { %vm1653_vm5 = vcmp.gt.f32.partialorder %v1637_v51, 0.0  ;;  %v1669_v0 = vmul.f32 0.01, %v1637_v51  ;;  %v1444_v1 = vsel %vm1435_vm3, %v1441_v60, %v1443_v49  ;;  %v1446_v2 = vsel %vm1435_vm3, %v1443_v49, %v1445_v41 }
 0x1e2   : > { %vm1651_vm6 = vcmp.gt.f32.partialorder %v1635_v56, 0.0  ;;  %vm1652_vm7 = vcmp.gt.f32.partialorder %v1636_v57, 0.0  ;;  %v1667_v59 = vmul.f32 0.01, %v1635_v56  ;;  %v1668_v3 = vmul.f32 0.01, %v1636_v57 }
 0x1e3   : > { %v1685_v4 = vsel %vm1653_vm5, %v1637_v51, %v1669_v0  ;;  %v1488_v5 = vadd.f32 %v1444_v1, %v1384_v58  ;;  %v1489_v6 = vadd.f32 %v1446_v2, %v1385_v63  ;;  %v1548_v60 = vsel %vm1539_vm4, %v1545_v61, %v1547_v55  ;;  %v1246_v63 = vpop.permute.xlu1 %1245 }
 0x1e4   : > { %1720 = vst.msk [vmem:[#allocation2 + $0x11] sm:$0xff] %vm1699_vm0, %v1685_v4  ;;  %v1683_v62 = vsel %vm1651_vm6, %v1635_v56, %v1667_v59  ;;  %v1684_v9 = vsel %vm1652_vm7, %v1636_v57, %v1668_v3  ;;  %v1550_v11 = vsel %vm1539_vm4, %v1547_v55, %v1549_v44  ;;  %v7369_v14 = vmul.f32 %v7277_v31, %v1226_v37 }
 0x1e5   : > { %1718 = vst.msk [vmem:[#allocation2 + $0x1] sm:$0xff] %vm1699_vm0, %v1683_v62  ;;  %1719 = vst.msk [vmem:[#allocation2 + $0x9] sm:$0xff] %vm1699_vm0, %v1684_v9  ;;  %v1592_v12 = vadd.f32 %v1548_v60, %v1488_v5  ;;  %v1593_v13 = vadd.f32 %v1550_v11, %v1489_v6  ;;  %v7372_v15 = vmul.f32 %v7280_v33, %v1226_v37  ;;  %v1345_v53 = vrot.slane %v7345_v50, 1 }
 0x1e6   : > { %v1303_v61 = vmul.f32 %v7275_v30, %v1221_v8  ;;  %v1407_v16 = vmul.f32 %v7277_v31, %v1221_v8  ;;  %v1511_v17 = vmul.f32 %v7280_v33, %v1221_v8  ;;  %v1449_v26 = vrot.slane %v7369_v14, 2 }
 0x1e7   : > { %v1615_v23 = vmul.f32 %v7326_v22, %v1592_v12  ;;  %v1616_v25 = vmul.f32 %v7326_v22, %v1593_v13  ;;  %v1278_v28 = vmul.f32 %v7283_v34, %v1221_v8  ;;  %v1553_v35 = vrot.slane %v7372_v15, 3 }
 0x1e8   : > { %v1343_v36 = vrot.slane %v1303_v61, 1  ;;  %v1447_v37 = vrot.slane %v1407_v16, 2  ;;  %v1551_v39 = vrot.slane %v1511_v17, 3  ;;  %v7386_v43 = vmul.f32 %v7283_v34, %v1236_v19 }
 0x1e9   : > { %v1638_v40 = vadd.f32 %v7335_v38, %v1615_v23  ;;  %v1639_v42 = vadd.f32 %v7335_v38, %v1616_v25  ;;  %v7389_v45 = vmul.f32 %v7275_v30, %v1236_v19  ;;  %v7397_v49 = vmul.f32 %v7277_v31, %v1236_v19 }
 0x1ea   : > { %v1344_v46 = vsel %vm1331_vm2, %v1341_v32, %v1343_v36  ;;  %v1346_v47 = vsel %vm1331_vm2, %v1343_v36, %v1345_v53  ;;  %v1448_v48 = vsel %vm1435_vm3, %v1445_v41, %v1447_v37  ;;  %v1450_v55 = vsel %vm1435_vm3, %v1447_v37, %v1449_v26  ;;  %v1231_v32 = vpop.permute.xlu0 %1230 }
 0x1eb   : > { %vm1654_vm8 = vcmp.gt.f32.partialorder %v1638_v40, 0.0  ;;  %vm1655_vm9 = vcmp.gt.f32.partialorder %v1639_v42, 0.0  ;;  %v1670_v50 = vmul.f32 0.01, %v1638_v40  ;;  %v1671_v51 = vmul.f32 0.01, %v1639_v42 }
 0x1ec   : > { %v1386_v52 = vadd.f32 %v1344_v46, %v7315_v10  ;;  %v1387_v54 = vadd.f32 %v1346_v47, %v1278_v28  ;;  %v1552_v18 = vsel %vm1539_vm4, %v1549_v44, %v1551_v39  ;;  %v1554_v41 = vsel %vm1539_vm4, %v1551_v39, %v1553_v35 }
 0x1ed   : > { %v1686_v56 = vsel %vm1654_vm8, %v1638_v40, %v1670_v50  ;;  %v1687_v57 = vsel %vm1655_vm9, %v1639_v42, %v1671_v51  ;;  %v1349_v58 = vrot.slane %v7389_v45, 1  ;;  %v1453_v1 = vrot.slane %v7397_v49, 2  ;;  %v1256_v50 = vpop.permute.xlu1 %1255 }
 0x1ee   : > { %1721 = vst.msk [vmem:[#allocation2 + $0x19] sm:$0xff] %vm1699_vm0, %v1686_v56  ;;  %1722 = vst.msk [vmem:[#allocation2 + $0x21] sm:$0xff] %vm1699_vm0, %v1687_v57  ;;  %v1490_v10 = vadd.f32 %v1448_v48, %v1386_v52  ;;  %v1491_v0 = vadd.f32 %v1450_v55, %v1387_v54  ;;  %v7410_v27 = vmul.f32 %v7280_v33, %v1236_v19  ;;  %v1241_v37 = vpop.permute.xlu0 %1240  ;;  %vm2023_vm7 = vcmask 785408  }
 0x1ef   : > { %v1280_v44 = vmul.f32 %v7283_v34, %v1231_v32  ;;  %v1305_v2 = vmul.f32 %v7275_v30, %v1231_v32  ;;  %v1409_v59 = vmul.f32 %v7277_v31, %v1231_v32  ;;  %v1513_v3 = vmul.f32 %v7280_v33, %v1231_v32 }
 0x1f0   : > { %v1594_v4 = vadd.f32 %v1552_v18, %v1490_v10  ;;  %v1595_v5 = vadd.f32 %v1554_v41, %v1491_v0  ;;  %v1557_v6 = vrot.slane %v7410_v27, 3  ;;  %v7418_v8 = vmul.f32 %v7275_v30, %v1246_v63 }
 0x1f1   : > { %v1347_v62 = vrot.slane %v1305_v2, 1  ;;  %v1451_v9 = vrot.slane %v1409_v59, 2  ;;  %v1555_v60 = vrot.slane %v1513_v3, 3  ;;  %v7421_v11 = vmul.f32 %v7277_v31, %v1246_v63 }
 0x1f2   : > { %v1617_v12 = vmul.f32 %v7326_v22, %v1594_v4  ;;  %v1618_v13 = vmul.f32 %v7326_v22, %v1595_v5  ;;  %v7426_v14 = vmul.f32 %v7283_v34, %v1246_v63  ;;  %v1353_v15 = vrot.slane %v7418_v8, 1  ;;  %v1251_v59 = vpop.permute.xlu0 %1250 }
 0x1f3   : > { %v1348_v61 = vsel %vm1331_vm2, %v1345_v53, %v1347_v62  ;;  %v1350_v16 = vsel %vm1331_vm2, %v1347_v62, %v1349_v58  ;;  %v1452_v17 = vsel %vm1435_vm3, %v1449_v26, %v1451_v9  ;;  %v7435_v19 = vmul.f32 %v7280_v33, %v1246_v63 }
 0x1f4   : > { %v1640_v23 = vadd.f32 %v7335_v38, %v1617_v12  ;;  %v1641_v25 = vadd.f32 %v7335_v38, %v1618_v13  ;;  %v1388_v28 = vadd.f32 %v1348_v61, %v7357_v7  ;;  %v1389_v36 = vadd.f32 %v1350_v16, %v1280_v44 }
 0x1f5   : > { %v1454_v39 = vsel %vm1435_vm3, %v1451_v9, %v1453_v1  ;;  %v1556_v53 = vsel %vm1539_vm4, %v1553_v35, %v1555_v60  ;;  %v1558_v40 = vsel %vm1539_vm4, %v1555_v60, %v1557_v6  ;;  %v1457_v42 = vrot.slane %v7421_v11, 2 }
 0x1f6   : > { %vm1656_vm10 = vcmp.gt.f32.partialorder %v1640_v23, 0.0  ;;  %vm1657_vm11 = vcmp.gt.f32.partialorder %v1641_v25, 0.0  ;;  %v1672_v26 = vmul.f32 0.01, %v1640_v23  ;;  %v1673_v46 = vmul.f32 0.01, %v1641_v25 }
 0x1f7   : > { %v1492_v47 = vadd.f32 %v1452_v17, %v1388_v28  ;;  %v1493_v48 = vadd.f32 %v1454_v39, %v1389_v36  ;;  %v1561_v49 = vrot.slane %v7435_v19, 3  ;;  %v1307_v7 = vmul.f32 %v7275_v30, %v1241_v37 }
 0x1f8   : > { %v1688_v51 = vsel %vm1656_vm10, %v1640_v23, %v1672_v26  ;;  %v1689_v52 = vsel %vm1657_vm11, %v1641_v25, %v1673_v46  ;;  %v1411_v54 = vmul.f32 %v7277_v31, %v1241_v37  ;;  %v1515_v35 = vmul.f32 %v7280_v33, %v1241_v37 }
 0x1f9   : > { %1723 = vst.msk [vmem:[#allocation2 + $0x29] sm:$0xff] %vm1699_vm0, %v1688_v51  ;;  %1724 = vst.msk [vmem:[#allocation2 + $0x31] sm:$0xff] %vm1699_vm0, %v1689_v52  ;;  %v1596_v55 = vadd.f32 %v1556_v53, %v1492_v47  ;;  %v1597_v18 = vadd.f32 %v1558_v40, %v1493_v48  ;;  %v1282_v32 = vmul.f32 %v7283_v34, %v1241_v37  ;;  %v1351_v56 = vrot.slane %v1307_v7, 1  ;;  %v1261_v40 = vpop.permute.xlu0 %1260 }
 0x1fa   : > { %v1455_v57 = vrot.slane %v1411_v54, 2  ;;  %v1559_v41 = vrot.slane %v1515_v35, 3  ;;  %v7452_v63 = vmul.f32 %v7283_v34, %v1256_v50  ;;  %v7455_v10 = vmul.f32 %v7275_v30, %v1256_v50 }
 0x1fb   : > { %v1619_v0 = vmul.f32 %v7326_v22, %v1596_v55  ;;  %v1620_v27 = vmul.f32 %v7326_v22, %v1597_v18  ;;  %v1352_v44 = vsel %vm1331_vm2, %v1349_v58, %v1351_v56  ;;  %v1354_v2 = vsel %vm1331_vm2, %v1351_v56, %v1353_v15 }
 0x1fc   : > { %v1390_v3 = vadd.f32 %v1352_v44, %v7386_v43  ;;  %v1391_v4 = vadd.f32 %v1354_v2, %v1282_v32  ;;  %v1456_v5 = vsel %vm1435_vm3, %v1453_v1, %v1455_v57  ;;  %v7468_v62 = vmul.f32 %v7277_v31, %v1256_v50 }
 0x1fd   : > { %v1642_v9 = vadd.f32 %v7335_v38, %v1619_v0  ;;  %v1643_v60 = vadd.f32 %v7335_v38, %v1620_v27  ;;  %v1458_v45 = vsel %vm1435_vm3, %v1455_v57, %v1457_v42  ;;  %v1560_v58 = vsel %vm1539_vm4, %v1557_v6, %v1559_v41  ;;  %v1266_v6 = vpop.permute.xlu1 %1265  ;;  %v1291_v2 = vpop.permute.xlu0 %1290 }
 0x1fe   : > { %v1494_v12 = vadd.f32 %v1456_v5, %v1390_v3  ;;  %v1495_v13 = vadd.f32 %v1458_v45, %v1391_v4  ;;  %v1562_v43 = vsel %vm1539_vm4, %v1559_v41, %v1561_v49  ;;  %v1357_v1 = vrot.slane %v7455_v10, 1  ;;  %v5923_v5 = vld [vmem:[%s8040_s26 + $0x18] sm:$0xff]  }
 0x1ff   : > { %vm1658_vm12 = vcmp.gt.f32.partialorder %v1642_v9, 0.0  ;;  %vm1659_vm13 = vcmp.gt.f32.partialorder %v1643_v60, 0.0  ;;  %v1674_v61 = vmul.f32 0.01, %v1642_v9  ;;  %v1675_v16 = vmul.f32 0.01, %v1643_v60  ;;  %5460 = vmatprep.subr.bf16.mxu0 %v5923_v5 }
 0x200   : > { %v1598_v17 = vadd.f32 %v1560_v58, %v1494_v12  ;;  %v1599_v23 = vadd.f32 %v1562_v43, %v1495_v13  ;;  %v1461_v25 = vrot.slane %v7468_v62, 2  ;;  %v7482_v28 = vmul.f32 %v7280_v33, %v1256_v50  ;;  %5461 = vmatpush3.bf16.msra.mxu0 %v5923_v5 }
 0x201   : > { %v1690_v36 = vsel %vm1658_vm12, %v1642_v9, %v1674_v61  ;;  %v1691_v37 = vsel %vm1659_vm13, %v1643_v60, %v1675_v16  ;;  %v1309_v39 = vmul.f32 %v7275_v30, %v1251_v59  ;;  %v1413_v53 = vmul.f32 %v7277_v31, %v1251_v59 }
 0x202   : > { %1725 = vst.msk [vmem:[#allocation2 + $0x39] sm:$0xff] %vm1699_vm0, %v1690_v36  ;;  %1726 = vst.msk [vmem:[#allocation2 + $0x41] sm:$0xff] %vm1699_vm0, %v1691_v37  ;;  %v1621_v26 = vmul.f32 %v7326_v22, %v1598_v17  ;;  %v1622_v46 = vmul.f32 %v7326_v22, %v1599_v23  ;;  %v1284_v47 = vmul.f32 %v7283_v34, %v1251_v59  ;;  %v1565_v7 = vrot.slane %v7482_v28, 3 }
 0x203   : > { %v1517_v48 = vmul.f32 %v7280_v33, %v1251_v59  ;;  %v1355_v50 = vrot.slane %v1309_v39, 1  ;;  %v1459_v51 = vrot.slane %v1413_v53, 2  ;;  %v7494_v52 = vmul.f32 %v7283_v34, %v1266_v6 }
 0x204   : > { %v1644_v54 = vadd.f32 %v7335_v38, %v1621_v26  ;;  %v1645_v35 = vadd.f32 %v7335_v38, %v1622_v46  ;;  %v1312_v18 = vmul.f32 %v7275_v30, %v1266_v6  ;;  %v7509_v41 = vmul.f32 %v7277_v31, %v1266_v6 }
 0x205   : > { %v1563_v55 = vrot.slane %v1517_v48, 3  ;;  %v1356_v32 = vsel %vm1331_vm2, %v1353_v15, %v1355_v50  ;;  %v1358_v56 = vsel %vm1331_vm2, %v1355_v50, %v1357_v1  ;;  %v1460_v57 = vsel %vm1435_vm3, %v1457_v42, %v1459_v51 }
 0x206   : > { %vm1660_vm14 = vcmp.gt.f32.partialorder %v1644_v54, 0.0  ;;  %vm1661_vm15 = vcmp.gt.f32.partialorder %v1645_v35, 0.0  ;;  %v1676_v0 = vmul.f32 0.01, %v1644_v54  ;;  %v1677_v27 = vmul.f32 0.01, %v1645_v35 }
 0x207   : > { %v1392_v8 = vadd.f32 %v1356_v32, %v7426_v14  ;;  %v1393_v44 = vadd.f32 %v1358_v56, %v1284_v47  ;;  %v1462_v15 = vsel %vm1435_vm3, %v1459_v51, %v1461_v25  ;;  %v1564_v11 = vsel %vm1539_vm4, %v1561_v49, %v1563_v55 }
 0x208   : > { %v1692_v42 = vsel %vm1660_vm14, %v1644_v54, %v1676_v0  ;;  %v1693_v59 = vsel %vm1661_vm15, %v1645_v35, %v1677_v27  ;;  %v1566_v3 = vsel %vm1539_vm4, %v1563_v55, %v1565_v7  ;;  %v1361_v4 = vrot.slane %v1312_v18, 1  ;;  %v1751_v54 = vld [vmem:[#allocation2 + $0x9] sm:$0xff] }
 0x209   : > { %1727 = vst.msk [vmem:[#allocation2 + $0x49] sm:$0xff] %vm1699_vm0, %v1692_v42  ;;  %1728 = vst.msk [vmem:[#allocation2 + $0x51] sm:$0xff] %vm1699_vm0, %v1693_v59  ;;  %v1496_v14 = vadd.f32 %v1460_v57, %v1392_v8  ;;  %v1497_v9 = vadd.f32 %v1462_v15, %v1393_v44  ;;  %v1465_v60 = vrot.slane %v7509_v41, 2  ;;  %v1520_v19 = vmul.f32 %v7280_v33, %v1266_v6  ;;  %v5924_v6 = vld [vmem:[%s8040_s26 + $0x10] sm:$0xff]   ;;  %v1753_v57 = vld [vmem:[#allocation2 + $0x19] sm:$0xff] }
 0x20a   : > { %v1311_v49 = vmul.f32 %v7275_v30, %v1261_v40  ;;  %v1415_v45 = vmul.f32 %v7277_v31, %v1261_v40  ;;  %v1519_v58 = vmul.f32 %v7280_v33, %v1261_v40  ;;  %v1313_v12 = vmul.f32 %v7275_v30, %v1291_v2  ;;  %5462 = vmatprep.subr.bf16.mxu0 %v5924_v6  ;;  %v5925_v27 = vld [vmem:[%s8040_s26 + $0x8] sm:$0xff]   ;;  %v1752_v42 = vld [vmem:[#allocation2 + $0x11] sm:$0xff] }
 0x20b   : > { %v1600_v13 = vadd.f32 %v1564_v11, %v1496_v14  ;;  %v1601_v43 = vadd.f32 %v1566_v3, %v1497_v9  ;;  %v1569_v61 = vrot.slane %v1520_v19, 3  ;;  %v1417_v16 = vmul.f32 %v7277_v31, %v1291_v2  ;;  %5463 = vmatpush3.bf16.msra.mxu0 %v5924_v6  ;;  %v1766_v11 = vld [vmem:[#allocation2 + $0x2] sm:$0xff]  ;;  %v1768_v9 = vld [vmem:[#allocation2 + $0x12] sm:$0xff] }
 0x20c   : > { %v1359_v17 = vrot.slane %v1311_v49, 1  ;;  %v1463_v23 = vrot.slane %v1415_v45, 2  ;;  %v1567_v36 = vrot.slane %v1519_v58, 3  ;;  %v1363_v37 = vrot.slane %v1313_v12, 1  ;;  %v5926_v3 = vld [vmem:[%s8040_s26] sm:$0xff]   ;;  %5464 = vmatprep.subr.bf16.mxu0 %v5925_v27 }
 0x20d   : > { %v1623_v39 = vmul.f32 %v7326_v22, %v1600_v13  ;;  %v1624_v53 = vmul.f32 %v7326_v22, %v1601_v43  ;;  %v1286_v26 = vmul.f32 %v7283_v34, %v1261_v40  ;;  %v1467_v46 = vrot.slane %v1417_v16, 2  ;;  %v1782_v12 = vld [vmem:[#allocation2 + $0x3] sm:$0xff]  ;;  %v1783_v13 = vld [vmem:[#allocation2 + $0xb] sm:$0xff]  ;;  %v1785_v16 = vld [vmem:[#allocation2 + $0x1b] sm:$0xff] }
 0x20e   : > { %v1360_v30 = vsel %vm1331_vm2, %v1357_v1, %v1359_v17  ;;  %v1362_v47 = vsel %vm1331_vm2, %v1359_v17, %v1361_v4  ;;  %v1464_v31 = vsel %vm1435_vm3, %v1461_v25, %v1463_v23  ;;  %v1521_v48 = vmul.f32 %v7280_v33, %v1291_v2  ;;  %v1750_v33 = vld [vmem:[#allocation2 + $0x1] sm:$0xff]  ;;  %v1767_v2 = vld [vmem:[#allocation2 + $0xa] sm:$0xff] }
 0x20f   : > { %v1646_v50 = vadd.f32 %v7335_v38, %v1623_v39  ;;  %v1647_v51 = vadd.f32 %v7335_v38, %v1624_v53  ;;  %v1394_v34 = vadd.f32 %v1360_v30, %v7452_v63  ;;  %v1395_v40 = vadd.f32 %v1362_v47, %v1286_v26  ;;  %5465 = vmatpush3.bf16.msra.mxu0 %v5925_v27  ;;  %v1755_v53 = vld [vmem:[#allocation2 + $0x29] sm:$0xff]  ;;  %v1757_v30 = vld [vmem:[#allocation2 + $0x39] sm:$0xff] }
 0x210   : > { %v1466_v10 = vsel %vm1435_vm3, %v1463_v23, %v1465_v60  ;;  %v1568_v1 = vsel %vm1539_vm4, %v1565_v7, %v1567_v36  ;;  %v1570_v62 = vsel %vm1539_vm4, %v1567_v36, %v1569_v61  ;;  %v1364_v25 = vsel %vm1331_vm2, %v1361_v4, %v1363_v37  ;;  %5466 = vmatprep.subr.bf16.mxu0 %v5926_v3  ;;  %v7567_v36 = vld [vmem:[#allocation6] sm:$0xff] }
 0x211   : > { %vm1662_vm1 = vcmp.gt.f32.partialorder %v1646_v50, 0.0  ;;  %vm1663_vm5 = vcmp.gt.f32.partialorder %v1647_v51, 0.0  ;;  %v1678_v35 = vmul.f32 0.01, %v1646_v50  ;;  %v1679_v55 = vmul.f32 0.01, %v1647_v51 }
 0x212   : > { %v1498_v63 = vadd.f32 %v1464_v31, %v1394_v34  ;;  %v1499_v18 = vadd.f32 %v1466_v10, %v1395_v40  ;;  %v1396_v32 = vadd.f32 %v1364_v25, %v7494_v52  ;;  %v1571_v56 = vrot.slane %v1521_v48, 3  ;;  %v1770_v48 = vld [vmem:[#allocation2 + $0x22] sm:$0xff]  ;;  %v1772_v40 = vld [vmem:[#allocation2 + $0x32] sm:$0xff]  ;;  %v1773_v10 = vld [vmem:[#allocation2 + $0x3a] sm:$0xff] }
 0x213   : > { %v1694_v28 = vsel %vm1662_vm1, %v1646_v50, %v1678_v35  ;;  %v1695_v41 = vsel %vm1663_vm5, %v1647_v51, %v1679_v55  ;;  %v1468_v7 = vsel %vm1435_vm3, %v1465_v60, %v1467_v46  ;;  %v5744_v0 = vpack.i.bf16 %v1751_v54, %v1750_v33  ;;  %v1769_v60 = vld [vmem:[#allocation2 + $0x1a] sm:$0xff]  ;;  %5467 = vmatpush3.bf16.msra.mxu0 %v5926_v3  ;;  %v1771_v50 = vld [vmem:[#allocation2 + $0x2a] sm:$0xff] }
 0x214   : > { %1729 = vst.msk [vmem:[#allocation2 + $0x59] sm:$0xff] %vm1699_vm0, %v1694_v28  ;;  %1730 = vst.msk [vmem:[#allocation2 + $0x61] sm:$0xff] %vm1699_vm0, %v1695_v41  ;;  %v1602_v8 = vadd.f32 %v1568_v1, %v1498_v63  ;;  %v1603_v44 = vadd.f32 %v1570_v62, %v1499_v18  ;;  %v1500_v15 = vadd.f32 %v1468_v7, %v1396_v32  ;;  %vm2006_vm2 = vcmask 523264   ;;  %v1756_v51 = vld [vmem:[#allocation2 + $0x31] sm:$0xff]  ;;  %v1786_v62 = vld [vmem:[#allocation2 + $0x23] sm:$0xff] }
 0x215   : > { %v1572_v52 = vsel %vm1539_vm4, %v1569_v61, %v1571_v56  ;;  %5745 = vrot.lane.b32.xlu1 %v5744_v0, %s6803_s9  ;;  %v5749_v59 = vpack.i.bf16 %v1753_v57, %v1752_v42  ;;  %v5754_v19 = vpack.i.bf16 %v1767_v2, %v1766_v11  ;;  %v5759_v43 = vpack.i.bf16 %v1769_v60, %v1768_v9  ;;  %v1784_v61 = vld [vmem:[#allocation2 + $0x13] sm:$0xff]  ;;  %v1787_v25 = vld [vmem:[#allocation2 + $0x2b] sm:$0xff]  ;;  %v1789_v35 = vld [vmem:[#allocation2 + $0x3b] sm:$0xff] }
 0x216   : > { %v1625_v4 = vmul.f32 %v7326_v22, %v1602_v8  ;;  %v1626_v5 = vmul.f32 %v7326_v22, %v1603_v44  ;;  %v1604_v14 = vadd.f32 %v1572_v52, %v1500_v15  ;;  %2613 = vst.msk [vmem:[#allocation4] sm:$0xff] %vm2006_vm2, %v7567_v36  ;;  %2614 = vst.msk [vmem:[#allocation4 + $0x8] sm:$0xff] %vm2006_vm2, %v7567_v36  ;;  %v1788_v54 = vld [vmem:[#allocation2 + $0x33] sm:$0xff]  ;;  %v1759_v63 = vld [vmem:[#allocation2 + $0x49] sm:$0xff] }
 0x217   : > { %5750 = vrot.lane.b32.xlu0 %v5749_v59, %s6803_s9  ;;  %2615 = vst.msk [vmem:[#allocation4 + $0x10] sm:$0xff] %vm2006_vm2, %v7567_v36  ;;  %2616 = vst.msk [vmem:[#allocation4 + $0x18] sm:$0xff] %vm2006_vm2, %v7567_v36  ;;  %v5764_v37 = vpack.i.bf16 %v1783_v13, %v1782_v12  ;;  %v5769_v46 = vpack.i.bf16 %v1785_v16, %v1784_v61  ;;  %v5779_v34 = vpack.i.bf16 %v1757_v30, %v1756_v51  ;;  %v1758_v32 = vld [vmem:[#allocation2 + $0x41] sm:$0xff]  ;;  %v1775_v41 = vld [vmem:[#allocation2 + $0x4a] sm:$0xff] }
 0x218   : > { %v1648_v49 = vadd.f32 %v7335_v38, %v1625_v4  ;;  %v1649_v45 = vadd.f32 %v7335_v38, %v1626_v5  ;;  %v1627_v58 = vmul.f32 %v7326_v22, %v1604_v14  ;;  %2894 = vst.msk [vmem:[#allocation9] sm:$0xff] %vm2006_vm2, %v7567_v36  ;;  %2895 = vst.msk [vmem:[#allocation9 + $0x8] sm:$0xff] %vm2006_vm2, %v7567_v36  ;;  %v1774_v28 = vld [vmem:[#allocation2 + $0x42] sm:$0xff]  ;;  %v1760_v7 = vld [vmem:[#allocation2 + $0x51] sm:$0xff] }
 0x219   : > { %5755 = vrot.lane.b32.xlu1 %v5754_v19, %s6804_s0  ;;  %2896 = vst.msk [vmem:[#allocation9 + $0x10] sm:$0xff] %vm2006_vm2, %v7567_v36  ;;  %2897 = vst.msk [vmem:[#allocation9 + $0x18] sm:$0xff] %vm2006_vm2, %v7567_v36  ;;  %v5784_v1 = vpack.i.bf16 %v1771_v50, %v1770_v48  ;;  %v5789_v33 = vpack.i.bf16 %v1773_v10, %v1772_v40  ;;  %v5794_v55 = vpack.i.bf16 %v1787_v25, %v1786_v62  ;;  %v1790_v15 = vld [vmem:[#allocation2 + $0x43] sm:$0xff]  ;;  %v1791_v11 = vld [vmem:[#allocation2 + $0x4b] sm:$0xff] }
 0x21a   : > { %vm1664_vm3 = vcmp.gt.f32.partialorder %v1648_v49, 0.0  ;;  %vm1665_vm4 = vcmp.gt.f32.partialorder %v1649_v45, 0.0  ;;  %v1680_v17 = vmul.f32 0.01, %v1648_v49  ;;  %v1681_v23 = vmul.f32 0.01, %v1649_v45 }
 0x21b   : > { %2913 = vst.msk [vmem:[#allocation5] sm:$0xff] %vm2006_vm2, %v7567_v36  ;;  %v1650_v22 = vadd.f32 %v7335_v38, %v1627_v58  ;;  %5760 = vrot.lane.b32.xlu0 %v5759_v43, %s6804_s0  ;;  %v1754_v38 = vld [vmem:[#allocation2 + $0x21] sm:$0xff]  ;;  %v5799_v18 = vpack.i.bf16 %v1789_v35, %v1788_v54  ;;  %v1761_v56 = vld [vmem:[#allocation2 + $0x59] sm:$0xff]  ;;  %v5804_v57 = vpack.i.bf16 %v1759_v63, %v1758_v32 }
 0x21c   : > { %v1696_v6 = vsel %vm1664_vm3, %v1648_v49, %v1680_v17  ;;  %v1697_v39 = vsel %vm1665_vm4, %v1649_v45, %v1681_v23  ;;  %v5774_v31 = vpack.i.bf16 %v1755_v53, %v1754_v38  ;;  %v5809_v0 = vpack.i.bf16 %v1761_v56, %v1760_v7  ;;  %v1776_v27 = vld [vmem:[#allocation2 + $0x52] sm:$0xff]  ;;  %v1777_v8 = vld [vmem:[#allocation2 + $0x5a] sm:$0xff]  ;;  %v1735_v10 = vld [vmem:[#allocation2 + $0x8] sm:$0xff] }
 0x21d   : > { %1731 = vst.msk [vmem:[#allocation2 + $0x69] sm:$0xff] %vm1699_vm0, %v1696_v6  ;;  %1732 = vst.msk [vmem:[#allocation2 + $0x71] sm:$0xff] %vm1699_vm0, %v1697_v39  ;;  %vm1666_vm6 = vcmp.gt.f32.partialorder %v1650_v22, 0.0  ;;  %v1682_v26 = vmul.f32 0.01, %v1650_v22  ;;  %5765 = vrot.lane.b32.xlu1 %v5764_v37, %s6805_s10  ;;  %v5814_v44 = vpack.i.bf16 %v1775_v41, %v1774_v28  ;;  %v5819_v2 = vpack.i.bf16 %v1777_v8, %v1776_v27  ;;  %v1792_v42 = vld [vmem:[#allocation2 + $0x53] sm:$0xff] }
 0x21e   : > { %v1793_v52 = vld [vmem:[#allocation2 + $0x5b] sm:$0xff]  ;;  %v5824_v59 = vpack.i.bf16 %v1791_v11, %v1790_v15 }
 0x21f   : > { %v1698_v47 = vsel %vm1666_vm6, %v1650_v22, %v1682_v26  ;;  %5770 = vrot.lane.b32.xlu0 %v5769_v46, %s6805_s10  ;;  %v5829_v4 = vpack.i.bf16 %v1793_v52, %v1792_v42  ;;  %v1762_v5 = vld [vmem:[#allocation2 + $0x61] sm:$0xff]  ;;  %v1737_v62 = vld [vmem:[#allocation2 + $0x18] sm:$0xff] }
 0x220   : > { %1733 = vst.msk [vmem:[#allocation2 + $0x79] sm:$0xff] %vm1699_vm0, %v1698_v47  ;;  %v1734_v40 = vld [vmem:[#allocation2] sm:$0xff] }
 0x221   : > { %5775 = vrot.lane.b32.xlu1 %v5774_v31, %s6803_s9 }
 0x223   : > { %5780 = vrot.lane.b32.xlu0 %v5779_v34, %s6803_s9 }
 0x224   : > { %v1763_v3 = vld [vmem:[#allocation2 + $0x69] sm:$0xff]  ;;  %v1764_v49 = vld [vmem:[#allocation2 + $0x71] sm:$0xff] }
 0x225   : > { %5785 = vrot.lane.b32.xlu1 %v5784_v1, %s6804_s0  ;;  %v5834_v9 = vpack.i.bf16 %v1763_v3, %v1762_v5  ;;  %v1778_v60 = vld [vmem:[#allocation2 + $0x62] sm:$0xff]  ;;  %v1779_v19 = vld [vmem:[#allocation2 + $0x6a] sm:$0xff] }
 0x226   : > { %v5844_v13 = vpack.i.bf16 %v1779_v19, %v1778_v60  ;;  %v1794_v43 = vld [vmem:[#allocation2 + $0x63] sm:$0xff]  ;;  %v1795_v61 = vld [vmem:[#allocation2 + $0x6b] sm:$0xff] }
 0x227   : > { %5790 = vrot.lane.b32.xlu0 %v5789_v33, %s6804_s0  ;;  %v1765_v14 = vld [vmem:[#allocation2 + $0x79] sm:$0xff]  ;;  %v5854_v22 = vpack.i.bf16 %v1795_v61, %v1794_v43  ;;  %v1736_v1 = vld [vmem:[#allocation2 + $0x10] sm:$0xff] }
 0x228   : > { %v5839_v45 = vpack.i.bf16 %v1765_v14, %v1764_v49  ;;  %v1780_v58 = vld [vmem:[#allocation2 + $0x72] sm:$0xff]  ;;  %v1781_v12 = vld [vmem:[#allocation2 + $0x7a] sm:$0xff]  ;;  %v1739_v49 = vld [vmem:[#allocation2 + $0x28] sm:$0xff] }
 0x229   : > { %5795 = vrot.lane.b32.xlu1 %v5794_v55, %s6805_s10  ;;  %v5849_v16 = vpack.i.bf16 %v1781_v12, %v1780_v58  ;;  %v1796_v17 = vld [vmem:[#allocation2 + $0x73] sm:$0xff]  ;;  %v1797_v23 = vld [vmem:[#allocation2 + $0x7b] sm:$0xff] }
 0x22a   : > { %v5859_v37 = vpack.i.bf16 %v1797_v23, %v1796_v17  ;;  %v1738_v19 = vld [vmem:[#allocation2 + $0x20] sm:$0xff]  ;;  %v1740_v61 = vld [vmem:[#allocation2 + $0x30] sm:$0xff] }
 0x22b   : > { %5800 = vrot.lane.b32.xlu0 %v5799_v18, %s6805_s10 }
 0x22d   : > { %5805 = vrot.lane.b32.xlu1 %v5804_v57, %s6803_s9 }
 0x22f   : > { %5810 = vrot.lane.b32.xlu0 %v5809_v0, %s6803_s9 }
 0x231   : > { %5815 = vrot.lane.b32.xlu1 %v5814_v44, %s6804_s0 }
 0x233   : > { %5820 = vrot.lane.b32.xlu0 %v5819_v2, %s6804_s0 }
 0x235   : > { %5825 = vrot.lane.b32.xlu1 %v5824_v59, %s6805_s10 }
 0x237   : > { %5830 = vrot.lane.b32.xlu0 %v5829_v4, %s6805_s10 }
 0x239   : > { %5835 = vrot.lane.b32.xlu1 %v5834_v9, %s6803_s9 }
 0x23b   : > { %5840 = vrot.lane.b32.xlu0 %v5839_v45, %s6803_s9 }
 0x23d   : > { %5845 = vrot.lane.b32.xlu1 %v5844_v13, %s6804_s0 }
 0x23f   : > { %5850 = vrot.lane.b32.xlu0 %v5849_v16, %s6804_s0  ;;  %v1741_v16 = vld [vmem:[#allocation2 + $0x38] sm:$0xff] }
 0x241   : > { %5855 = vrot.lane.b32.xlu1 %v5854_v22, %s6805_s10 }
 0x243   : > { %5860 = vrot.lane.b32.xlu0 %v5859_v37, %s6805_s10 }
 0x287   : > { %v5746_v6 = vpop.permute.xlu1 %5745 }
 0x288   : > { %v5748_v26 = vunpack.i.h.bf16 %v5746_v6  ;;  %v5747_v46 = vunpack.i.l.bf16 %v5746_v6 }
 0x289   : > { %v5751_v39 = vpop.permute.xlu0 %5750 }
 0x28a   : > { %v5753_v47 = vunpack.i.h.bf16 %v5751_v39  ;;  %v5752_v31 = vunpack.i.l.bf16 %v5751_v39  ;;  %v1990_v54 = vsel %vm1699_vm0, %v1734_v40, %v5747_v46  ;;  %v1991_v35 = vsel %vm1699_vm0, %v1735_v10, %v5748_v26 }
 0x28b   : > { %v5756_v53 = vpop.permute.xlu1 %5755 }
 0x28c   : > { %v5758_v38 = vunpack.i.h.bf16 %v5756_v53  ;;  %v5757_v30 = vunpack.i.l.bf16 %v5756_v53  ;;  %v1993_v55 = vsel %vm1699_vm0, %v1737_v62, %v5753_v47  ;;  %v1992_v63 = vsel %vm1699_vm0, %v1736_v1, %v5752_v31 }
 0x28d   : > { %v5761_v48 = vpop.permute.xlu0 %5760 }
 0x28e   : > { %v5763_v51 = vunpack.i.h.bf16 %v5761_v48  ;;  %v5762_v34 = vunpack.i.l.bf16 %v5761_v48  ;;  %v2007_v32 = vsel %vm2006_vm2, %v1990_v54, %v5757_v30  ;;  %v2008_v56 = vsel %vm2006_vm2, %v1991_v35, %v5758_v38 }
 0x28f   : > { %v5766_v50 = vpop.permute.xlu1 %5765 }
 0x290   : > { %v5768_v25 = vunpack.i.h.bf16 %v5766_v50  ;;  %v5767_v33 = vunpack.i.l.bf16 %v5766_v50  ;;  %v2009_v0 = vsel %vm2006_vm2, %v1992_v63, %v5762_v34  ;;  %v2010_v27 = vsel %vm2006_vm2, %v1993_v55, %v5763_v51 }
 0x291   : > { %v5771_v18 = vpop.permute.xlu0 %5770 }
 0x292   : > { %v5773_v57 = vunpack.i.h.bf16 %v5771_v18  ;;  %v5772_v28 = vunpack.i.l.bf16 %v5771_v18  ;;  %v2024_v41 = vsel %vm2023_vm7, %v2007_v32, %v5767_v33  ;;  %v2025_v7 = vsel %vm2023_vm7, %v2008_v56, %v5768_v25  ;;  %v1742_v18 = vld [vmem:[#allocation2 + $0x40] sm:$0xff]  ;;  %v1743_v32 = vld [vmem:[#allocation2 + $0x48] sm:$0xff] }
 0x293   : > { %v5776_v8 = vpop.permute.xlu1 %5775  ;;  %v2040_v44 = vpack.c.bf16 %v2025_v7, %v2024_v41 }
 0x294   : > { %v2026_v15 = vsel %vm2023_vm7, %v2009_v0, %v5772_v28  ;;  %v2027_v11 = vsel %vm2023_vm7, %v2010_v27, %v5773_v57  ;;  %v5778_v59 = vunpack.i.h.bf16 %v5776_v8  ;;  %v5777_v3 = vunpack.i.l.bf16 %v5776_v8  ;;  %v1744_v0 = vld [vmem:[#allocation2 + $0x50] sm:$0xff]  ;;  %v1745_v27 = vld [vmem:[#allocation2 + $0x58] sm:$0xff] }
 0x295   : > { %5468 = vmatprep.mubr.bf16.mxu0 %v2040_v44  ;;  %v5781_v2 = vpop.permute.xlu0 %5780  ;;  %v2041_v42 = vpack.c.bf16 %v2027_v11, %v2026_v15 }
 0x296   : > { %v5783_v14 = vunpack.i.h.bf16 %v5781_v2  ;;  %v5782_v9 = vunpack.i.l.bf16 %v5781_v2  ;;  %v1994_v13 = vsel %vm1699_vm0, %v1738_v19, %v5777_v3  ;;  %v1995_v43 = vsel %vm1699_vm0, %v1739_v49, %v5778_v59 }
 0x297   : > { %v5786_v52 = vpop.permute.xlu1 %5785  ;;  %5469 = vmatmul.mubr.bf16.vlgmr.msra.gmra.mxu0 %v2041_v42 }
 0x298   : > { %v5788_v4 = vunpack.i.h.bf16 %v5786_v52  ;;  %v5787_v5 = vunpack.i.l.bf16 %v5786_v52  ;;  %v1997_v6 = vsel %vm1699_vm0, %v1741_v16, %v5783_v14  ;;  %v1996_v39 = vsel %vm1699_vm0, %v1740_v61, %v5782_v9 }
 0x299   : > { %v5791_v60 = vpop.permute.xlu0 %5790 }
 0x29a   : > { %v5793_v58 = vunpack.i.h.bf16 %v5791_v60  ;;  %v5792_v12 = vunpack.i.l.bf16 %v5791_v60  ;;  %v2012_v22 = vsel %vm2006_vm2, %v1995_v43, %v5788_v4  ;;  %v2011_v37 = vsel %vm2006_vm2, %v1994_v13, %v5787_v5 }
 0x29b   : > { %v5796_v45 = vpop.permute.xlu1 %5795 }
 0x29c   : > { %v5798_v17 = vunpack.i.h.bf16 %v5796_v45  ;;  %v5797_v23 = vunpack.i.l.bf16 %v5796_v45  ;;  %v2013_v47 = vsel %vm2006_vm2, %v1996_v39, %v5792_v12  ;;  %v2014_v31 = vsel %vm2006_vm2, %v1997_v6, %v5793_v58  ;;  %v1746_v6 = vld [vmem:[#allocation2 + $0x60] sm:$0xff]  ;;  %v1747_v39 = vld [vmem:[#allocation2 + $0x68] sm:$0xff] }
 0x29d   : > { %v5801_v53 = vpop.permute.xlu0 %5800 }
 0x29e   : > { %v5803_v26 = vunpack.i.h.bf16 %v5801_v53  ;;  %v5802_v46 = vunpack.i.l.bf16 %v5801_v53  ;;  %v2028_v38 = vsel %vm2023_vm7, %v2011_v37, %v5797_v23  ;;  %v2029_v30 = vsel %vm2023_vm7, %v2012_v22, %v5798_v17 }
 0x29f   : > { %v5806_v48 = vpop.permute.xlu1 %5805  ;;  %v2042_v50 = vpack.c.bf16 %v2029_v30, %v2028_v38 }
 0x2a0   : > { %v2030_v51 = vsel %vm2023_vm7, %v2013_v47, %v5802_v46  ;;  %v2031_v34 = vsel %vm2023_vm7, %v2014_v31, %v5803_v26  ;;  %v5808_v62 = vunpack.i.h.bf16 %v5806_v48  ;;  %v5807_v25 = vunpack.i.l.bf16 %v5806_v48  ;;  %v1748_v47 = vld [vmem:[#allocation2 + $0x70] sm:$0xff]  ;;  %v1749_v31 = vld [vmem:[#allocation2 + $0x78] sm:$0xff] }
 0x2a1   : > { %5472 = vmatprep.mubr.bf16.mxu0 %v2042_v50  ;;  %v5811_v40 = vpop.permute.xlu0 %5810  ;;  %v2043_v10 = vpack.c.bf16 %v2031_v34, %v2030_v51 }
 0x2a2   : > { %v5813_v35 = vunpack.i.h.bf16 %v5811_v40  ;;  %v5812_v55 = vunpack.i.l.bf16 %v5811_v40  ;;  %v1998_v41 = vsel %vm1699_vm0, %v1742_v18, %v5807_v25  ;;  %v1999_v7 = vsel %vm1699_vm0, %v1743_v32, %v5808_v62 }
 0x2a3   : > { %v5816_v1 = vpop.permute.xlu1 %5815  ;;  %5473 = vmatmul.mubr.bf16.gmra.mxu0 %v2043_v10 }
 0x2a4   : > { %v5818_v33 = vunpack.i.h.bf16 %v5816_v1  ;;  %v5817_v54 = vunpack.i.l.bf16 %v5816_v1  ;;  %v2001_v2 = vsel %vm1699_vm0, %v1745_v27, %v5813_v35  ;;  %v2000_v42 = vsel %vm1699_vm0, %v1744_v0, %v5812_v55 }
 0x2a5   : > { %v5821_v63 = vpop.permute.xlu0 %5820 }
 0x2a6   : > { %v5823_v57 = vunpack.i.h.bf16 %v5821_v63  ;;  %v5822_v28 = vunpack.i.l.bf16 %v5821_v63  ;;  %v2016_v15 = vsel %vm2006_vm2, %v1999_v7, %v5818_v33  ;;  %v2015_v11 = vsel %vm2006_vm2, %v1998_v41, %v5817_v54  ;;  %v7664_v41 = vld [vmem:[#allocation18] ss:$0 sm:$0xff] }
 0x2a7   : > { %v5826_v56 = vpop.permute.xlu1 %5825 }
 0x2a8   : > { %v5828_v8 = vunpack.i.h.bf16 %v5826_v56  ;;  %v5827_v44 = vunpack.i.l.bf16 %v5826_v56  ;;  %v2017_v14 = vsel %vm2006_vm2, %v2000_v42, %v5822_v28  ;;  %v2018_v9 = vsel %vm2006_vm2, %v2001_v2, %v5823_v57  ;;  %v7662_v57 = vld [vmem:[#allocation17] ss:$0 sm:$0xff] }
 0x2a9   : > { %v5831_v52 = vpop.permute.xlu0 %5830 }
 0x2aa   : > { %v5833_v59 = vunpack.i.h.bf16 %v5831_v52  ;;  %v5832_v3 = vunpack.i.l.bf16 %v5831_v52  ;;  %v2032_v4 = vsel %vm2023_vm7, %v2015_v11, %v5827_v44  ;;  %v2033_v5 = vsel %vm2023_vm7, %v2016_v15, %v5828_v8 }
 0x2ab   : > { %v5836_v60 = vpop.permute.xlu1 %5835  ;;  %v2044_v19 = vpack.c.bf16 %v2033_v5, %v2032_v4 }
 0x2ac   : > { %v2034_v49 = vsel %vm2023_vm7, %v2017_v14, %v5832_v3  ;;  %v2035_v45 = vsel %vm2023_vm7, %v2018_v9, %v5833_v59  ;;  %v5838_v43 = vunpack.i.h.bf16 %v5836_v60  ;;  %v5837_v61 = vunpack.i.l.bf16 %v5836_v60 }
 0x2ad   : > { %5476 = vmatprep.mubr.bf16.mxu0 %v2044_v19  ;;  %v5841_v58 = vpop.permute.xlu0 %5840  ;;  %v2045_v12 = vpack.c.bf16 %v2035_v45, %v2034_v49 }
 0x2ae   : > { %v5843_v23 = vunpack.i.h.bf16 %v5841_v58  ;;  %v5842_v22 = vunpack.i.l.bf16 %v5841_v58  ;;  %v2002_v38 = vsel %vm1699_vm0, %v1746_v6, %v5837_v61  ;;  %v2003_v30 = vsel %vm1699_vm0, %v1747_v39, %v5838_v43 }
 0x2af   : > { %v5846_v13 = vpop.permute.xlu1 %5845  ;;  %5477 = vmatmul.mubr.bf16.gmra.mxu0 %v2045_v12 }
 0x2b0   : > { %v5848_v16 = vunpack.i.h.bf16 %v5846_v13  ;;  %v5847_v17 = vunpack.i.l.bf16 %v5846_v13  ;;  %v2005_v40 = vsel %vm1699_vm0, %v1749_v31, %v5843_v23  ;;  %v2004_v10 = vsel %vm1699_vm0, %v1748_v47, %v5842_v22 }
 0x2b1   : > { %v5851_v37 = vpop.permute.xlu0 %5850 }
 0x2b2   : > { %v5853_v26 = vunpack.i.h.bf16 %v5851_v37  ;;  %v5852_v46 = vunpack.i.l.bf16 %v5851_v37  ;;  %v2020_v51 = vsel %vm2006_vm2, %v2003_v30, %v5848_v16  ;;  %v2019_v34 = vsel %vm2006_vm2, %v2002_v38, %v5847_v17 }
 0x2b3   : > { %v5856_v53 = vpop.permute.xlu1 %5855 }
 0x2b4   : > { %v5858_v48 = vunpack.i.h.bf16 %v5856_v53  ;;  %v5857_v50 = vunpack.i.l.bf16 %v5856_v53  ;;  %v2021_v35 = vsel %vm2006_vm2, %v2004_v10, %v5852_v46  ;;  %v2022_v55 = vsel %vm2006_vm2, %v2005_v40, %v5853_v26 }
 0x2b5   : > { %v5861_v1 = vpop.permute.xlu0 %5860 }
 0x2b6   : > { %v5863_v62 = vunpack.i.h.bf16 %v5861_v1  ;;  %v5862_v25 = vunpack.i.l.bf16 %v5861_v1  ;;  %v2036_v33 = vsel %vm2023_vm7, %v2019_v34, %v5857_v50  ;;  %v2037_v54 = vsel %vm2023_vm7, %v2020_v51, %v5858_v48 }
 0x2b7   : > { %v2046_v63 = vpack.c.bf16 %v2037_v54, %v2036_v33 }
 0x2b8   : > { %v2038_v18 = vsel %vm2023_vm7, %v2021_v35, %v5862_v25  ;;  %v2039_v32 = vsel %vm2023_vm7, %v2022_v55, %v5863_v62 }
 0x2b9   : > { %5480 = vmatprep.mubr.bf16.mxu0 %v2046_v63  ;;  %v2047_v56 = vpack.c.bf16 %v2039_v32, %v2038_v18 }
 0x2bb   : > { %5481 = vmatmul.mubr.bf16.gmra.mxu0 %v2047_v56 }
 0x357   : > { %v5470_v28 = vpop.f32.mrf.mxu0 }
 0x358   : > { %v2218_v7 = vmul.f32 %v5470_v28, %v7662_v57 }
 0x359   : > { %v2146_v0 = vpop.f32.mrf.mxu0 }
 0x35a   : > { %v2241_v27 = vadd.f32 %v7664_v41, %v2218_v7  ;;  %v2216_v8 = vmul.f32 %v7662_v57, %v2146_v0 }
 0x35b   : > { %v5471_v44 = vpop.f32.mrf.mxu0 }
 0x35c   : > { %vm2257_vm8 = vcmp.gt.f32.partialorder %v2241_v27, 0.0  ;;  %v2273_v15 = vmul.f32 0.01, %v2241_v27  ;;  %v2239_v11 = vadd.f32 %v7664_v41, %v2216_v8  ;;  %v2219_v2 = vmul.f32 %v5471_v44, %v7662_v57 }
 0x35d   : > { %v2149_v42 = vpop.f32.mrf.mxu0 }
 0x35e   : > { %v2289_v52 = vsel %vm2257_vm8, %v2241_v27, %v2273_v15  ;;  %vm2255_vm9 = vcmp.gt.f32.partialorder %v2239_v11, 0.0  ;;  %v2271_v59 = vmul.f32 0.01, %v2239_v11  ;;  %v2242_v3 = vadd.f32 %v7664_v41, %v2219_v2 }
 0x35f   : > { %2321 = vst.msk [vmem:[#allocation8 + $0x11] sm:$0xff] %vm1699_vm0, %v2289_v52  ;;  %v2217_v4 = vmul.f32 %v7662_v57, %v2149_v42 }
 0x360   : > { %v2287_v5 = vsel %vm2255_vm9, %v2239_v11, %v2271_v59  ;;  %vm2258_vm10 = vcmp.gt.f32.partialorder %v2242_v3, 0.0  ;;  %v2274_v14 = vmul.f32 0.01, %v2242_v3 }
 0x361   : > { %2319 = vst.msk [vmem:[#allocation8 + $0x1] sm:$0xff] %vm1699_vm0, %v2287_v5  ;;  %v2240_v9 = vadd.f32 %v7664_v41, %v2217_v4 }
 0x362   : > { %v2290_v60 = vsel %vm2258_vm10, %v2242_v3, %v2274_v14  ;;  %vm2334_vm10 = vcmask 260096  }
 0x363   : > { %2322 = vst.msk [vmem:[#allocation8 + $0x19] sm:$0xff] %vm1699_vm0, %v2290_v60  ;;  %vm2256_vm11 = vcmp.gt.f32.partialorder %v2240_v9, 0.0  ;;  %v2272_v19 = vmul.f32 0.01, %v2240_v9  ;;  %v5474_v49 = vpop.f32.mrf.mxu0 }
 0x364   : > { %v2222_v45 = vmul.f32 %v5474_v49, %v7662_v57  ;;  %v5927_v49 = vld [vmem:[%s8042_s23 + $0x38] sm:$0xff]  }
 0x365   : > { %v2288_v58 = vsel %vm2256_vm11, %v2240_v9, %v2272_v19  ;;  %v2162_v12 = vpop.f32.mrf.mxu0  ;;  %5484 = vmatprep.subr.bf16.mxu1 %v5927_v49 }
 0x366   : > { %2320 = vst.msk [vmem:[#allocation8 + $0x9] sm:$0xff] %vm1699_vm0, %v2288_v58  ;;  %v2245_v13 = vadd.f32 %v7664_v41, %v2222_v45  ;;  %v2220_v43 = vmul.f32 %v7662_v57, %v2162_v12  ;;  %v5928_v45 = vld [vmem:[%s8042_s23 + $0x30] sm:$0xff]   ;;  %5485 = vmatpush3.bf16.msra.mxu1 %v5927_v49 }
 0x367   : > { %v5475_v61 = vpop.f32.mrf.mxu0  ;;  %5486 = vmatprep.subr.bf16.mxu1 %v5928_v45 }
 0x368   : > { %vm2261_vm12 = vcmp.gt.f32.partialorder %v2245_v13, 0.0  ;;  %v2277_v16 = vmul.f32 0.01, %v2245_v13  ;;  %v2243_v17 = vadd.f32 %v7664_v41, %v2220_v43  ;;  %v2223_v23 = vmul.f32 %v5475_v61, %v7662_v57 }
 0x369   : > { %v2165_v22 = vpop.f32.mrf.mxu0 }
 0x36a   : > { %v2293_v37 = vsel %vm2261_vm12, %v2245_v13, %v2277_v16  ;;  %vm2259_vm13 = vcmp.gt.f32.partialorder %v2243_v17, 0.0  ;;  %v2275_v6 = vmul.f32 0.01, %v2243_v17  ;;  %v2246_v39 = vadd.f32 %v7664_v41, %v2223_v23  ;;  %5487 = vmatpush3.bf16.msra.mxu1 %v5928_v45 }
 0x36b   : > { %2325 = vst.msk [vmem:[#allocation8 + $0x31] sm:$0xff] %vm1699_vm0, %v2293_v37  ;;  %v2221_v53 = vmul.f32 %v7662_v57, %v2165_v22  ;;  %vm2617_vm12 = vcmask 518144  }
 0x36c   : > { %v2291_v26 = vsel %vm2259_vm13, %v2243_v17, %v2275_v6  ;;  %vm2262_vm14 = vcmp.gt.f32.partialorder %v2246_v39, 0.0  ;;  %v2278_v46 = vmul.f32 0.01, %v2246_v39  ;;  %2618 = vst.msk [vmem:[#allocation4 + $0x20] sm:$0x7] %vm2617_vm12, %v7567_v36 }
 0x36d   : > { %v2336_v38 = vld [vmem:[#allocation8] ss:$4 sm:$0xff]  ;;  %v2344_v30 = vld [vmem:[#allocation8 + $0x1] ss:$4 sm:$0xff]  ;;  %2323 = vst.msk [vmem:[#allocation8 + $0x21] sm:$0xff] %vm1699_vm0, %v2291_v26  ;;  %v2244_v47 = vadd.f32 %v7664_v41, %v2221_v53 }
 0x36e   : > { %v2351_v31 = vmax.f32 %v2336_v38, %v2344_v30  ;;  %v2294_v48 = vsel %vm2262_vm14, %v2246_v39, %v2278_v46  ;;  %v2356_v50 = vld [vmem:[#allocation8 + $0x2] ss:$4 sm:$0xff]  ;;  %v2368_v1 = vld [vmem:[#allocation8 + $0x3] ss:$4 sm:$0xff]  ;;  %2914 = vst.msk [vmem:[#allocation5 + $0x8] sm:$0x7] %vm2617_vm12, %v7567_v36 }
 0x36f   : > { %2326 = vst.msk [vmem:[#allocation8 + $0x39] sm:$0xff] %vm1699_vm0, %v2294_v48  ;;  %vm2260_vm15 = vcmp.gt.f32.partialorder %v2244_v47, 0.0  ;;  %v2276_v51 = vmul.f32 0.01, %v2244_v47  ;;  %v5478_v34 = vpop.f32.mrf.mxu0  ;;  %v5942_v36 = vld [vmem:[%s8043_s2 + $0x20] sm:$0xff]  }
 0x370   : > { %v2363_v40 = vmax.f32 %v2351_v31, %v2356_v50  ;;  %v2226_v10 = vmul.f32 %v5478_v34, %v7662_v57 }
 0x371   : > { %v2292_v62 = vsel %vm2260_vm15, %v2244_v47, %v2276_v51  ;;  %v2178_v25 = vpop.f32.mrf.mxu0 }
 0x372   : > { %v2375_v33 = vmax.f32 %v2363_v40, %v2368_v1  ;;  %2324 = vst.msk [vmem:[#allocation8 + $0x29] sm:$0xff] %vm1699_vm0, %v2292_v62  ;;  %v2249_v54 = vadd.f32 %v7664_v41, %v2226_v10  ;;  %v2224_v35 = vmul.f32 %v7662_v57, %v2178_v25  ;;  %v5929_v62 = vld [vmem:[%s8042_s23 + $0x28] sm:$0xff]  }
 0x373   : > { %v5479_v55 = vpop.f32.mrf.mxu0  ;;  %5488 = vmatprep.subr.bf16.mxu1 %v5929_v62 }
 0x374   : > { %2384 = vst.msk [vmem:[#allocation3 + $0x1] sm:$0xff] %vm1699_vm0, %v2375_v33  ;;  %vm2265_vm1 = vcmp.gt.f32.partialorder %v2249_v54, 0.0  ;;  %v2281_v63 = vmul.f32 0.01, %v2249_v54  ;;  %v2247_v18 = vadd.f32 %v7664_v41, %v2224_v35  ;;  %v2227_v32 = vmul.f32 %v5479_v55, %v7662_v57  ;;  %5489 = vmatpush3.bf16.msra.mxu1 %v5929_v62  ;;  %v5931_v33 = vld [vmem:[%s8042_s23 + $0x18] sm:$0xff]  }
 0x375   : > { %v2181_v56 = vpop.f32.mrf.mxu0 }
 0x376   : > { %v2297_v28 = vsel %vm2265_vm1, %v2249_v54, %v2281_v63  ;;  %vm2263_vm5 = vcmp.gt.f32.partialorder %v2247_v18, 0.0  ;;  %v2279_v7 = vmul.f32 0.01, %v2247_v18  ;;  %v2250_v0 = vadd.f32 %v7664_v41, %v2227_v32 }
 0x377   : > { %2329 = vst.msk [vmem:[#allocation8 + $0x51] sm:$0xff] %vm1699_vm0, %v2297_v28  ;;  %v2225_v27 = vmul.f32 %v7662_v57, %v2181_v56 }
 0x378   : > { %v2295_v8 = vsel %vm2263_vm5, %v2247_v18, %v2279_v7  ;;  %vm2266_vm3 = vcmp.gt.f32.partialorder %v2250_v0, 0.0  ;;  %v2282_v44 = vmul.f32 0.01, %v2250_v0 }
 0x379   : > { %v2338_v15 = vld [vmem:[#allocation8 + $0x20] ss:$4 sm:$0xff]  ;;  %v2346_v11 = vld [vmem:[#allocation8 + $0x21] ss:$4 sm:$0xff]  ;;  %2327 = vst.msk [vmem:[#allocation8 + $0x41] sm:$0xff] %vm1699_vm0, %v2295_v8  ;;  %v2248_v2 = vadd.f32 %v7664_v41, %v2225_v27 }
 0x37a   : > { %v2352_v42 = vmax.f32 %v2338_v15, %v2346_v11  ;;  %v2298_v52 = vsel %vm2266_vm3, %v2250_v0, %v2282_v44  ;;  %v2358_v59 = vld [vmem:[#allocation8 + $0x22] ss:$4 sm:$0xff]  ;;  %v2370_v9 = vld [vmem:[#allocation8 + $0x23] ss:$4 sm:$0xff] }
 0x37b   : > { %2330 = vst.msk [vmem:[#allocation8 + $0x59] sm:$0xff] %vm1699_vm0, %v2298_v52  ;;  %vm2264_vm4 = vcmp.gt.f32.partialorder %v2248_v2, 0.0  ;;  %v2280_v3 = vmul.f32 0.01, %v2248_v2  ;;  %v5482_v4 = vpop.f32.mrf.mxu0  ;;  %v2392_v48 = vld [vmem:[#allocation3 + $0x1] sm:$0xff] }
 0x37c   : > { %v2364_v5 = vmax.f32 %v2352_v42, %v2358_v59  ;;  %v2230_v14 = vmul.f32 %v5482_v4, %v7662_v57  ;;  %v5932_v44 = vld [vmem:[%s8042_s23 + $0x10] sm:$0xff]   ;;  %v5933_v11 = vld [vmem:[%s8042_s23 + $0x8] sm:$0xff]  }
 0x37d   : > { %v2296_v60 = vsel %vm2264_vm4, %v2248_v2, %v2280_v3  ;;  %v2194_v19 = vpop.f32.mrf.mxu0  ;;  %v5934_v2 = vld [vmem:[%s8042_s23] sm:$0xff]   ;;  %vm2901_vm4 = vcmask 522240  }
 0x37e   : > { %v2376_v58 = vmax.f32 %v2364_v5, %v2370_v9  ;;  %2328 = vst.msk [vmem:[#allocation8 + $0x49] sm:$0xff] %vm1699_vm0, %v2296_v60  ;;  %v2253_v12 = vadd.f32 %v7664_v41, %v2230_v14  ;;  %v2228_v13 = vmul.f32 %v7662_v57, %v2194_v19 }
 0x37f   : > { %v5483_v43 = vpop.f32.mrf.mxu0 }
 0x380   : > { %2385 = vst.msk [vmem:[#allocation3 + $0x9] sm:$0xff] %vm1699_vm0, %v2376_v58  ;;  %vm2269_vm6 = vcmp.gt.f32.partialorder %v2253_v12, 0.0  ;;  %v2285_v61 = vmul.f32 0.01, %v2253_v12  ;;  %v2251_v16 = vadd.f32 %v7664_v41, %v2228_v13  ;;  %v2231_v17 = vmul.f32 %v5483_v43, %v7662_v57 }
 0x381   : > { %v2197_v23 = vpop.f32.mrf.mxu0 }
 0x382   : > { %v2301_v22 = vsel %vm2269_vm6, %v2253_v12, %v2285_v61  ;;  %vm2267_vm8 = vcmp.gt.f32.partialorder %v2251_v16, 0.0  ;;  %v2283_v37 = vmul.f32 0.01, %v2251_v16  ;;  %v2254_v6 = vadd.f32 %v7664_v41, %v2231_v17  ;;  %v2388_v61 = vld [vmem:[#allocation3] sm:$0xff] }
 0x383   : > { %2333 = vst.msk [vmem:[#allocation8 + $0x71] sm:$0xff] %vm1699_vm0, %v2301_v22  ;;  %v2229_v39 = vmul.f32 %v7662_v57, %v2197_v23 }
 0x384   : > { %v2299_v53 = vsel %vm2267_vm8, %v2251_v16, %v2283_v37  ;;  %vm2270_vm9 = vcmp.gt.f32.partialorder %v2254_v6, 0.0  ;;  %v2286_v26 = vmul.f32 0.01, %v2254_v6 }
 0x385   : > { %v2340_v46 = vld [vmem:[#allocation8 + $0x40] ss:$4 sm:$0xff]  ;;  %v2348_v38 = vld [vmem:[#allocation8 + $0x41] ss:$4 sm:$0xff]  ;;  %2331 = vst.msk [vmem:[#allocation8 + $0x61] sm:$0xff] %vm1699_vm0, %v2299_v53  ;;  %v2252_v30 = vadd.f32 %v7664_v41, %v2229_v39 }
 0x386   : > { %v2353_v47 = vmax.f32 %v2340_v46, %v2348_v38  ;;  %v2302_v31 = vsel %vm2270_vm9, %v2254_v6, %v2286_v26  ;;  %v2360_v50 = vld [vmem:[#allocation8 + $0x42] ss:$4 sm:$0xff]  ;;  %v2372_v10 = vld [vmem:[#allocation8 + $0x43] ss:$4 sm:$0xff] }
 0x387   : > { %2335 = vst.msk [vmem:[#allocation8 + $0x79] sm:$0x7f] %vm2334_vm10, %v2302_v31  ;;  %vm2268_vm11 = vcmp.gt.f32.partialorder %v2252_v30, 0.0  ;;  %v2284_v57 = vmul.f32 0.01, %v2252_v30  ;;  %v2393_v51 = vld [vmem:[#allocation3 + $0x9] sm:$0xff] }
 0x388   : > { %v2365_v34 = vmax.f32 %v2353_v47, %v2360_v50  ;;  %v5864_v40 = vpack.i.bf16 %v2393_v51, %v2392_v48  ;;  %v5930_v41 = vld [vmem:[%s8042_s23 + $0x20] sm:$0xff]   ;;  %v2396_v18 = vld [vmem:[#allocation3 + $0x2] sm:$0xff]  ;;  %vm4033_vm10 = vcmp.lt.s32.totalorder %v1268_v20, 256 }
 0x389   : > { %v2300_v1 = vsel %vm2268_vm11, %v2252_v30, %v2284_v57  ;;  %5490 = vmatprep.subr.bf16.mxu1 %v5930_v41  ;;  %v2400_v8 = vld [vmem:[#allocation3 + $0x3] sm:$0xff] }
 0x38a   : > { %v2377_v25 = vmax.f32 %v2365_v34, %v2372_v10  ;;  %2332 = vst.msk [vmem:[#allocation8 + $0x69] sm:$0xff] %vm1699_vm0, %v2300_v1  ;;  %5865 = vrot.lane.b32.xlu1 %v5864_v40, %s6803_s9  ;;  %5491 = vmatpush3.bf16.msra.mxu1 %v5930_v41  ;;  %v2389_v16 = vld [vmem:[#allocation3 + $0x8] sm:$0xff] }
 0x38b   : > { %5492 = vmatprep.subr.bf16.mxu1 %v5931_v33 }
 0x38c   : > { %2386 = vst.msk [vmem:[#allocation3 + $0x11] sm:$0xff] %vm1699_vm0, %v2377_v25 }
 0x38e   : > { %5493 = vmatpush3.bf16.msra.mxu1 %v5931_v33 }
 0x38f   : > { %5494 = vmatprep.subr.bf16.mxu1 %v5932_v44 }
 0x391   : > { %v2342_v54 = vld [vmem:[#allocation8 + $0x60] ss:$4 sm:$0xff]  ;;  %v2350_v35 = vld [vmem:[#allocation8 + $0x61] ss:$4 sm:$0xff]  ;;  %v2362_v63 = vld [vmem:[#allocation8 + $0x62] ss:$4 sm:$0xff] }
 0x392   : > { %v2354_v55 = vmax.f32 %v2342_v54, %v2350_v35  ;;  %v2374_v7 = vld [vmem:[#allocation8 + $0x63] ss:$4 sm:$0xff]  ;;  %5495 = vmatpush3.bf16.msra.mxu1 %v5932_v44 }
 0x393   : > { %v2397_v32 = vld [vmem:[#allocation3 + $0xa] sm:$0xff]  ;;  %5496 = vmatprep.subr.bf16.mxu1 %v5933_v11 }
 0x394   : > { %v2366_v56 = vmax.f32 %v2354_v55, %v2362_v63  ;;  %v5869_v28 = vpack.i.bf16 %v2397_v32, %v2396_v18  ;;  %v2401_v0 = vld [vmem:[#allocation3 + $0xb] sm:$0xff] }
 0x395   : > { %v5874_v15 = vpack.i.bf16 %v2401_v0, %v2400_v8  ;;  %v2394_v42 = vld [vmem:[#allocation3 + $0x11] sm:$0xff]  ;;  %v5937_v18 = vld [vmem:[%s8043_s2 + $0x70] sm:$0xff]  }
 0x396   : > { %v2378_v27 = vmax.f32 %v2366_v56, %v2374_v7  ;;  %5870 = vrot.lane.b32.xlu1 %v5869_v28, %s6804_s0  ;;  %5497 = vmatpush3.bf16.msra.mxu1 %v5933_v11  ;;  %v2390_v57 = vld [vmem:[#allocation3 + $0x10] sm:$0xff]  ;;  %v5938_v32 = vld [vmem:[%s8043_s2 + $0x30] sm:$0xff]   ;;  %v5939_v56 = vld [vmem:[%s8043_s2 + $0x68] sm:$0xff]  }
 0x397   : > { %5498 = vmatprep.subr.bf16.mxu1 %v5934_v2  ;;  %v5935_v55 = vld [vmem:[%s8043_s2 + $0x78] sm:$0xff]   ;;  %v5940_v28 = vld [vmem:[%s8043_s2 + $0x28] sm:$0xff]   ;;  %v5941_v7 = vld [vmem:[%s8043_s2 + $0x60] sm:$0xff]  }
 0x398   : > { %2387 = vst.msk [vmem:[#allocation3 + $0x19] sm:$0xff] %vm1699_vm0, %v2378_v27  ;;  %v5936_v63 = vld [vmem:[%s8043_s2 + $0x38] sm:$0xff]   ;;  %5336 = vmatprep.subr.bf16.mxu0 %v5935_v55  ;;  %v5945_v8 = vld [vmem:[%s8043_s2 + $0x50] sm:$0xff]   ;;  %v5948_v11 = vld [vmem:[%s8043_s2 + $0x8] sm:$0xff]  }
 0x399   : > { %5337 = vmatpush3.bf16.msra.mxu0 %v5936_v63  ;;  %v5943_v0 = vld [vmem:[%s8043_s2 + $0x58] sm:$0xff]   ;;  %v5946_v44 = vld [vmem:[%s8043_s2 + $0x10] sm:$0xff]  }
 0x39a   : > { %5875 = vrot.lane.b32.xlu1 %v5874_v15, %s6805_s10  ;;  %5499 = vmatpush3.bf16.msra.mxu1 %v5934_v2  ;;  %v5944_v27 = vld [vmem:[%s8043_s2 + $0x18] sm:$0xff]   ;;  %v5947_v15 = vld [vmem:[%s8043_s2 + $0x48] sm:$0xff]   ;;  %v5092_v2 = vld [vmem:[#allocation20] ss:$0 sm:$0xff] }
 0x39b   : > { %5338 = vmatprep.subr.bf16.mxu0 %v5937_v18 }
 0x39d   : > { %5339 = vmatpush3.bf16.msra.mxu0 %v5938_v32 }
 0x39e   : > { %5340 = vmatprep.subr.bf16.mxu0 %v5939_v56 }
 0x39f   : > { %v2395_v52 = vld [vmem:[#allocation3 + $0x19] sm:$0xff] }
 0x3a0   : > { %v5879_v59 = vpack.i.bf16 %v2395_v52, %v2394_v42  ;;  %v2398_v3 = vld [vmem:[#allocation3 + $0x12] sm:$0xff]  ;;  %v2399_v4 = vld [vmem:[#allocation3 + $0x1a] sm:$0xff]  ;;  %v5093_v52 = vld [vmem:[#allocation21] ss:$0 sm:$0xff] }
 0x3a1   : > { %v5884_v5 = vpack.i.bf16 %v2399_v4, %v2398_v3  ;;  %v2402_v14 = vld [vmem:[#allocation3 + $0x13] sm:$0xff]  ;;  %v2403_v9 = vld [vmem:[#allocation3 + $0x1b] sm:$0xff]  ;;  %5341 = vmatpush3.bf16.msra.mxu0 %v5940_v28 }
 0x3a2   : > { %5880 = vrot.lane.b32.xlu0 %v5879_v59, %s6803_s9  ;;  %v5889_v60 = vpack.i.bf16 %v2403_v9, %v2402_v14  ;;  %v2391_v51 = vld [vmem:[#allocation3 + $0x18] sm:$0xff]  ;;  %5342 = vmatprep.subr.bf16.mxu0 %v5941_v7 }
 0x3a5   : > { %5343 = vmatpush3.bf16.msra.mxu0 %v5942_v36 }
 0x3a6   : > { %5885 = vrot.lane.b32.xlu0 %v5884_v5, %s6804_s0  ;;  %5344 = vmatprep.subr.bf16.mxu0 %v5943_v0 }
 0x3a9   : > { %5345 = vmatpush3.bf16.msra.mxu0 %v5944_v27 }
 0x3aa   : > { %5890 = vrot.lane.b32.xlu0 %v5889_v60, %s6805_s10  ;;  %5346 = vmatprep.subr.bf16.mxu0 %v5945_v8 }
 0x3ad   : > { %5347 = vmatpush3.bf16.msra.mxu0 %v5946_v44 }
 0x3ae   : > { %5348 = vmatprep.subr.bf16.mxu0 %v5947_v15 }
 0x3b1   : > { %5349 = vmatpush3.bf16.msra.mxu0 %v5948_v11 }
 0x3fc   : > { %v5866_v19 = vpop.permute.xlu1 %5865 }
 0x3fd   : > { %v5868_v45 = vunpack.i.h.bf16 %v5866_v19  ;;  %v5867_v58 = vunpack.i.l.bf16 %v5866_v19 }
 0x3ff   : > { %v2452_v22 = vsel %vm1699_vm0, %v2388_v61, %v5867_v58  ;;  %v2453_v37 = vsel %vm1699_vm0, %v2389_v16, %v5868_v45 }
 0x408   : > { %v5871_v49 = vpop.permute.xlu1 %5870 }
 0x409   : > { %v5873_v12 = vunpack.i.h.bf16 %v5871_v49  ;;  %v5872_v13 = vunpack.i.l.bf16 %v5871_v49 }
 0x40b   : > { %v2456_v6 = vsel %vm2006_vm2, %v2452_v22, %v5872_v13  ;;  %v2457_v39 = vsel %vm2006_vm2, %v2453_v37, %v5873_v12  ;;  %v5949_v37 = vld [vmem:[%s8043_s2 + $0x40] sm:$0xff]  }
 0x40c   : > { %v5876_v43 = vpop.permute.xlu1 %5875  ;;  %5350 = vmatprep.subr.bf16.mxu0 %v5949_v37 }
 0x40d   : > { %v5878_v17 = vunpack.i.h.bf16 %v5876_v43  ;;  %v5877_v23 = vunpack.i.l.bf16 %v5876_v43 }
 0x40f   : > { %v2460_v53 = vsel %vm2023_vm7, %v2456_v6, %v5877_v23  ;;  %v2461_v26 = vsel %vm2023_vm7, %v2457_v39, %v5878_v17  ;;  %v5950_v6 = vld [vmem:[%s8043_s2] sm:$0xff]  }
 0x410   : > { %v2464_v46 = vpack.c.bf16 %v2461_v26, %v2460_v53  ;;  %5351 = vmatpush3.bf16.msra.mxu0 %v5950_v6 }
 0x412   : > { %5500 = vmatprep.mubr.bf16.mxu1 %v2464_v46 }
 0x414   : > { %v5881_v38 = vpop.permute.xlu0 %5880 }
 0x415   : > { %v5883_v47 = vunpack.i.h.bf16 %v5881_v38  ;;  %v5882_v31 = vunpack.i.l.bf16 %v5881_v38 }
 0x417   : > { %v2454_v40 = vsel %vm1699_vm0, %v2390_v57, %v5882_v31  ;;  %v2455_v10 = vsel %vm1699_vm0, %v2391_v51, %v5883_v47 }
 0x418   : > { %v5886_v30 = vpop.permute.xlu0 %5885 }
 0x419   : > { %v5888_v48 = vunpack.i.h.bf16 %v5886_v30  ;;  %v5887_v50 = vunpack.i.l.bf16 %v5886_v30 }
 0x41b   : > { %v2458_v25 = vsel %vm2006_vm2, %v2454_v40, %v5887_v50  ;;  %v2459_v41 = vsel %vm2006_vm2, %v2455_v10, %v5888_v48 }
 0x41c   : > { %v5891_v34 = vpop.permute.xlu0 %5890 }
 0x41d   : > { %v5893_v1 = vunpack.i.h.bf16 %v5891_v34  ;;  %v5892_v62 = vunpack.i.l.bf16 %v5891_v34 }
 0x41f   : > { %v2462_v33 = vsel %vm2023_vm7, %v2458_v25, %v5892_v62  ;;  %v2463_v54 = vsel %vm2023_vm7, %v2459_v41, %v5893_v1 }
 0x420   : > { %v2465_v35 = vpack.c.bf16 %v2463_v54, %v2462_v33 }
 0x422   : > { %5501 = vmatmul.mubr.bf16.vlgmr.msra.gmra.mxu1 %v2465_v35 }
 0x4e2   : > { %v5502_v42 = vpop.f32.mrf.mxu1 }
 0x4e3   : > { %v2588_v59 = vmul.f32 %v5502_v42, %v5092_v2 }
 0x4e4   : > { %v2564_v3 = vpop.f32.mrf.mxu1 }
 0x4e5   : > { %v2599_v4 = vadd.f32 %v5093_v52, %v2588_v59  ;;  %v2586_v5 = vmul.f32 %v5092_v2, %v2564_v3 }
 0x4e6   : > { %v5503_v14 = vpop.f32.mrf.mxu1 }
 0x4e7   : > { %vm2603_vm0 = vcmp.gt.f32.partialorder %v2599_v4, 0.0  ;;  %v2607_v9 = vmul.f32 0.01, %v2599_v4  ;;  %v2597_v60 = vadd.f32 %v5093_v52, %v2586_v5  ;;  %v2589_v19 = vmul.f32 %v5503_v14, %v5092_v2 }
 0x4e8   : > { %v2567_v49 = vpop.f32.mrf.mxu1 }
 0x4e9   : > { %v2611_v45 = vsel %vm2603_vm0, %v2599_v4, %v2607_v9  ;;  %vm2601_vm7 = vcmp.gt.f32.partialorder %v2597_v60, 0.0  ;;  %v2605_v58 = vmul.f32 0.01, %v2597_v60  ;;  %v2600_v12 = vadd.f32 %v5093_v52, %v2589_v19  ;;  %v5951_v9 = vld [vmem:[#allocation26 + $0x78] sm:$0xff]   ;;  %v5953_v19 = vld [vmem:[#allocation26 + $0x70] sm:$0xff]  }
 0x4ea   : > { %2621 = vst.msk [vmem:[#allocation4 + $0x11] sm:$0xff] %vm2006_vm2, %v2611_v45  ;;  %v2587_v13 = vmul.f32 %v5092_v2, %v2567_v49  ;;  %5364 = vmatprep.subr.bf16.mxu1 %v5951_v9  ;;  %v5954_v49 = vld [vmem:[#allocation26 + $0x30] sm:$0xff]   ;;  %v5955_v45 = vld [vmem:[#allocation26 + $0x68] sm:$0xff]  }
 0x4eb   : > { %v2609_v43 = vsel %vm2601_vm7, %v2597_v60, %v2605_v58  ;;  %vm2604_vm13 = vcmp.gt.f32.partialorder %v2600_v12, 0.0  ;;  %v2608_v61 = vmul.f32 0.01, %v2600_v12  ;;  %v5952_v60 = vld [vmem:[#allocation26 + $0x38] sm:$0xff]   ;;  %v5956_v58 = vld [vmem:[#allocation26 + $0x28] sm:$0xff]  }
 0x4ec   : > { %2619 = vst.msk [vmem:[#allocation4 + $0x1] sm:$0xff] %vm2006_vm2, %v2609_v43  ;;  %v2598_v16 = vadd.f32 %v5093_v52, %v2587_v13  ;;  %5365 = vmatpush3.bf16.msra.mxu1 %v5952_v60  ;;  %v5958_v13 = vld [vmem:[#allocation26 + $0x20] sm:$0xff]   ;;  %v5959_v43 = vld [vmem:[#allocation26 + $0x58] sm:$0xff]   ;;  %v5975_v60 = vld [vmem:[%s8044_s11 + $0x68] sm:$0xff]  }
 0x4ed   : > { %v2612_v17 = vsel %vm2604_vm13, %v2600_v12, %v2608_v61  ;;  %5366 = vmatprep.subr.bf16.mxu1 %v5953_v19  ;;  %v5957_v12 = vld [vmem:[#allocation26 + $0x60] sm:$0xff]   ;;  %v5960_v61 = vld [vmem:[#allocation26 + $0x18] sm:$0xff]   ;;  %vm4766_vm13 = vcmask 0  }
 0x4ee   : > { %2622 = vst.msk [vmem:[#allocation4 + $0x19] sm:$0xff] %vm2006_vm2, %v2612_v17  ;;  %vm2602_vm14 = vcmp.gt.f32.partialorder %v2598_v16, 0.0  ;;  %v2606_v23 = vmul.f32 0.01, %v2598_v16  ;;  %v5962_v17 = vld [vmem:[#allocation26 + $0x10] sm:$0xff]  }
 0x4f0   : > { %v2610_v22 = vsel %vm2602_vm14, %v2598_v16, %v2606_v23  ;;  %5367 = vmatpush3.bf16.msra.mxu1 %v5954_v49  ;;  %v5961_v16 = vld [vmem:[#allocation26 + $0x50] sm:$0xff]   ;;  %v5963_v23 = vld [vmem:[#allocation26 + $0x48] sm:$0xff]  }
 0x4f1   : > { %2620 = vst.msk [vmem:[#allocation4 + $0x9] sm:$0xff] %vm2006_vm2, %v2610_v22  ;;  %v2629_v50 = vld [vmem:[#allocation4 + $0x11] sm:$0xff]  ;;  %5368 = vmatprep.subr.bf16.mxu1 %v5955_v45 }
 0x4f2   : > { %v5964_v22 = vld [vmem:[#allocation26 + $0x8] sm:$0xff]  }
 0x4f3   : > { %v2627_v39 = vld [vmem:[#allocation4 + $0x1] sm:$0xff] }
 0x4f4   : > { %v2623_v62 = vld [vmem:[#allocation4] sm:$0xff]  ;;  %5369 = vmatpush3.bf16.msra.mxu1 %v5956_v58 }
 0x4f5   : > { %v2637_v47 = vld [vmem:[#allocation4 + $0x13] sm:$0xff]  ;;  %v2638_v31 = vld [vmem:[#allocation4 + $0x1b] sm:$0xff]  ;;  %5370 = vmatprep.subr.bf16.mxu1 %v5957_v12 }
 0x4f6   : > { %v2630_v48 = vld [vmem:[#allocation4 + $0x19] sm:$0xff]  ;;  %v5904_v57 = vpack.i.bf16 %v2638_v31, %v2637_v47 }
 0x4f7   : > { %v5909_v51 = vpack.i.bf16 %v2630_v48, %v2629_v50  ;;  %v2633_v15 = vld [vmem:[#allocation4 + $0x12] sm:$0xff]  ;;  %v2634_v11 = vld [vmem:[#allocation4 + $0x1a] sm:$0xff] }
 0x4f8   : > { %v2635_v53 = vld [vmem:[#allocation4 + $0x3] sm:$0xff]  ;;  %v2636_v26 = vld [vmem:[#allocation4 + $0xb] sm:$0xff]  ;;  %v2626_v3 = vld [vmem:[#allocation4 + $0x18] sm:$0xff]  ;;  %5371 = vmatpush3.bf16.msra.mxu1 %v5958_v13 }
 0x4f9   : > { %v2628_v46 = vld [vmem:[#allocation4 + $0x9] sm:$0xff]  ;;  %v5894_v38 = vpack.i.bf16 %v2636_v26, %v2635_v53  ;;  %5372 = vmatprep.subr.bf16.mxu1 %v5959_v43 }
 0x4fa   : > { %v5899_v30 = vpack.i.bf16 %v2628_v46, %v2627_v39  ;;  %v2624_v33 = vld [vmem:[#allocation4 + $0x8] sm:$0xff]  ;;  %v2625_v59 = vld [vmem:[#allocation4 + $0x10] sm:$0xff] }
 0x4fb   : > { %5895 = vrot.lane.b32.xlu1 %v5894_v38, %s6804_s0  ;;  %v2631_v54 = vld [vmem:[#allocation4 + $0x2] sm:$0xff]  ;;  %v2632_v35 = vld [vmem:[#allocation4 + $0xa] sm:$0xff] }
 0x4fc   : > { %5900 = vrot.lane.b32.xlu0 %v5899_v30, %s6804_s0  ;;  %5373 = vmatpush3.bf16.msra.mxu1 %v5960_v61  ;;  %v5110_v39 = vld [vmem:[#allocation23] ss:$0 sm:$0xff]  ;;  %v5111_v26 = vld [vmem:[#allocation24] ss:$0 sm:$0xff] }
 0x4fd   : > { %5374 = vmatprep.subr.bf16.mxu1 %v5961_v16 }
 0x4ff   : > { %5905 = vrot.lane.b32.xlu1 %v5904_v57, %s6804_s0 }
 0x500   : > { %5910 = vrot.lane.b32.xlu0 %v5909_v51, %s6804_s0  ;;  %5375 = vmatpush3.bf16.msra.mxu1 %v5962_v17  ;;  %v5970_v17 = vld [vmem:[%s8044_s11 + $0xb8] sm:$0xff]  }
 0x501   : > { %5376 = vmatprep.subr.bf16.mxu1 %v5963_v23  ;;  %v5972_v23 = vld [vmem:[%s8044_s11 + $0xf0] sm:$0xff]  }
 0x504   : > { %5377 = vmatpush3.bf16.msra.mxu1 %v5964_v22  ;;  %v5974_v22 = vld [vmem:[%s8044_s11 + $0xb0] sm:$0xff]  }
 0x56d   : > { %v5896_v34 = vpop.permute.xlu1 %5895 }
 0x56e   : > { %v5901_v40 = vpop.permute.xlu0 %5900  ;;  %v5898_v10 = vunpack.i.h.bf16 %v5896_v34  ;;  %v5897_v1 = vunpack.i.l.bf16 %v5896_v34 }
 0x56f   : > { %v5903_v25 = vunpack.i.h.bf16 %v5901_v40  ;;  %v5902_v41 = vunpack.i.l.bf16 %v5901_v40 }
 0x570   : > { %v2675_v18 = vsel %vm2006_vm2, %v2631_v54, %v5897_v1  ;;  %v2676_v32 = vsel %vm2006_vm2, %v2632_v35, %v5898_v10 }
 0x571   : > { %v2671_v55 = vsel %vm2006_vm2, %v2623_v62, %v5902_v41  ;;  %v2672_v63 = vsel %vm2006_vm2, %v2624_v33, %v5903_v25  ;;  %v5906_v28 = vpop.permute.xlu1 %5905  ;;  %v2680_v36 = vpack.c.bf16 %v2676_v32, %v2675_v18 }
 0x572   : > { %v2679_v56 = vpack.c.bf16 %v2672_v63, %v2671_v55  ;;  %v5911_v7 = vpop.permute.xlu0 %5910  ;;  %v5908_v0 = vunpack.i.h.bf16 %v5906_v28  ;;  %v5907_v27 = vunpack.i.l.bf16 %v5906_v28 }
 0x573   : > { %v5913_v8 = vunpack.i.h.bf16 %v5911_v7  ;;  %v5912_v44 = vunpack.i.l.bf16 %v5911_v7  ;;  %2843 = vmatprep.mubr.bf16.mxu0 %v2680_v36 }
 0x574   : > { %2844 = vmatmul.mubr.bf16.vlgmr.msra.gmra.mxu0 %v2679_v56  ;;  %v2677_v2 = vsel %vm2006_vm2, %v2633_v15, %v5907_v27  ;;  %v2678_v42 = vsel %vm2006_vm2, %v2634_v11, %v5908_v0  ;;  %v5965_v11 = vld [vmem:[#allocation26 + $0x40] sm:$0xff]  }
 0x575   : > { %v2682_v52 = vpack.c.bf16 %v2678_v42, %v2677_v2  ;;  %v2673_v4 = vsel %vm2006_vm2, %v2625_v59, %v5912_v44  ;;  %v2674_v5 = vsel %vm2006_vm2, %v2626_v3, %v5913_v8  ;;  %v5966_v2 = vld [vmem:[#allocation26] sm:$0xff]   ;;  %5378 = vmatprep.subr.bf16.mxu1 %v5965_v11  ;;  %v5971_v3 = vld [vmem:[%s8044_s11 + $0x70] sm:$0xff]  }
 0x576   : > { %v2681_v14 = vpack.c.bf16 %v2674_v5, %v2673_v4  ;;  %5379 = vmatpush3.bf16.msra.mxu1 %v5966_v2  ;;  %v5967_v42 = vld [vmem:[%s8044_s11 + $0x78] sm:$0xff]   ;;  %v5973_v4 = vld [vmem:[%s8044_s11 + $0x30] sm:$0xff]  }
 0x577   : > { %2851 = vmatprep.mubr.bf16.mxu0 %v2682_v52  ;;  %v5968_v52 = vld [vmem:[%s8044_s11 + $0xf8] sm:$0xff]   ;;  %5386 = vmatprep.subr.bf16.mxu0 %v5967_v42 }
 0x578   : > { %v5969_v59 = vld [vmem:[%s8044_s11 + $0x38] sm:$0xff]   ;;  %5408 = vmatprep.subr.bf16.mxu1 %v5968_v52 }
 0x579   : > { %5387 = vmatpush3.bf16.msra.mxu0 %v5969_v59  ;;  %v6005_v11 = vld [vmem:[%s8045_s28 + $0x70] ss:$8 sps:$4 sm:$0xff]  }
 0x57a   : > { %5388 = vmatprep.subr.bf16.mxu0 %v5971_v3 }
 0x57c   : > { %2852 = vmatmul.mubr.bf16.gmra.mxu0 %v2681_v14 }
 0x57d   : > { %5389 = vmatpush3.bf16.msra.mxu0 %v5973_v4 }
 0x57e   : > { %5390 = vmatprep.subr.bf16.mxu0 %v5975_v60  ;;  %v6011_v60 = vld [vmem:[%s8045_s28 + $0x60] ss:$8 sps:$4 sm:$0xff]  }
 0x634   : > { %v5352_v37 = vpop.f32.mrf.mxu0 }
 0x636   : > { %v5353_v6 = vpop.f32.mrf.mxu0 }
 0x637   : > { %v5354_v53 = vadd.f32 %v5353_v6, %v5352_v37  ;;  %v5976_v37 = vld [vmem:[%s8044_s11 + $0xe8] sm:$0xff]  }
 0x638   : > { %v5355_v46 = vpop.f32.mrf.mxu0  ;;  %v5977_v6 = vld [vmem:[%s8044_s11 + $0x28] sm:$0xff]  }
 0x639   : > { %v2867_v38 = vmul.f32 %v5354_v53, %v5110_v39  ;;  %5391 = vmatpush3.bf16.msra.mxu0 %v5977_v6  ;;  %v5979_v53 = vld [vmem:[%s8044_s11 + $0x60] sm:$0xff]  }
 0x63a   : > { %v5356_v30 = vpop.f32.mrf.mxu0  ;;  %5392 = vmatprep.subr.bf16.mxu0 %v5979_v53  ;;  %v6037_v6 = vld [vmem:[%s8045_s28 + $0x24] ss:$8 sps:$4 sm:$0xff]   ;;  %v6035_v53 = vld [vmem:[%s8045_s28 + $0x20] ss:$8 sps:$4 sm:$0xff]  }
 0x63b   : > { %v2878_v47 = vadd.f32 %v5111_v26, %v2867_v38  ;;  %v5357_v31 = vadd.f32 %v5356_v30, %v5355_v46  ;;  %v5981_v46 = vld [vmem:[%s8044_s11 + $0x20] sm:$0xff]   ;;  %v5983_v30 = vld [vmem:[%s8044_s11 + $0x58] sm:$0xff]  }
 0x63c   : > { %v5358_v48 = vpop.f32.mrf.mxu0  ;;  %v5982_v38 = vld [vmem:[%s8044_s11 + $0xa0] sm:$0xff]  }
 0x63d   : > { %vm2882_vm15 = vcmp.gt.f32.partialorder %v2878_v47, 0.0  ;;  %v2886_v50 = vmul.f32 0.01, %v2878_v47  ;;  %v2868_v57 = vmul.f32 %v5357_v31, %v5110_v39  ;;  %5393 = vmatpush3.bf16.msra.mxu0 %v5981_v46  ;;  %v5985_v31 = vld [vmem:[%s8044_s11 + $0x18] sm:$0xff]  }
 0x63e   : > { %v5359_v51 = vpop.f32.mrf.mxu0  ;;  %5394 = vmatprep.subr.bf16.mxu0 %v5983_v30  ;;  %v6034_v46 = vld [vmem:[%s8045_s28 + $0x114] ss:$8 sps:$4 sm:$0xff]   ;;  %v6038_v30 = vld [vmem:[%s8045_s28 + $0x100] ss:$8 sps:$4 sm:$0xff]  }
 0x63f   : > { %v2890_v34 = vsel %vm2882_vm15, %v2878_v47, %v2886_v50  ;;  %v2879_v40 = vadd.f32 %v5111_v26, %v2868_v57  ;;  %v5360_v10 = vadd.f32 %v5359_v51, %v5358_v48  ;;  %v5984_v47 = vld [vmem:[%s8044_s11 + $0xd8] sm:$0xff]   ;;  %v5987_v50 = vld [vmem:[%s8044_s11 + $0x50] sm:$0xff]  }
 0x640   : > { %2898 = vst.msk [vmem:[#allocation9 + $0x1] sm:$0xff] %vm2006_vm2, %v2890_v34  ;;  %v5361_v1 = vpop.f32.mrf.mxu0  ;;  %v5986_v48 = vld [vmem:[%s8044_s11 + $0x98] sm:$0xff]   ;;  %v5988_v57 = vld [vmem:[%s8044_s11 + $0xd0] sm:$0xff]  }
 0x641   : > { %vm2883_vm1 = vcmp.gt.f32.partialorder %v2879_v40, 0.0  ;;  %v2887_v62 = vmul.f32 0.01, %v2879_v40  ;;  %v2869_v25 = vmul.f32 %v5360_v10, %v5110_v39  ;;  %5395 = vmatpush3.bf16.msra.mxu0 %v5985_v31  ;;  %v5989_v51 = vld [vmem:[%s8044_s11 + $0x10] sm:$0xff]   ;;  %v5992_v10 = vld [vmem:[%s8044_s11 + $0xc8] sm:$0xff]  }
 0x642   : > { %v5362_v41 = vpop.f32.mrf.mxu0  ;;  %5396 = vmatprep.subr.bf16.mxu0 %v5987_v50  ;;  %v5990_v34 = vld [vmem:[%s8044_s11 + $0x90] sm:$0xff]  }
 0x643   : > { %v2891_v33 = vsel %vm2883_vm1, %v2879_v40, %v2887_v62  ;;  %v2880_v54 = vadd.f32 %v5111_v26, %v2869_v25  ;;  %v5363_v35 = vadd.f32 %v5362_v41, %v5361_v1  ;;  %v5991_v40 = vld [vmem:[%s8044_s11 + $0x48] sm:$0xff]   ;;  %v5995_v25 = vld [vmem:[%s8044_s11 + $0x40] sm:$0xff]   ;;  %v6043_v31 = vld [vmem:[%s8045_s28 + $0x14] ss:$8 sps:$4 sm:$0xff]  }
 0x644   : > { %2899 = vst.msk [vmem:[#allocation9 + $0x9] sm:$0xff] %vm2006_vm2, %v2891_v33  ;;  %v5993_v1 = vld [vmem:[%s8044_s11 + $0x8] sm:$0xff]   ;;  %v5996_v41 = vld [vmem:[%s8044_s11 + $0xc0] sm:$0xff]   ;;  %v6046_v50 = vld [vmem:[%s8045_s28 + $0x1f4] ss:$8 sps:$4 sm:$0xff]  }
 0x645   : > { %vm2884_vm5 = vcmp.gt.f32.partialorder %v2880_v54, 0.0  ;;  %v2888_v55 = vmul.f32 0.01, %v2880_v54  ;;  %v2870_v63 = vmul.f32 %v5363_v35, %v5110_v39  ;;  %v5978_v39 = vld [vmem:[%s8044_s11 + $0xa8] sm:$0xff]   ;;  %5397 = vmatpush3.bf16.msra.mxu0 %v5989_v51  ;;  %v5997_v33 = vld [vmem:[%s8044_s11] sm:$0xff]  }
 0x646   : > { %5398 = vmatprep.subr.bf16.mxu0 %v5991_v40  ;;  %v5994_v62 = vld [vmem:[%s8044_s11 + $0x88] sm:$0xff]   ;;  %v6001_v35 = vld [vmem:[%s8045_s28 + $0x174] ss:$8 sps:$4 sm:$0xff]  }
 0x647   : > { %v2892_v18 = vsel %vm2884_vm5, %v2880_v54, %v2888_v55  ;;  %v2881_v32 = vadd.f32 %v5111_v26, %v2870_v63  ;;  %v5980_v26 = vld [vmem:[%s8044_s11 + $0xe0] sm:$0xff]   ;;  %v6007_v55 = vld [vmem:[%s8045_s28 + $0x74] ss:$8 sps:$4 sm:$0xff]  }
 0x648   : > { %2900 = vst.msk [vmem:[#allocation9 + $0x11] sm:$0xff] %vm2006_vm2, %v2892_v18  ;;  %v5998_v54 = vld [vmem:[%s8044_s11 + $0x80] sm:$0xff]  }
 0x649   : > { %vm2885_vm3 = vcmp.gt.f32.partialorder %v2881_v32, 0.0  ;;  %v2889_v56 = vmul.f32 0.01, %v2881_v32  ;;  %5399 = vmatpush3.bf16.msra.mxu0 %v5993_v1  ;;  %v6049_v51 = vld [vmem:[%s8045_s28 + $0x4] ss:$8 sps:$4 sm:$0xff]  }
 0x64a   : > { %5400 = vmatprep.subr.bf16.mxu0 %v5995_v25  ;;  %v6052_v40 = vld [vmem:[%s8045_s28 + $0x1e4] ss:$8 sps:$4 sm:$0xff]   ;;  %v6055_v1 = vld [vmem:[%s8045_s28 + $0xf4] ss:$8 sps:$4 sm:$0xff]  }
 0x64b   : > { %v2893_v28 = vsel %vm2885_vm3, %v2881_v32, %v2889_v56  ;;  %v5128_v32 = vld [vmem:[#allocation27] ss:$0 sm:$0xff] }
 0x64c   : > { %2902 = vst.msk [vmem:[#allocation9 + $0x19] sm:$0x7f] %vm2901_vm4, %v2893_v28  ;;  %v5129_v28 = vld [vmem:[#allocation29] ss:$0 sm:$0xff] }
 0x64d   : > { %5401 = vmatpush3.bf16.msra.mxu0 %v5997_v33  ;;  %v6058_v25 = vld [vmem:[%s8045_s28 + $0x1d4] ss:$8 sps:$4 sm:$0xff]   ;;  %v6061_v33 = vld [vmem:[%s8045_s28 + $0xe4] ss:$8 sps:$4 sm:$0xff]  }
 0x64e   : > { %3896 = vmatprep.subr.bf16.mxu0 %v6007_v55  ;;  %v6062_v55 = vld [vmem:[%s8045_s28 + $0x1c0] ss:$8 sps:$4 sm:$0xff]  }
 0x653   : > { %v2903_v7 = vld [vmem:[#allocation9] ss:$4 sm:$0xff]  ;;  %v2905_v36 = vld [vmem:[#allocation9 + $0x1] ss:$4 sm:$0xff]  ;;  %v2908_v27 = vld [vmem:[#allocation9 + $0x2] ss:$4 sm:$0xff] }
 0x654   : > { %v2906_v0 = vmax.f32 %v2903_v7, %v2905_v36  ;;  %v2911_v44 = vld [vmem:[#allocation9 + $0x3] ss:$4 sm:$0xff] }
 0x656   : > { %v2909_v8 = vmax.f32 %v2906_v0, %v2908_v27 }
 0x658   : > { %v2912_v15 = vmax.f32 %v2909_v8, %v2911_v44 }
 0x65a   : > { %2915 = vst.msk [vmem:[#allocation5 + $0x1] sm:$0xff] %vm2006_vm2, %v2912_v15 }
 0x661   : > { %v2917_v5 = vld [vmem:[#allocation5 + $0x1] sm:$0xff] }
 0x662   : > { %v2919_v14 = vld [vmem:[#allocation5 + $0x3] sm:$0xff] }
 0x663   : > { %v5914_v9 = vpack.i.bf16 %v2917_v5, %v2919_v14  ;;  %v2916_v58 = vld [vmem:[#allocation5] sm:$0xff]  ;;  %v6013_v14 = vld [vmem:[%s8045_s28 + $0x64] ss:$8 sps:$4 sm:$0xff]  }
 0x664   : > { %v2918_v12 = vld [vmem:[#allocation5 + $0x2] sm:$0xff] }
 0x665   : > { %5915 = vrot.lane.b32.xlu1 %v5914_v9, %s6804_s0  ;;  %v5999_v5 = vld [vmem:[%s8045_s28 + $0x170] ss:$8 sps:$4 sm:$0xff]   ;;  %v6004_v9 = vld [vmem:[%s8045_s28 + $0x164] ss:$8 sps:$4 sm:$0xff]  }
 0x6d7   : > { %v5916_v19 = vpop.permute.xlu1 %5915 }
 0x6d8   : > { %v5918_v49 = vunpack.i.h.bf16 %v5916_v19  ;;  %v5917_v45 = vunpack.i.l.bf16 %v5916_v19  ;;  %v6002_v19 = vld [vmem:[%s8045_s28 + $0x160] ss:$8 sps:$4 sm:$0xff]  }
 0x6da   : > { %v2928_v13 = vsel %vm2006_vm2, %v2916_v58, %v5918_v49  ;;  %v2929_v43 = vsel %vm2006_vm2, %v2918_v12, %v5917_v45  ;;  %v6019_v49 = vld [vmem:[%s8045_s28 + $0x54] ss:$8 sps:$4 sm:$0xff]   ;;  %v6017_v58 = vld [vmem:[%s8045_s28 + $0x50] ss:$8 sps:$4 sm:$0xff]  }
 0x6db   : > { %v2930_v61 = vpack.c.bf16 %v2928_v13, %v2928_v13  ;;  %v2931_v16 = vpack.c.bf16 %v2929_v43, %v2929_v43  ;;  %v6010_v45 = vld [vmem:[%s8045_s28 + $0x154] ss:$8 sps:$4 sm:$0xff]   ;;  %v6008_v12 = vld [vmem:[%s8045_s28 + $0x150] ss:$8 sps:$4 sm:$0xff]   ;;  %v6025_v13 = vld [vmem:[%s8045_s28 + $0x44] ss:$8 sps:$4 sm:$0xff]  }
 0x6dc   : > { %v6016_v43 = vld [vmem:[%s8045_s28 + $0x144] ss:$8 sps:$4 sm:$0xff]  }
 0x6dd   : > { %3092 = vmatprep.mubr.bf16.mxu1 %v2931_v16  ;;  %v6014_v16 = vld [vmem:[%s8045_s28 + $0x140] ss:$8 sps:$4 sm:$0xff]  }
 0x6de   : > { %3093 = vmatmul.mubr.bf16.vlgmr.msra.gmra.mxu1 %v2930_v61  ;;  %v6023_v61 = vld [vmem:[%s8045_s28 + $0x40] ss:$8 sps:$4 sm:$0xff]  }
 0x6df   : > { %5409 = vmatpush3.bf16.msra.mxu1 %v5970_v17  ;;  %v6031_v17 = vld [vmem:[%s8045_s28 + $0x34] ss:$8 sps:$4 sm:$0xff]  }
 0x6e0   : > { %5410 = vmatprep.subr.bf16.mxu1 %v5972_v23  ;;  %v6022_v23 = vld [vmem:[%s8045_s28 + $0x134] ss:$8 sps:$4 sm:$0xff]  }
 0x6e3   : > { %5411 = vmatpush3.bf16.msra.mxu1 %v5974_v22  ;;  %v6029_v22 = vld [vmem:[%s8045_s28 + $0x30] ss:$8 sps:$4 sm:$0xff]  }
 0x6e4   : > { %5412 = vmatprep.subr.bf16.mxu1 %v5976_v37  ;;  %v6020_v37 = vld [vmem:[%s8045_s28 + $0x130] ss:$8 sps:$4 sm:$0xff]  }
 0x6e7   : > { %5413 = vmatpush3.bf16.msra.mxu1 %v5978_v39  ;;  %v6028_v39 = vld [vmem:[%s8045_s28 + $0x124] ss:$8 sps:$4 sm:$0xff]  }
 0x6e8   : > { %5414 = vmatprep.subr.bf16.mxu1 %v5980_v26  ;;  %v6026_v26 = vld [vmem:[%s8045_s28 + $0x120] ss:$8 sps:$4 sm:$0xff]  }
 0x6eb   : > { %5415 = vmatpush3.bf16.msra.mxu1 %v5982_v38  ;;  %v6032_v38 = vld [vmem:[%s8045_s28 + $0x110] ss:$8 sps:$4 sm:$0xff]  }
 0x6ec   : > { %5416 = vmatprep.subr.bf16.mxu1 %v5984_v47  ;;  %v6040_v47 = vld [vmem:[%s8045_s28 + $0x104] ss:$8 sps:$4 sm:$0xff]  }
 0x6ef   : > { %5417 = vmatpush3.bf16.msra.mxu1 %v5986_v48  ;;  %v6041_v48 = vld [vmem:[%s8045_s28 + $0x10] ss:$8 sps:$4 sm:$0xff]  }
 0x6f0   : > { %5418 = vmatprep.subr.bf16.mxu1 %v5988_v57  ;;  %v6044_v57 = vld [vmem:[%s8045_s28 + $0x1f0] ss:$8 sps:$4 sm:$0xff]  }
 0x6f3   : > { %5419 = vmatpush3.bf16.msra.mxu1 %v5990_v34  ;;  %v6047_v34 = vld [vmem:[%s8045_s28] ss:$8 sps:$4 sm:$0xff]  }
 0x6f4   : > { %5420 = vmatprep.subr.bf16.mxu1 %v5992_v10  ;;  %v6050_v10 = vld [vmem:[%s8045_s28 + $0x1e0] ss:$8 sps:$4 sm:$0xff]  }
 0x6f7   : > { %5421 = vmatpush3.bf16.msra.mxu1 %v5994_v62  ;;  %v6053_v62 = vld [vmem:[%s8045_s28 + $0xf0] ss:$8 sps:$4 sm:$0xff]  }
 0x6f8   : > { %5422 = vmatprep.subr.bf16.mxu1 %v5996_v41  ;;  %v6056_v41 = vld [vmem:[%s8045_s28 + $0x1d0] ss:$8 sps:$4 sm:$0xff]  }
 0x6fb   : > { %5423 = vmatpush3.bf16.msra.mxu1 %v5998_v54  ;;  %v6059_v54 = vld [vmem:[%s8045_s28 + $0xe0] ss:$8 sps:$4 sm:$0xff]  }
 0x6fc   : > { %3937 = vmatprep.subr.bf16.mxu1 %v6001_v35  ;;  %v6064_v35 = vld [vmem:[%s8045_s28 + $0x1c4] ss:$8 sps:$4 sm:$0xff]  }
 0x79e   : > { %v5380_v63 = vpop.f32.mrf.mxu1 }
 0x7a0   : > { %v5381_v18 = vpop.f32.mrf.mxu1 }
 0x7a1   : > { %v5382_v56 = vadd.f32 %v5381_v18, %v5380_v63  ;;  %v6067_v63 = vld [vmem:[%s8045_s28 + $0xd4] ss:$8 sps:$4 sm:$0xff]   ;;  %v6065_v18 = vld [vmem:[%s8045_s28 + $0xd0] ss:$8 sps:$4 sm:$0xff]  }
 0x7a2   : > { %v5383_v7 = vpop.f32.mrf.mxu1 }
 0x7a3   : > { %v3107_v36 = vmul.f32 %v5382_v56, %v5128_v32  ;;  %v6070_v32 = vld [vmem:[%s8045_s28 + $0x1b4] ss:$8 sps:$4 sm:$0xff]   ;;  %v6068_v56 = vld [vmem:[%s8045_s28 + $0x1b0] ss:$8 sps:$4 sm:$0xff]   ;;  %v6071_v7 = vld [vmem:[%s8045_s28 + $0xc0] ss:$8 sps:$4 sm:$0xff]  }
 0x7a4   : > { %v5384_v0 = vpop.f32.mrf.mxu1 }
 0x7a5   : > { %v3115_v27 = vadd.f32 %v5129_v28, %v3107_v36  ;;  %v6073_v28 = vld [vmem:[%s8045_s28 + $0xc4] ss:$8 sps:$4 sm:$0xff]   ;;  %v6074_v0 = vld [vmem:[%s8045_s28 + $0x1a0] ss:$8 sps:$4 sm:$0xff]  }
 0x7a6   : > { %v6076_v36 = vld [vmem:[%s8045_s28 + $0x1a4] ss:$8 sps:$4 sm:$0xff]  }
 0x7a7   : > { %vm3116_vm2 = vcmp.gt.f32.partialorder %v3115_v27, 0.0  ;;  %v3117_v8 = vmul.f32 0.01, %v3115_v27 }
 0x7a9   : > { %v3118_v44 = vsel %vm3116_vm2, %v3115_v27, %v3117_v8  ;;  %v6079_v27 = vld [vmem:[%s8045_s28 + $0xb4] ss:$8 sps:$4 sm:$0xff]   ;;  %v6077_v8 = vld [vmem:[%s8045_s28 + $0xb0] ss:$8 sps:$4 sm:$0xff]  }
 0x7aa   : > { %3121 = vst [vmem:[#allocation6 + $0x1] sm:$0xff] %v3118_v44  ;;  %v3127_v15 = vpack.c.bf16 %v3118_v44, %v3118_v44  ;;  %v6082_v44 = vld [vmem:[%s8045_s28 + $0x194] ss:$8 sps:$4 sm:$0xff]  }
 0x7ac   : > { %3418 = vmatprep.mubr.bf16.mxu0 %v3127_v15  ;;  %v6085_v15 = vld [vmem:[%s8045_s28 + $0xa4] ss:$8 sps:$4 sm:$0xff]  }
 0x7b1   : > { %v3125_v2 = vld [vmem:[#allocation6 + $0x3] sm:$0xff] }
 0x7b2   : > { %v3122_v42 = vld [vmem:[#allocation6] sm:$0xff]  ;;  %v3129_v59 = vpack.c.bf16 %v3125_v2, %v3125_v2  ;;  %v6080_v2 = vld [vmem:[%s8045_s28 + $0x190] ss:$8 sps:$4 sm:$0xff]  }
 0x7b3   : > { %v3124_v52 = vld [vmem:[#allocation6 + $0x2] sm:$0xff]  ;;  %v3126_v3 = vpack.c.bf16 %v3122_v42, %v3122_v42 }
 0x7b4   : > { %v3128_v4 = vpack.c.bf16 %v3124_v52, %v3124_v52  ;;  %3458 = vmatprep.mubr.bf16.mxu1 %v3129_v59  ;;  %v6083_v52 = vld [vmem:[%s8045_s28 + $0xa0] ss:$8 sps:$4 sm:$0xff]   ;;  %v6088_v59 = vld [vmem:[%s8045_s28 + $0x184] ss:$8 sps:$4 sm:$0xff]  }
 0x7b5   : > { %3419 = vmatmul.mubr.bf16.vlgmr.msra.gmra.mxu0 %v3126_v3  ;;  %v6091_v3 = vld [vmem:[%s8045_s28 + $0x94] ss:$8 sps:$4 sm:$0xff]  }
 0x7b6   : > { %3459 = vmatmul.mubr.bf16.vlgmr.msra.gmra.mxu1 %v3128_v4  ;;  %3897 = vmatpush1.bf16.msra.mxu0 %v6005_v11  ;;  %v3507_v11 = vld [vmem:[#allocation7 + $0x3] sm:$0x1]  ;;  %v6086_v4 = vld [vmem:[%s8045_s28 + $0x180] ss:$8 sps:$4 sm:$0xff]  }
 0x7b7   : > { %3938 = vmatpush1.bf16.msra.mxu1 %v5999_v5  ;;  %3898 = vmatprep.subr.bf16.mxu0 %v6013_v14  ;;  %v3511_v42 = vpack.c.bf16 %v3507_v11, %v3507_v11  ;;  %v3506_v5 = vld [vmem:[#allocation7 + $0x2] sm:$0x1]  ;;  %v6115_v11 = vld [vmem:[%s8046_s22 + $0x14] ss:$8 sps:$4 sm:$0xff]  }
 0x7b8   : > { %3939 = vmatprep.subr.bf16.mxu1 %v6004_v9  ;;  %v6089_v14 = vld [vmem:[%s8045_s28 + $0x90] ss:$8 sps:$4 sm:$0xff]   ;;  %v6094_v9 = vld [vmem:[%s8045_s28 + $0x84] ss:$8 sps:$4 sm:$0xff]  }
 0x7b9   : > { %3969 = vmatprep.mubr.bf16.mxu1 %v3511_v42 }
 0x7ba   : > { %3899 = vmatpush1.bf16.msra.mxu0 %v6011_v60  ;;  %v3510_v60 = vpack.c.bf16 %v3506_v5, %v3506_v5 }
 0x7bb   : > { %3940 = vmatpush1.bf16.msra.mxu1 %v6002_v19  ;;  %3900 = vmatprep.subr.bf16.mxu0 %v6019_v49  ;;  %v6092_v19 = vld [vmem:[%s8045_s28 + $0x80] ss:$8 sps:$4 sm:$0xff]   ;;  %v6097_v49 = vld [vmem:[%s8046_s22 + $0x74] ss:$8 sps:$4 sm:$0xff]  }
 0x7bc   : > { %3941 = vmatprep.subr.bf16.mxu1 %v6010_v45 }
 0x7be   : > { %3901 = vmatpush1.bf16.msra.mxu0 %v6017_v58 }
 0x7bf   : > { %3942 = vmatpush1.bf16.msra.mxu1 %v6008_v12  ;;  %3902 = vmatprep.subr.bf16.mxu0 %v6025_v13 }
 0x7c0   : > { %3943 = vmatprep.subr.bf16.mxu1 %v6016_v43 }
 0x7c2   : > { %3903 = vmatpush1.bf16.msra.mxu0 %v6023_v61 }
 0x7c3   : > { %3944 = vmatpush1.bf16.msra.mxu1 %v6014_v16  ;;  %3904 = vmatprep.subr.bf16.mxu0 %v6031_v17  ;;  %v5162_v17 = vld [vmem:[#allocation30] ss:$0 sm:$0xff] }
 0x7c4   : > { %3945 = vmatprep.subr.bf16.mxu1 %v6022_v23 }
 0x7c6   : > { %3905 = vmatpush1.bf16.msra.mxu0 %v6029_v22 }
 0x7c7   : > { %3946 = vmatpush1.bf16.msra.mxu1 %v6020_v37  ;;  %3906 = vmatprep.subr.bf16.mxu0 %v6037_v6  ;;  %v5163_v6 = vld [vmem:[#allocation32] ss:$0 sm:$0xff] }
 0x7c8   : > { %3947 = vmatprep.subr.bf16.mxu1 %v6028_v39 }
 0x7ca   : > { %3907 = vmatpush1.bf16.msra.mxu0 %v6035_v53 }
 0x7cb   : > { %3948 = vmatpush1.bf16.msra.mxu1 %v6026_v26  ;;  %3908 = vmatprep.subr.bf16.mxu0 %v6043_v31 }
 0x7cc   : > { %3949 = vmatprep.subr.bf16.mxu1 %v6034_v46  ;;  %v3487_v46 = vld [vmem:[#allocation10] sm:$0x1] }
 0x7ce   : > { %3909 = vmatpush1.bf16.msra.mxu0 %v6041_v48  ;;  %v3490_v48 = vld [vmem:[#allocation10 + $0x2] sm:$0x1] }
 0x7cf   : > { %3950 = vmatpush1.bf16.msra.mxu1 %v6032_v38  ;;  %3910 = vmatprep.subr.bf16.mxu0 %v6049_v51 }
 0x7d0   : > { %3951 = vmatprep.subr.bf16.mxu1 %v6040_v47 }
 0x7d2   : > { %3911 = vmatpush1.bf16.msra.mxu0 %v6047_v34 }
 0x7d3   : > { %3952 = vmatpush1.bf16.msra.mxu1 %v6038_v30  ;;  %3912 = vmatprep.subr.bf16.mxu0 %v6055_v1  ;;  %v3488_v30 = vld [vmem:[#allocation10 + $0x1] sm:$0x1] }
 0x7d4   : > { %3953 = vmatprep.subr.bf16.mxu1 %v6046_v50  ;;  %v3489_v31 = vmax.f32 %v3487_v46, %v3488_v30  ;;  %v6151_v46 = vld [vmem:[%s8047_s18 + $0x54] ss:$8 sps:$4 sm:$0xff]   ;;  %v6154_v30 = vld [vmem:[%s8047_s18 + $0x44] ss:$8 sps:$4 sm:$0xff]  }
 0x7d6   : > { %3913 = vmatpush2.bf16.msra.mxu0 %v6053_v62  ;;  %v3491_v50 = vmax.f32 %v3489_v31, %v3490_v48  ;;  %v6157_v31 = vld [vmem:[%s8047_s18 + $0x34] ss:$8 sps:$4 sm:$0xff]   ;;  %v6155_v48 = vld [vmem:[%s8047_s18 + $0x30] ss:$8 sps:$4 sm:$0xff]  }
 0x7d7   : > { %3954 = vmatpush2.bf16.msra.mxu1 %v6044_v57  ;;  %3914 = vmatprep.subr.bf16.mxu0 %v6061_v33 }
 0x7d8   : > { %3955 = vmatprep.subr.bf16.mxu1 %v6052_v40 }
 0x7da   : > { %3915 = vmatpush2.bf16.msra.mxu0 %v6059_v54  ;;  %v3504_v54 = vld [vmem:[#allocation7] sm:$0x1] }
 0x7db   : > { %3956 = vmatpush2.bf16.msra.mxu1 %v6050_v10  ;;  %3916 = vmatprep.subr.bf16.mxu0 %v6067_v63 }
 0x7dc   : > { %3957 = vmatprep.subr.bf16.mxu1 %v6058_v25 }
 0x7de   : > { %3917 = vmatpush2.bf16.msra.mxu0 %v6065_v18  ;;  %v6095_v18 = vld [vmem:[%s8046_s22 + $0x70] ss:$8 sps:$4 sm:$0xff]  }
 0x7df   : > { %3958 = vmatpush2.bf16.msra.mxu1 %v6056_v41  ;;  %3918 = vmatprep.subr.bf16.mxu0 %v6073_v28  ;;  %v6103_v28 = vld [vmem:[%s8046_s22 + $0x54] ss:$8 sps:$4 sm:$0xff]  }
 0x7e0   : > { %3959 = vmatprep.subr.bf16.mxu1 %v6064_v35 }
 0x7e2   : > { %3919 = vmatpush2.bf16.msra.mxu0 %v6071_v7  ;;  %v6101_v7 = vld [vmem:[%s8046_s22 + $0x50] ss:$8 sps:$4 sm:$0xff]  }
 0x7e3   : > { %3960 = vmatpush2.bf16.msra.mxu1 %v6062_v55  ;;  %3920 = vmatprep.subr.bf16.mxu0 %v6079_v27  ;;  %v3508_v55 = vpack.c.bf16 %v3504_v54, %v3504_v54  ;;  %v6109_v27 = vld [vmem:[%s8046_s22 + $0x34] ss:$8 sps:$4 sm:$0xff]   ;;  %v6173_v54 = vld [vmem:[%s8047_s18 + $0xd0] ss:$8 sps:$4 sm:$0xff]  }
 0x7e4   : > { %3961 = vmatprep.subr.bf16.mxu1 %v6070_v32  ;;  %v6100_v32 = vld [vmem:[%s8046_s22 + $0x64] ss:$8 sps:$4 sm:$0xff]  }
 0x7e6   : > { %3921 = vmatpush2.bf16.msra.mxu0 %v6077_v8  ;;  %v6107_v8 = vld [vmem:[%s8046_s22 + $0x30] ss:$8 sps:$4 sm:$0xff]  }
 0x7e7   : > { %3962 = vmatpush2.bf16.msra.mxu1 %v6068_v56  ;;  %3922 = vmatprep.subr.bf16.mxu0 %v6085_v15  ;;  %v6098_v56 = vld [vmem:[%s8046_s22 + $0x60] ss:$8 sps:$4 sm:$0xff]  }
 0x7e8   : > { %3963 = vmatprep.subr.bf16.mxu1 %v6076_v36  ;;  %v6106_v36 = vld [vmem:[%s8046_s22 + $0x44] ss:$8 sps:$4 sm:$0xff]   ;;  %v6110_v15 = vld [vmem:[%s8046_s22 + $0x20] ss:$8 sps:$4 sm:$0xff]  }
 0x7ea   : > { %3923 = vmatpush2.bf16.msra.mxu0 %v6083_v52 }
 0x7eb   : > { %3964 = vmatpush2.bf16.msra.mxu1 %v6074_v0  ;;  %3924 = vmatprep.subr.bf16.mxu0 %v6091_v3  ;;  %v6104_v0 = vld [vmem:[%s8046_s22 + $0x40] ss:$8 sps:$4 sm:$0xff]   ;;  %v6118_v3 = vld [vmem:[%s8046_s22 + $0x4] ss:$8 sps:$4 sm:$0xff]  }
 0x7ec   : > { %3965 = vmatprep.subr.bf16.mxu1 %v6082_v44  ;;  %v6112_v44 = vld [vmem:[%s8046_s22 + $0x24] ss:$8 sps:$4 sm:$0xff]  }
 0x7ee   : > { %3925 = vmatpush2.bf16.msra.mxu0 %v6089_v14  ;;  %v6121_v14 = vld [vmem:[%s8046_s22 + $0xf4] ss:$8 sps:$4 sm:$0xff]  }
 0x7ef   : > { %3966 = vmatpush2.bf16.msra.mxu1 %v6080_v2  ;;  %3926 = vmatprep.subr.bf16.mxu0 %v6094_v9  ;;  %v6113_v2 = vld [vmem:[%s8046_s22 + $0x10] ss:$8 sps:$4 sm:$0xff]  }
 0x7f0   : > { %3967 = vmatprep.subr.bf16.mxu1 %v6088_v59  ;;  %v6119_v9 = vld [vmem:[%s8046_s22 + $0xf0] ss:$8 sps:$4 sm:$0xff]  }
 0x7f2   : > { %3927 = vmatpush2.bf16.msra.mxu0 %v6092_v19  ;;  %v6122_v19 = vld [vmem:[%s8046_s22 + $0xe0] ss:$8 sps:$4 sm:$0xff]  }
 0x7f3   : > { %3968 = vmatpush2.bf16.msra.mxu1 %v6086_v4  ;;  %4251 = vmatprep.subr.bf16.mxu0 %v6097_v49  ;;  %v6116_v4 = vld [vmem:[%s8046_s22] ss:$8 sps:$4 sm:$0xff]   ;;  %v6127_v49 = vld [vmem:[%s8046_s22 + $0xd4] ss:$8 sps:$4 sm:$0xff]  }
 0x7f6   : > { %3970 = vmatmul.mubr.bf16.vlgmr.msra.gmra.mxu1 %v3510_v60  ;;  %v6124_v60 = vld [vmem:[%s8046_s22 + $0xe4] ss:$8 sps:$4 sm:$0xff]  }
 0x875   : > { %v5402_v45 = vpop.f32.mrf.mxu0 }
 0x876   : > { %v5424_v58 = vpop.f32.mrf.mxu1 }
 0x877   : > { %v5403_v12 = vpop.f32.mrf.mxu0 }
 0x878   : > { %v5404_v13 = vadd.f32 %v5403_v12, %v5402_v45  ;;  %v5425_v43 = vpop.f32.mrf.mxu1  ;;  %v6125_v45 = vld [vmem:[%s8046_s22 + $0xd0] ss:$8 sps:$4 sm:$0xff]   ;;  %v6128_v12 = vld [vmem:[%s8046_s22 + $0xc0] ss:$8 sps:$4 sm:$0xff]  }
 0x879   : > { %v5426_v61 = vadd.f32 %v5425_v43, %v5424_v58  ;;  %v5405_v16 = vpop.f32.mrf.mxu0  ;;  %v6130_v58 = vld [vmem:[%s8046_s22 + $0xc4] ss:$8 sps:$4 sm:$0xff]   ;;  %v6131_v43 = vld [vmem:[%s8046_s22 + $0xb0] ss:$8 sps:$4 sm:$0xff]  }
 0x87a   : > { %v5427_v23 = vpop.f32.mrf.mxu1  ;;  %v6134_v16 = vld [vmem:[%s8046_s22 + $0xa0] ss:$8 sps:$4 sm:$0xff]  }
 0x87b   : > { %v3461_v22 = vadd.f32 %v5426_v61, %v5404_v13  ;;  %v5406_v37 = vpop.f32.mrf.mxu0  ;;  %v6133_v13 = vld [vmem:[%s8046_s22 + $0xb4] ss:$8 sps:$4 sm:$0xff]   ;;  %v6136_v61 = vld [vmem:[%s8046_s22 + $0xa4] ss:$8 sps:$4 sm:$0xff]   ;;  %v6137_v23 = vld [vmem:[%s8046_s22 + $0x90] ss:$8 sps:$4 sm:$0xff]  }
 0x87c   : > { %v5428_v39 = vpop.f32.mrf.mxu1  ;;  %v6140_v37 = vld [vmem:[%s8046_s22 + $0x80] ss:$8 sps:$4 sm:$0xff]  }
 0x87d   : > { %v3473_v53 = vmul.f32 %v5162_v17, %v3461_v22  ;;  %v6139_v17 = vld [vmem:[%s8046_s22 + $0x94] ss:$8 sps:$4 sm:$0xff]   ;;  %v6142_v22 = vld [vmem:[%s8046_s22 + $0x84] ss:$8 sps:$4 sm:$0xff]  }
 0x87e   : > { %v6145_v39 = vld [vmem:[%s8047_s18 + $0x74] ss:$8 sps:$4 sm:$0xff]  }
 0x87f   : > { %v3481_v26 = vadd.f32 %v5163_v6, %v3473_v53  ;;  %v6143_v6 = vld [vmem:[%s8047_s18 + $0x70] ss:$8 sps:$4 sm:$0xff]   ;;  %v6148_v53 = vld [vmem:[%s8047_s18 + $0x64] ss:$8 sps:$4 sm:$0xff]   ;;  %4520 = vmatprep.subr.bf16.mxu1 %v6145_v39 }
 0x880   : > { %4521 = vmatpush1.bf16.msra.mxu1 %v6143_v6 }
 0x881   : > { %vm3482_vm6 = vcmp.gt.f32.partialorder %v3481_v26, 0.0  ;;  %v3483_v38 = vmul.f32 0.01, %v3481_v26  ;;  %4522 = vmatprep.subr.bf16.mxu1 %v6148_v53  ;;  %v6184_v53 = vld [vmem:[%s8047_s18 + $0xa4] ss:$8 sps:$4 sm:$0xff]  }
 0x883   : > { %v3484_v47 = vsel %vm3482_vm6, %v3481_v26, %v3483_v38  ;;  %v6146_v26 = vld [vmem:[%s8047_s18 + $0x60] ss:$8 sps:$4 sm:$0xff]   ;;  %v6149_v38 = vld [vmem:[%s8047_s18 + $0x50] ss:$8 sps:$4 sm:$0xff]  }
 0x884   : > { %3486 = vst [vmem:[#allocation10 + $0x3] sm:$0x1f] %v3484_v47  ;;  %4523 = vmatpush1.bf16.msra.mxu1 %v6146_v26  ;;  %v6152_v47 = vld [vmem:[%s8047_s18 + $0x40] ss:$8 sps:$4 sm:$0xff]  }
 0x885   : > { %4524 = vmatprep.subr.bf16.mxu1 %v6151_v46  ;;  %v6182_v26 = vld [vmem:[%s8047_s18 + $0xa0] ss:$8 sps:$4 sm:$0xff]   ;;  %v6187_v46 = vld [vmem:[%s8047_s18 + $0x94] ss:$8 sps:$4 sm:$0xff]  }
 0x888   : > { %4525 = vmatpush1.bf16.msra.mxu1 %v6149_v38  ;;  %v6185_v38 = vld [vmem:[%s8047_s18 + $0x90] ss:$8 sps:$4 sm:$0xff]  }
 0x889   : > { %4526 = vmatprep.subr.bf16.mxu1 %v6154_v30  ;;  %v6188_v30 = vld [vmem:[%s8047_s18 + $0x80] ss:$8 sps:$4 sm:$0xff]  }
 0x88b   : > { %v3492_v57 = vld [vmem:[#allocation10 + $0x3] sm:$0x1]  ;;  %v3494_v34 = vld [vmem:[#allocation10 + $0x4] sm:$0x1]  ;;  %v3496_v10 = vld [vmem:[#allocation10 + $0x5] sm:$0x1] }
 0x88c   : > { %v3493_v51 = vmax.f32 %v3491_v50, %v3492_v57  ;;  %v3498_v62 = vld [vmem:[#allocation10 + $0x6] sm:$0x1]  ;;  %v3500_v41 = vld [vmem:[#allocation10 + $0x7] sm:$0x1]  ;;  %4527 = vmatpush1.bf16.msra.mxu1 %v6152_v47  ;;  %v6160_v50 = vld [vmem:[%s8047_s18 + $0x24] ss:$8 sps:$4 sm:$0xff]  }
 0x88d   : > { %4528 = vmatprep.subr.bf16.mxu1 %v6157_v31  ;;  %v6158_v57 = vld [vmem:[%s8047_s18 + $0x20] ss:$8 sps:$4 sm:$0xff]   ;;  %v6190_v47 = vld [vmem:[%s8047_s18 + $0x84] ss:$8 sps:$4 sm:$0xff]   ;;  %v6191_v31 = vld [vmem:[%s6955_s5 + $0x78] sm:$0xff]  }
 0x88e   : > { %v3495_v40 = vmax.f32 %v3493_v51, %v3494_v34  ;;  %v6163_v51 = vld [vmem:[%s8047_s18 + $0x14] ss:$8 sps:$4 sm:$0xff]   ;;  %v6161_v34 = vld [vmem:[%s8047_s18 + $0x10] ss:$8 sps:$4 sm:$0xff]  }
 0x890   : > { %v3497_v1 = vmax.f32 %v3495_v40, %v3496_v10  ;;  %4529 = vmatpush1.bf16.msra.mxu1 %v6155_v48  ;;  %v6166_v40 = vld [vmem:[%s8047_s18 + $0x4] ss:$8 sps:$4 sm:$0xff]   ;;  %v6164_v10 = vld [vmem:[%s8047_s18] ss:$8 sps:$4 sm:$0xff]   ;;  %v6192_v48 = vld [vmem:[%s6955_s5 + $0x38] sm:$0xff]  }
 0x891   : > { %4530 = vmatprep.subr.bf16.mxu1 %v6160_v50  ;;  %v6193_v50 = vld [vmem:[%s6955_s5 + $0x70] sm:$0xff]  }
 0x892   : > { %v3499_v25 = vmax.f32 %v3497_v1, %v3498_v62  ;;  %v6169_v1 = vld [vmem:[%s8047_s18 + $0xf4] ss:$8 sps:$4 sm:$0xff]   ;;  %v6167_v62 = vld [vmem:[%s8047_s18 + $0xf0] ss:$8 sps:$4 sm:$0xff]  }
 0x894   : > { %v3501_v33 = vmax.f32 %v3499_v25, %v3500_v41  ;;  %4531 = vmatpush1.bf16.msra.mxu1 %v6158_v57  ;;  %v6172_v25 = vld [vmem:[%s8047_s18 + $0xe4] ss:$8 sps:$4 sm:$0xff]   ;;  %v6170_v41 = vld [vmem:[%s8047_s18 + $0xe0] ss:$8 sps:$4 sm:$0xff]   ;;  %v6194_v57 = vld [vmem:[%s6955_s5 + $0x30] sm:$0xff]  }
 0x895   : > { %4532 = vmatprep.subr.bf16.mxu1 %v6163_v51  ;;  %v6195_v51 = vld [vmem:[%s6955_s5 + $0x68] sm:$0xff]  }
 0x896   : > { %3503 = vst [vmem:[#allocation7 + $0x1] sm:$0x1] %v3501_v33  ;;  %v6175_v33 = vld [vmem:[%s8047_s18 + $0xd4] ss:$8 sps:$4 sm:$0xff]  }
 0x898   : > { %4533 = vmatpush1.bf16.msra.mxu1 %v6161_v34  ;;  %v6196_v34 = vld [vmem:[%s6955_s5 + $0x28] sm:$0xff]  }
 0x899   : > { %4534 = vmatprep.subr.bf16.mxu1 %v6166_v40  ;;  %v6197_v40 = vld [vmem:[%s6955_s5 + $0x60] sm:$0xff]  }
 0x89c   : > { %4535 = vmatpush1.bf16.msra.mxu1 %v6164_v10  ;;  %v6198_v10 = vld [vmem:[%s6955_s5 + $0x20] sm:$0xff]  }
 0x89d   : > { %v3505_v35 = vld [vmem:[#allocation7 + $0x1] sm:$0x1]  ;;  %4536 = vmatprep.subr.bf16.mxu1 %v6169_v1 }
 0x89e   : > { %v3509_v63 = vpack.c.bf16 %v3505_v35, %v3505_v35  ;;  %v6178_v35 = vld [vmem:[%s8047_s18 + $0xc4] ss:$8 sps:$4 sm:$0xff]   ;;  %v6199_v1 = vld [vmem:[%s6955_s5 + $0x58] sm:$0xff]  }
 0x8a0   : > { %3928 = vmatprep.mubr.bf16.mxu0 %v3509_v63  ;;  %4537 = vmatpush2.bf16.msra.mxu1 %v6167_v62  ;;  %v6181_v63 = vld [vmem:[%s8047_s18 + $0xb4] ss:$8 sps:$4 sm:$0xff]  }
 0x8a1   : > { %3929 = vmatmul.mubr.bf16.vlgmr.msra.gmra.mxu0 %v3508_v55  ;;  %4538 = vmatprep.subr.bf16.mxu1 %v6172_v25  ;;  %v6176_v55 = vld [vmem:[%s8047_s18 + $0xc0] ss:$8 sps:$4 sm:$0xff]   ;;  %v6200_v62 = vld [vmem:[%s6955_s5 + $0x18] sm:$0xff]  }
 0x8a2   : > { %4252 = vmatpush1.bf16.msra.mxu0 %v6095_v18  ;;  %v6179_v18 = vld [vmem:[%s8047_s18 + $0xb0] ss:$8 sps:$4 sm:$0xff]   ;;  %v4292_v25 = vld [vmem:[#allocation36] sm:$0x3] }
 0x8a3   : > { %4253 = vmatprep.subr.bf16.mxu0 %v6100_v32  ;;  %v3978_v32 = vld [vmem:[#allocation33] sm:$0x3] }
 0x8a4   : > { %4539 = vmatpush2.bf16.msra.mxu1 %v6170_v41  ;;  %v4306_v41 = vld [vmem:[#allocation38] sm:$0x3] }
 0x8a5   : > { %4540 = vmatprep.subr.bf16.mxu1 %v6175_v33  ;;  %v4297_v33 = vrot.slane %v4292_v25, %v7272_v29 }
 0x8a6   : > { %4254 = vmatpush1.bf16.msra.mxu0 %v6098_v56  ;;  %v3992_v56 = vld [vmem:[#allocation35] sm:$0x3] }
 0x8a7   : > { %4255 = vmatprep.subr.bf16.mxu0 %v6103_v28  ;;  %v3983_v28 = vrot.slane %v3978_v32, %v7272_v29 }
 0x8a8   : > { %4541 = vmatpush2.bf16.msra.mxu1 %v6173_v54  ;;  %v4311_v54 = vrot.slane %v4306_v41, %v7272_v29 }
 0x8a9   : > { %4542 = vmatprep.subr.bf16.mxu1 %v6178_v35  ;;  %v4301_v35 = vrot.slane %v4292_v25, %v7265_v24 }
 0x8aa   : > { %4256 = vmatpush1.bf16.msra.mxu0 %v6101_v7 }
 0x8ab   : > { %4257 = vmatprep.subr.bf16.mxu0 %v6106_v36 }
 0x8ac   : > { %4543 = vmatpush2.bf16.msra.mxu1 %v6176_v55 }
 0x8ad   : > { %4544 = vmatprep.subr.bf16.mxu1 %v6181_v63 }
 0x8ae   : > { %4258 = vmatpush1.bf16.msra.mxu0 %v6104_v0  ;;  %v3997_v0 = vrot.slane %v3992_v56, %v7272_v29 }
 0x8af   : > { %4259 = vmatprep.subr.bf16.mxu0 %v6109_v27  ;;  %v3987_v27 = vrot.slane %v3978_v32, %v7265_v24 }
 0x8b0   : > { %4545 = vmatpush2.bf16.msra.mxu1 %v6179_v18  ;;  %v4315_v18 = vrot.slane %v4306_v41, %v7265_v24 }
 0x8b1   : > { %4546 = vmatprep.subr.bf16.mxu1 %v6184_v53 }
 0x8b2   : > { %4260 = vmatpush1.bf16.msra.mxu0 %v6107_v8 }
 0x8b3   : > { %4261 = vmatprep.subr.bf16.mxu0 %v6112_v44  ;;  %v6806_v44 = vmov 1966171168  }
 0x8b4   : > { %4547 = vmatpush2.bf16.msra.mxu1 %v6182_v26 }
 0x8b5   : > { %4548 = vmatprep.subr.bf16.mxu1 %v6187_v46 }
 0x8b6   : > { %4262 = vmatpush1.bf16.msra.mxu0 %v6110_v15  ;;  %v7894_v42 = vpop.f32.mrf.mxu1  ;;  %v4017_v15 = vunpack.c.l.s4 %v6806_v44 }
 0x8b7   : > { %4263 = vmatprep.subr.bf16.mxu0 %v6115_v11 }
 0x8b8   : > { %v7896_v52 = vpop.f32.mrf.mxu1  ;;  %4549 = vmatpush2.bf16.msra.mxu1 %v6185_v38 }
 0x8b9   : > { %4550 = vmatprep.subr.bf16.mxu1 %v6190_v47 }
 0x8ba   : > { %4264 = vmatpush1.bf16.msra.mxu0 %v6113_v2  ;;  %v3975_v59 = vpop.f32.mrf.mxu1 }
 0x8bb   : > { %4265 = vmatprep.subr.bf16.mxu0 %v6118_v3  ;;  %v4001_v59 = vrot.slane %v3992_v56, %v7265_v24 }
 0x8bc   : > { %v3976_v5 = vpop.f32.mrf.mxu1  ;;  %4551 = vmatpush2.bf16.msra.mxu1 %v6188_v30 }
 0x8be   : > { %4266 = vmatpush1.bf16.msra.mxu0 %v6116_v4 }
 0x8bf   : > { %4267 = vmatprep.subr.bf16.mxu0 %v6121_v14  ;;  %v4018_v14 = vunpack.c.0.s8 %v4017_v15 }
 0x8c2   : > { %4268 = vmatpush2.bf16.msra.mxu0 %v6119_v9 }
 0x8c3   : > { %4269 = vmatprep.subr.bf16.mxu0 %v6124_v60 }
 0x8c6   : > { %4270 = vmatpush2.bf16.msra.mxu0 %v6122_v19 }
 0x8c7   : > { %4271 = vmatprep.subr.bf16.mxu0 %v6127_v49  ;;  %v4021_v49 = vsub.s32 %v4018_v14, %v7260_v21  ;;  %v6205_v14 = vld [vmem:[%s6955_s5 + $0x40] sm:$0xff]  }
 0x8ca   : > { %4272 = vmatpush2.bf16.msra.mxu0 %v6125_v45 }
 0x8cb   : > { %4273 = vmatprep.subr.bf16.mxu0 %v6130_v58 }
 0x8ce   : > { %4274 = vmatpush2.bf16.msra.mxu0 %v6128_v12 }
 0x8cf   : > { %4275 = vmatprep.subr.bf16.mxu0 %v6133_v13 }
 0x8d2   : > { %4276 = vmatpush2.bf16.msra.mxu0 %v6131_v43  ;;  %v4037_v43 = vld [vmem:[#allocation11] ss:$4 sm:$0x3] }
 0x8d3   : > { %4277 = vmatprep.subr.bf16.mxu0 %v6136_v61 }
 0x8d6   : > { %4278 = vmatpush2.bf16.msra.mxu0 %v6134_v16  ;;  %v4041_v16 = vld [vmem:[#allocation11 + $0x2] ss:$4 sm:$0x3] }
 0x8d7   : > { %4279 = vmatprep.subr.bf16.mxu0 %v6139_v17 }
 0x8da   : > { %4280 = vmatpush2.bf16.msra.mxu0 %v6137_v23  ;;  %v4044_v23 = vld [vmem:[#allocation11 + $0x3] ss:$4 sm:$0x3] }
 0x8db   : > { %4281 = vmatprep.subr.bf16.mxu0 %v6142_v22 }
 0x8de   : > { %4282 = vmatpush2.bf16.msra.mxu0 %v6140_v37 }
 0x8df   : > { %5430 = vmatprep.subr.bf16.mxu0 %v6191_v31 }
 0x961   : > { %v3930_v7 = vpop.f32.mrf.mxu0 }
 0x962   : > { %v3972_v36 = vadd.f32 %v7894_v42, %v3930_v7 }
 0x963   : > { %v3932_v8 = vpop.f32.mrf.mxu0 }
 0x964   : > { %v3990_v11 = vmul.f32 %v3983_v28, %v3972_v36  ;;  %v3974_v2 = vadd.f32 %v7896_v52, %v3932_v8 }
 0x965   : > { %v3934_v3 = vpop.f32.mrf.mxu0 }
 0x966   : > { %v4004_v4 = vadd.f32 %v3997_v0, %v3990_v11  ;;  %v3991_v5 = vmul.f32 %v3987_v27, %v3974_v2  ;;  %v6202_v3 = vld [vmem:[%s6955_s5 + $0x10] sm:$0xff]  }
 0x967   : > { %v3935_v9 = vpop.f32.mrf.mxu0 }
 0x968   : > { %v4008_v60 = vmul.f32 0.01, %v4004_v4  ;;  %v4005_v19 = vadd.f32 %v4001_v59, %v3991_v5  ;;  %vm4006_vm8 = vcmp.gt.f32.partialorder %v4004_v4, 0.0  ;;  %v6201_v59 = vld [vmem:[%s6955_s5 + $0x50] sm:$0xff]   ;;  %v6204_v5 = vld [vmem:[%s6955_s5 + $0x8] sm:$0xff]   ;;  %v6206_v9 = vld [vmem:[%s6955_s5] sm:$0xff]  }
 0x96a   : > { %vm4007_vm9 = vcmp.gt.f32.partialorder %v4005_v19, 0.0  ;;  %v4009_v42 = vmul.f32 0.01, %v4005_v19  ;;  %v4010_v45 = vsel %vm4006_vm8, %v4004_v4, %v4008_v60  ;;  %v6203_v4 = vld [vmem:[%s6955_s5 + $0x48] sm:$0xff]  }
 0x96b   : > { %v4561_v60 = vld [vmem:[#allocation39] sm:$0x3] }
 0x96c   : > { %v4011_v58 = vsel %vm4007_vm9, %v4005_v19, %v4009_v42  ;;  %v4575_v19 = vld [vmem:[#allocation41] sm:$0x3]  ;;  %v4566_v42 = vrot.slane %v4561_v60, %v7272_v29 }
 0x96d   : > { %v4015_v12 = vcombine.low %v4010_v45, %v4011_v58  ;;  %v4570_v45 = vrot.slane %v4561_v60, %v7265_v24 }
 0x96f   : > { %v4022_v13 = vrot.slane %v4015_v12, %v4021_v49 }
 0x971   : > { %v4029_v52 = vrot.slane %v4022_v13, %v4021_v49  ;;  %v4580_v49 = vrot.slane %v4575_v19, %v7272_v29  ;;  %v4584_v13 = vrot.slane %v4575_v19, %v7265_v24 }
 0x973   : > { %4036 = vst.msk [vmem:[#allocation11 + $0x1] ss:$4 sm:$0x3] %vm4033_vm10, %v4029_v52 }
 0x97a   : > { %v4038_v61 = vld [vmem:[#allocation11 + $0x1] ss:$4 sm:$0x3] }
 0x97b   : > { %v4039_v17 = vmax.f32 %v4037_v43, %v4038_v61 }
 0x97d   : > { %v4042_v22 = vmax.f32 %v4039_v17, %v4041_v16 }
 0x97f   : > { %v4045_v21 = vmax.f32 %v4042_v22, %v4044_v23 }
 0x981   : > { %v4054_v37 = vrot.slane %v4045_v21, %v7265_v24  ;;  %v4050_v6 = vrot.slane %v4045_v21, %v7272_v29  ;;  %v4629_v24 = vld [vmem:[#allocation12] sm:$0x1] }
 0x983   : > { %v4058_v20 = vpack.c.bf16 %v4054_v37, %v4054_v37  ;;  %v4057_v39 = vpack.c.bf16 %v4050_v6, %v4050_v6 }
 0x985   : > { %4283 = vmatprep.mubr.bf16.mxu0 %v4058_v20 }
 0x986   : > { %4284 = vmatmul.mubr.bf16.vlgmr.msra.gmra.mxu0 %v4057_v39 }
 0x987   : > { %5431 = vmatpush3.bf16.msra.mxu0 %v6192_v48 }
 0x988   : > { %5432 = vmatprep.subr.bf16.mxu0 %v6193_v50 }
 0x98b   : > { %5433 = vmatpush3.bf16.msra.mxu0 %v6194_v57 }
 0x98c   : > { %5434 = vmatprep.subr.bf16.mxu0 %v6195_v51 }
 0x98f   : > { %5435 = vmatpush3.bf16.msra.mxu0 %v6196_v34 }
 0x990   : > { %5436 = vmatprep.subr.bf16.mxu0 %v6197_v40 }
 0x993   : > { %5437 = vmatpush3.bf16.msra.mxu0 %v6198_v10 }
 0x994   : > { %5438 = vmatprep.subr.bf16.mxu0 %v6199_v1 }
 0x997   : > { %5439 = vmatpush3.bf16.msra.mxu0 %v6200_v62 }
 0x998   : > { %5440 = vmatprep.subr.bf16.mxu0 %v6201_v59 }
 0x99b   : > { %5441 = vmatpush3.bf16.msra.mxu0 %v6202_v3 }
 0x99c   : > { %5442 = vmatprep.subr.bf16.mxu0 %v6203_v4 }
 0x99f   : > { %5443 = vmatpush3.bf16.msra.mxu0 %v6204_v5 }
 0x9a0   : > { %5444 = vmatprep.subr.bf16.mxu0 %v6205_v14 }
 0x9a3   : > { %5445 = vmatpush3.bf16.msra.mxu0 %v6206_v9 }
 0xa46   : > { %v4285_v55 = vpop.f32.mrf.mxu0 }
 0xa47   : > { %v4304_v63 = vmul.f32 %v4297_v33, %v4285_v55 }
 0xa48   : > { %v4287_v32 = vpop.f32.mrf.mxu0 }
 0xa49   : > { %v4318_v56 = vadd.f32 %v4311_v54, %v4304_v63  ;;  %v4305_v28 = vmul.f32 %v4301_v35, %v4287_v32 }
 0xa4a   : > { %v4289_v7 = vpop.f32.mrf.mxu0 }
 0xa4b   : > { %vm4320_vm11 = vcmp.gt.f32.partialorder %v4318_v56, 0.0  ;;  %v4322_v36 = vmul.f32 0.01, %v4318_v56  ;;  %v4319_v0 = vadd.f32 %v4315_v18, %v4305_v28 }
 0xa4c   : > { %v4290_v27 = vpop.f32.mrf.mxu0 }
 0xa4d   : > { %v4323_v8 = vmul.f32 0.01, %v4319_v0  ;;  %vm4321_vm12 = vcmp.gt.f32.partialorder %v4319_v0, 0.0  ;;  %v4324_v44 = vsel %vm4320_vm11, %v4318_v56, %v4322_v36 }
 0xa4e   : > { %v4326_v2 = vpack.c.bf16 %v4324_v44, %v4324_v44 }
 0xa4f   : > { %v4325_v15 = vsel %vm4321_vm12, %v4319_v0, %v4323_v8 }
 0xa50   : > { %v4327_v11 = vpack.c.bf16 %v4325_v15, %v4325_v15 }
 0xa52   : > { %4552 = vmatprep.mubr.bf16.mxu1 %v4327_v11 }
 0xa53   : > { %4553 = vmatmul.mubr.bf16.vlgmr.msra.gmra.mxu1 %v4326_v2 }
 0xb13   : > { %v4554_v58 = vpop.f32.mrf.mxu1 }
 0xb14   : > { %v4573_v12 = vmul.f32 %v4566_v42, %v4554_v58 }
 0xb15   : > { %v4556_v52 = vpop.f32.mrf.mxu1 }
 0xb16   : > { %v4587_v43 = vadd.f32 %v4580_v49, %v4573_v12  ;;  %v4574_v61 = vmul.f32 %v4570_v45, %v4556_v52 }
 0xb17   : > { %v4558_v16 = vpop.f32.mrf.mxu1 }
 0xb18   : > { %vm4589_vm0 = vcmp.gt.f32.partialorder %v4587_v43, 0.0  ;;  %v4591_v17 = vmul.f32 0.01, %v4587_v43  ;;  %v4588_v23 = vadd.f32 %v4584_v13, %v4574_v61 }
 0xb19   : > { %v4559_v22 = vpop.f32.mrf.mxu1 }
 0xb1a   : > { %v4592_v21 = vmul.f32 0.01, %v4588_v23  ;;  %vm4590_vm7 = vcmp.gt.f32.partialorder %v4588_v23, 0.0  ;;  %v4593_v37 = vsel %vm4589_vm0, %v4587_v43, %v4591_v17 }
 0xb1b   : > { %v4595_v20 = vpack.c.bf16 %v4593_v37, %v4593_v37 }
 0xb1c   : > { %v4594_v29 = vsel %vm4590_vm7, %v4588_v23, %v4592_v21 }
 0xb1d   : > { %v4596_v6 = vpack.c.bf16 %v4594_v29, %v4594_v29 }
 0xb1f   : > { %4758 = vmatprep.mubr.bf16.mxu0 %v4596_v6 }
 0xb20   : > { %4759 = vmatmul.mubr.bf16.vlgmr.msra.gmra.mxu0 %v4595_v20 }
 0xbe0   : > { %v5446_v39 = vpop.f32.mrf.mxu0 }
 0xbe2   : > { %v5447_v53 = vpop.f32.mrf.mxu0 }
 0xbe3   : > { %v5448_v26 = vadd.f32 %v5447_v53, %v5446_v39 }
 0xbe4   : > { %v5449_v46 = vpop.f32.mrf.mxu0 }
 0xbe5   : > { %v4761_v38 = vadd.f32 %v5448_v26, %v4629_v24 }
 0xbe6   : > { %v5450_v30 = vpop.f32.mrf.mxu0 }
 0xbe7   : > { %4767 = vst.msk [vmem:[%s1168_s1] sm:$0x1] %vm4766_vm13, %v4761_v38 }
 0xbe8 PF: > { %s83_s15 = sadd.s32 1, %s6748_s15  }
 0xbe9   : > { %p80_p8 = scmp.ge.s32.totalorder %s83_s15, 4  }
 0xbeb   :  { %82 = sbr.rel (!%p80_p8) target bundleno = 63 (0x3f), region = 298 }
 0xbf0   :  { %4785 = vsyncpa [#allocation14], 1 }
 0xbf1   :  { %4787 = vsyncpa [#allocation14 + $0x1], 1 }
 0xbf2   :  { %4788 = vsyncpa [#allocation16], 1 }
 0xbf3   :  { %4789 = vsyncpa [#allocation19], 1 }
 0xbf4   :  { %4790 = vsyncpa [#allocation22], 1 }
 0xbf5   :  { %4791 = vsyncpa [#allocation25], 1 }
 0xbf6   :  { %4792 = vsyncpa [#allocation28], 1 }
 0xbf7   :  { %4793 = vsyncpa [#allocation31], 1 }
 0xbf8   :  { %4794 = vsyncpa [#allocation34], 1 }
 0xbf9   :  { %4795 = vsyncpa [#allocation37], 1 }
 0xbfa   :  { %4796 = vsyncpa [#allocation40], 1 }

</bundles_post_ra>
